<compile_context>
chip_gen: v6e
topology: v6e:2x2x1
jax: 0.10.0
libtpu: 0.0.40
codegen_flags: <defaults>
</compile_context>

<pallas_src>
import functools

import jax
import jax.numpy as jnp
from jax.experimental import pallas as pl
from jax.experimental.pallas import tpu as pltpu


def _round_up(x: int, m: int) -> int:
    return (x + m - 1) // m * m


# ---------------------------------------------------------------------------
# One-time capability probe for BlockSpec(pipeline_mode=pl.Buffered(1)).
# Only this tiny throwaway kernel is guarded; the real kernel call is never
# wrapped in a try/except, so real lowering errors surface immediately.
# ---------------------------------------------------------------------------
@functools.cache
def _single_buffer_supported() -> bool:
    def _probe_kernel(x_ref, o_ref):
        o_ref[...] = x_ref[...]

    try:
        out = pl.pallas_call(
            _probe_kernel,
            out_shape=jax.ShapeDtypeStruct((16, 128), jnp.float32),
            grid=(2,),
            in_specs=[pl.BlockSpec((8, 128), lambda i: (0, 0),
                                   pipeline_mode=pl.Buffered(1))],
            out_specs=pl.BlockSpec((8, 128), lambda i: (i, 0)),
        )(jnp.zeros((8, 128), jnp.float32))
        jax.block_until_ready(out)
        return True
    except Exception:  # capability probe only; real kernel is never masked
        return False


# ---------------------------------------------------------------------------
# Kernel
# ---------------------------------------------------------------------------
def _vib_kernel(x_ref,
                w1_ref, b1_ref,
                w2_ref, b2_ref,
                w34_ref, b34_ref,
                w5_ref, b5_ref,
                out_ref):
    """Fused VIB forward for one batch tile (bf16 MXU matmuls, f32 accumulation)."""
    x = x_ref[...].astype(jnp.bfloat16)                      # (bt, in_p)

    # bottleneck: Linear -> ReLU -> Linear -> ReLU
    h = jnp.dot(x, w1_ref[...], preferred_element_type=jnp.float32) + b1_ref[...]
    h = jnp.maximum(h, 0.0).astype(jnp.bfloat16)
    h = jnp.dot(h, w2_ref[...], preferred_element_type=jnp.float32) + b2_ref[...]
    h = jnp.maximum(h, 0.0).astype(jnp.bfloat16)

    # folded Linear(500 -> 2z) . Linear(2z -> z) (no nonlinearity between them),
    # then LeakyReLU(0.1) as mul+max (cheaper than compare+select on the VPU).
    c = jnp.dot(h, w34_ref[...], preferred_element_type=jnp.float32) + b34_ref[...]
    c = jnp.maximum(c, 0.1 * c).astype(jnp.bfloat16)

    # final classifier Linear
    out_ref[...] = (jnp.dot(c, w5_ref[...], preferred_element_type=jnp.float32)
                    + b5_ref[...]).astype(out_ref.dtype)


# ---------------------------------------------------------------------------
# One-time weight preparation (hoisted out of the per-call path)
# ---------------------------------------------------------------------------
def prepare_vib_weights(params):
    """Fold w3@w4, zero-pad every feature dim to a multiple of 128, cast to bf16.

    Call once at model load and reuse the result for every vib_forward call; this keeps
    the per-call path free of full-weight HBM passes (fold / pad / cast kernels).
    Weights are (in, out); biases are (1, out).
    """
    w1, b1 = params["w1"], params["b1"]
    w2, b2 = params["w2"], params["b2"]
    w3, b3 = params["w3"], params["b3"]
    w4, b4 = params["w4"], params["b4"]
    w5, b5 = params["w5"], params["b5"]

    in_ch, h1 = w1.shape
    h2 = w2.shape[1]
    num_class = w5.shape[1]

    # Fold the activation-free Linear(500->2z) . Linear(2z->z) pair offline, in f32.
    w34 = w3.astype(jnp.float32) @ w4.astype(jnp.float32)        # (500, z_dim)
    b34 = b3.astype(jnp.float32) @ w4.astype(jnp.float32) + b4   # (1, z_dim)
    z = w34.shape[1]

    in_p = _round_up(in_ch, 128)
    h1_p = _round_up(h1, 128)            # 1000 -> 1024
    h2_p = _round_up(h2, 128)            # 500  -> 512
    z_p = _round_up(z, 128)
    nc_p = _round_up(num_class, 128)

    def pad2(a, rows, cols, dtype):
        a = jnp.asarray(a, jnp.float32)
        a = jnp.pad(a, ((0, rows - a.shape[0]), (0, cols - a.shape[1])))
        return a.astype(dtype)

    return {
        "w1": pad2(w1, in_p, h1_p, jnp.bfloat16), "b1": pad2(b1, 1, h1_p, jnp.float32),
        "w2": pad2(w2, h1_p, h2_p, jnp.bfloat16), "b2": pad2(b2, 1, h2_p, jnp.float32),
        "w34": pad2(w34, h2_p, z_p, jnp.bfloat16), "b34": pad2(b34, 1, z_p, jnp.float32),
        "w5": pad2(w5, z_p, nc_p, jnp.bfloat16), "b5": pad2(b5, 1, nc_p, jnp.float32),
        "in_ch": in_ch, "in_p": in_p, "h1_p": h1_p, "h2_p": h2_p,
        "z_p": z_p, "nc_p": nc_p, "num_class": num_class,
    }


# ---------------------------------------------------------------------------
# Forward wrapper
# ---------------------------------------------------------------------------
def _default_batch_tile(B: int) -> int:
    """Large tiles fill the 256-row MXU (v6e/v7x) and amortize the ~0.35 us/step
    pipeline overhead; keep >= 2 grid steps when B allows so the 'parallel' batch
    axis can shard across both v7x TensorCores.  (On v5e 128-256 is already
    MXU-shaped; larger only reduces step count, which is still fine.)"""
    bt = 512
    while bt > 128 and pl.cdiv(B, bt) < 2:
        bt //= 2
    return bt


def _vmem_limit_bytes(bt, in_p, x_itemsize, h1_p, h2_p, z_p, nc_p, out_itemsize,
                      weight_buffers):
    x_buf = 2 * bt * in_p * x_itemsize                        # double-buffered input tile
    o_buf = 2 * bt * nc_p * out_itemsize                      # double-buffered output tile
    w_buf = weight_buffers * 2 * (in_p * h1_p + h1_p * h2_p + h2_p * z_p + z_p * nc_p)
    b_buf = weight_buffers * 4 * (h1_p + h2_p + z_p + nc_p)
    inter = 4 * bt * (h1_p + h2_p + z_p + nc_p)               # f32 intermediates (rough)
    est = x_buf + o_buf + w_buf + b_buf + inter
    # 1.5x headroom for Mosaic-internal scratch; cap below v7x's 64 MiB physical VMEM.
    return int(min(max(est * 3 // 2, 32 * 1024 * 1024), 56 * 1024 * 1024))


def vib_forward(v, prepared, *, batch_tile=None, out_dtype=jnp.float32):
    """VIB forward pass.  v: (B, in_ch) float32.  prepared: prepare_vib_weights(params)."""
    B, in_ch = v.shape
    assert in_ch == prepared["in_ch"], "input feature dim does not match prepared weights"
    in_p, h1_p, h2_p, z_p, nc_p = (prepared[k] for k in ("in_p", "h1_p", "h2_p", "z_p", "nc_p"))
    num_class = prepared["num_class"]

    if batch_tile is None:
        batch_tile = _default_batch_tile(B)

    if in_ch == in_p:
        # 128-aligned feature dim (e.g. in_ch=2048): feed v directly as f32, cast to
        # bf16 inside the kernel -> no wrapper-side pad/cast HBM pass over x at all.
        x = v
    else:
        # Non-aligned in_ch: one pad+bf16-cast pass over x only (batch is NOT padded;
        # the batch remainder is handled by the pl.cdiv grid below).
        x = jnp.pad(v, ((0, 0), (0, in_p - in_ch))).astype(jnp.bfloat16)

    grid = (pl.cdiv(B, batch_tile),)
    weight_buffers = 1 if _single_buffer_supported() else 2

    if weight_buffers == 1:
        def wspec(shape):
            # Grid-invariant blocks never need double-buffering -> halve their VMEM.
            return pl.BlockSpec(shape, lambda i: (0, 0), pipeline_mode=pl.Buffered(1))
    else:
        def wspec(shape):
            return pl.BlockSpec(shape, lambda i: (0, 0))

    vmem_limit = _vmem_limit_bytes(
        batch_tile, in_p, jnp.dtype(x.dtype).itemsize, h1_p, h2_p, z_p, nc_p,
        jnp.dtype(out_dtype).itemsize, weight_buffers)

    # TODO(synk): for very large in_ch (>~8K, mainly a v7x VMEM concern) add a second
    # 'arbitrary' K grid axis over in_p for the first matmul (f32 accumulator) instead
    # of holding all of w1 resident in VMEM.
    out_p = pl.pallas_call(
        _vib_kernel,
        out_shape=jax.ShapeDtypeStruct((B, nc_p), out_dtype),
        grid_spec=pltpu.PrefetchScalarGridSpec(
            num_scalar_prefetch=0,
            grid=grid,
            in_specs=[
                pl.BlockSpec((batch_tile, in_p), lambda i: (i, 0)),
                wspec(prepared["w1"].shape), wspec(prepared["b1"].shape),
                wspec(prepared["w2"].shape), wspec(prepared["b2"].shape),
                wspec(prepared["w34"].shape), wspec(prepared["b34"].shape),
                wspec(prepared["w5"].shape), wspec(prepared["b5"].shape),
            ],
            out_specs=pl.BlockSpec((batch_tile, nc_p), lambda i: (i, 0)),
        ),
        compiler_params=pltpu.CompilerParams(
            dimension_semantics=("parallel",),
            vmem_limit_bytes=vmem_limit,
        ),
    )(x, prepared["w1"], prepared["b1"], prepared["w2"], prepared["b2"],
      prepared["w34"], prepared["b34"], prepared["w5"], prepared["b5"])

    return out_p[:, :num_class]


# ---------------------------------------------------------------------------
# Parameter init (mirrors the PyTorch module) and pure-JAX reference
# ---------------------------------------------------------------------------
def init_vib_params(key, in_ch, z_dim, num_class):
    """bottleneck Linears: kaiming_normal (fan_out) weights, zero bias.
    classifier Linears: normal(std=0.001) weights, zero bias.
    Weights stored as (in, out) — transposed relative to torch's (out, in)."""
    out_ch = z_dim * 2
    num_bottleneck = 1000
    dims_kaiming = [(in_ch, num_bottleneck), (num_bottleneck, 500), (500, out_ch)]
    dims_cls = [(out_ch, out_ch // 2), (out_ch // 2, num_class)]

    keys = jax.random.split(key, 5)
    params = {}
    for idx, (fi, fo) in enumerate(dims_kaiming):
        std = (2.0 / fo) ** 0.5
        params[f"w{idx+1}"] = std * jax.random.normal(keys[idx], (fi, fo), jnp.float32)
        params[f"b{idx+1}"] = jnp.zeros((1, fo), jnp.float32)
    for j, (fi, fo) in enumerate(dims_cls):
        idx = 3 + j
        params[f"w{idx+1}"] = 0.001 * jax.random.normal(keys[idx], (fi, fo), jnp.float32)
        params[f"b{idx+1}"] = jnp.zeros((1, fo), jnp.float32)
    return params


def vib_reference(v, params):
    """Pure-JAX (f32, unfused, unpadded) reference for correctness checking."""
    h = jnp.maximum(v @ params["w1"] + params["b1"], 0.0)
    h = jnp.maximum(h @ params["w2"] + params["b2"], 0.0)
    z = h @ params["w3"] + params["b3"]
    c = z @ params["w4"] + params["b4"]
    c = jnp.where(c >= 0.0, c, 0.1 * c)
    return c @ params["w5"] + params["b5"]


if __name__ == "__main__":
    key = jax.random.PRNGKey(0)

    # Config 1: non-128-multiple dims  -> exercises the padded-x path + batch tail block.
    # Config 2: 128-aligned in_ch      -> exercises the zero-copy f32 input path (bt=256).
    configs = [
        (200, 200, 48, 37),
        (384, 256, 64, 19),
    ]
    for (B, IN_CH, Z_DIM, NUM_CLASS) in configs:
        k_x, k_p, key = jax.random.split(key, 3)
        v = jax.random.normal(k_x, (B, IN_CH), jnp.float32)
        params = init_vib_params(k_p, IN_CH, Z_DIM, NUM_CLASS)

        prepared = prepare_vib_weights(params)   # one-time; reused across forward calls
        out = vib_forward(v, prepared)
        out = jax.block_until_ready(out)

        ref = vib_reference(v, params)
        assert out.shape == (B, NUM_CLASS)
        # bf16 weights/activations + the folded w3·w4 change results at the ~1% level.
        err = jnp.max(jnp.abs(out - ref))
        scale = jnp.max(jnp.abs(ref))
        assert err <= 3e-5 + 3e-2 * scale, (
            f"mismatch vs reference (B={B}, in_ch={IN_CH}): err={err}, scale={scale}")

    print("KERNEL_OK")
</pallas_src>

<mosaic_0001>
module attributes {stable_mosaic.version = 11 : i64} {
  func.func @_probe_kernel(%arg0: i32, %arg1: memref<8x128xf32, #tpu.memory_space<vmem>>, %arg2: memref<8x128xf32, #tpu.memory_space<vmem>>) attributes {dimension_semantics = [#tpu.dimension_semantics<arbitrary>], iteration_bounds = array<i64: 2>, scalar_prefetch = 0 : i64, scratch_operands = 0 : i64, tpu.core_type = #tpu.core_type<tc>, window_params = [{pipeline_mode = #tpu.pipeline_mode<synchronous>, transform_indices = @transform_0, window_bounds = array<i64: 8, 128>}, {transform_indices = @transform_1, window_bounds = array<i64: 8, 128>}]} {
    %c0 = arith.constant 0 : index
    %c0_0 = arith.constant 0 : index
    %0 = vector.load %arg1[%c0, %c0_0] : memref<8x128xf32, #tpu.memory_space<vmem>>, vector<8x128xf32>
    %c0_1 = arith.constant 0 : index
    %c0_2 = arith.constant 0 : index
    %1 = vector.load %arg2[%c0_1, %c0_2] : memref<8x128xf32, #tpu.memory_space<vmem>>, vector<8x128xf32>
    tpu.vector_store %arg2[%c0_1, %c0_2], %0 {strides = array<i32>} : memref<8x128xf32, #tpu.memory_space<vmem>>, vector<8x128xf32>,
    return
  }
  func.func @transform_0(%arg0: i32) -> (i32, i32) {
    %c0_i32 = arith.constant 0 : i32
    %c0_i32_0 = arith.constant 0 : i32
    %c0_i32_1 = arith.constant 0 : i32
    return %c0_i32, %c0_i32_0 : i32, i32
  }
  func.func @transform_1(%arg0: i32) -> (i32, i32) {
    %c0_i32 = arith.constant 0 : i32
    %c0_i32_0 = arith.constant 0 : i32
    return %arg0, %c0_i32 : i32, i32
  }
}

module attributes {stable_mosaic.version = 11 : i64} {
  func.func @_vib_kernel(%arg0: i32, %arg1: memref<128x256xbf16, #tpu.memory_space<vmem>>, %arg2: memref<256x1024xbf16, #tpu.memory_space<vmem>>, %arg3: memref<1x1024xf32, #tpu.memory_space<vmem>>, %arg4: memref<1024x512xbf16, #tpu.memory_space<vmem>>, %arg5: memref<1x512xf32, #tpu.memory_space<vmem>>, %arg6: memref<512x128xbf16, #tpu.memory_space<vmem>>, %arg7: memref<1x128xf32, #tpu.memory_space<vmem>>, %arg8: memref<128x128xbf16, #tpu.memory_space<vmem>>, %arg9: memref<1x128xf32, #tpu.memory_space<vmem>>, %arg10: memref<128x128xf32, #tpu.memory_space<vmem>>) attributes {dimension_semantics = [#tpu.dimension_semantics<parallel>], iteration_bounds = array<i64: 2>, scalar_prefetch = 0 : i64, scratch_operands = 0 : i64, tpu.core_type = #tpu.core_type<tc>, window_params = [{transform_indices = @transform_0, window_bounds = array<i64: 128, 256>}, {pipeline_mode = #tpu.pipeline_mode<synchronous>, transform_indices = @transform_1, window_bounds = array<i64: 256, 1024>}, {pipeline_mode = #tpu.pipeline_mode<synchronous>, transform_indices = @transform_2, window_bounds = array<i64: 1, 1024>}, {pipeline_mode = #tpu.pipeline_mode<synchronous>, transform_indices = @transform_3, window_bounds = array<i64: 1024, 512>}, {pipeline_mode = #tpu.pipeline_mode<synchronous>, transform_indices = @transform_4, window_bounds = array<i64: 1, 512>}, {pipeline_mode = #tpu.pipeline_mode<synchronous>, transform_indices = @transform_5, window_bounds = array<i64: 512, 128>}, {pipeline_mode = #tpu.pipeline_mode<synchronous>, transform_indices = @transform_6, window_bounds = array<i64: 1, 128>}, {pipeline_mode = #tpu.pipeline_mode<synchronous>, transform_indices = @transform_7, window_bounds = array<i64: 128, 128>}, {pipeline_mode = #tpu.pipeline_mode<synchronous>, transform_indices = @transform_8, window_bounds = array<i64: 1, 128>}, {transform_indices = @transform_9, window_bounds = array<i64: 128, 128>}]} {
    %c0 = arith.constant 0 : index
    %c0_0 = arith.constant 0 : index
    %0 = vector.load %arg1[%c0, %c0_0] : memref<128x256xbf16, #tpu.memory_space<vmem>>, vector<128x256xbf16>
    %c0_1 = arith.constant 0 : index
    %c0_2 = arith.constant 0 : index
    %1 = vector.load %arg2[%c0_1, %c0_2] : memref<256x1024xbf16, #tpu.memory_space<vmem>>, vector<256x1024xbf16>
    %cst = arith.constant dense<0.000000e+00> : vector<128x1024xf32>
    %2 = tpu.matmul %0, %1, %cst {dimension_numbers = #tpu.dot_dimension_numbers<[1], [0], [0], [1], [0, 0, 1, 1], [], []>} : vector<128x256xbf16>, vector<256x1024xbf16>, vector<128x1024xf32> -> vector<128x1024xf32>
    %c0_3 = arith.constant 0 : index
    %c0_4 = arith.constant 0 : index
    %3 = vector.load %arg3[%c0_3, %c0_4] : memref<1x1024xf32, #tpu.memory_space<vmem>>, vector<1x1024xf32>
    %4 = vector.broadcast %3 : vector<1x1024xf32> to vector<128x1024xf32>
    %5 = arith.addf %2, %4 : vector<128x1024xf32>
    %cst_5 = arith.constant 0.000000e+00 : f32
    %6 = vector.broadcast %cst_5 : f32 to vector<128x1024xf32>
    %7 = arith.maximumf %5, %6 : vector<128x1024xf32>
    %8 = arith.truncf %7 : vector<128x1024xf32> to vector<128x1024xbf16>
    %c0_6 = arith.constant 0 : index
    %c0_7 = arith.constant 0 : index
    %9 = vector.load %arg4[%c0_6, %c0_7] : memref<1024x512xbf16, #tpu.memory_space<vmem>>, vector<1024x512xbf16>
    %cst_8 = arith.constant dense<0.000000e+00> : vector<128x512xf32>
    %10 = tpu.matmul %8, %9, %cst_8 {dimension_numbers = #tpu.dot_dimension_numbers<[1], [0], [0], [1], [0, 0, 1, 1], [], []>} : vector<128x1024xbf16>, vector<1024x512xbf16>, vector<128x512xf32> -> vector<128x512xf32>
    %c0_9 = arith.constant 0 : index
    %c0_10 = arith.constant 0 : index
    %11 = vector.load %arg5[%c0_9, %c0_10] : memref<1x512xf32, #tpu.memory_space<vmem>>, vector<1x512xf32>
    %12 = vector.broadcast %11 : vector<1x512xf32> to vector<128x512xf32>
    %13 = arith.addf %10, %12 : vector<128x512xf32>
    %cst_11 = arith.constant 0.000000e+00 : f32
    %14 = vector.broadcast %cst_11 : f32 to vector<128x512xf32>
    %15 = arith.maximumf %13, %14 : vector<128x512xf32>
    %16 = arith.truncf %15 : vector<128x512xf32> to vector<128x512xbf16>
    %c0_12 = arith.constant 0 : index
    %c0_13 = arith.constant 0 : index
    %17 = vector.load %arg6[%c0_12, %c0_13] : memref<512x128xbf16, #tpu.memory_space<vmem>>, vector<512x128xbf16>
    %cst_14 = arith.constant dense<0.000000e+00> : vector<128x128xf32>
    %18 = tpu.matmul %16, %17, %cst_14 {dimension_numbers = #tpu.dot_dimension_numbers<[1], [0], [0], [1], [0, 0, 1, 1], [], []>} : vector<128x512xbf16>, vector<512x128xbf16>, vector<128x128xf32> -> vector<128x128xf32>
    %c0_15 = arith.constant 0 : index
    %c0_16 = arith.constant 0 : index
    %19 = vector.load %arg7[%c0_15, %c0_16] : memref<1x128xf32, #tpu.memory_space<vmem>>, vector<1x128xf32>
    %20 = vector.broadcast %19 : vector<1x128xf32> to vector<128x128xf32>
    %21 = arith.addf %18, %20 : vector<128x128xf32>
    %cst_17 = arith.constant 1.000000e-01 : f32
    %22 = vector.broadcast %cst_17 : f32 to vector<128x128xf32>
    %23 = arith.mulf %22, %21 : vector<128x128xf32>
    %24 = arith.maximumf %21, %23 : vector<128x128xf32>
    %25 = arith.truncf %24 : vector<128x128xf32> to vector<128x128xbf16>
    %c0_18 = arith.constant 0 : index
    %c0_19 = arith.constant 0 : index
    %26 = vector.load %arg8[%c0_18, %c0_19] : memref<128x128xbf16, #tpu.memory_space<vmem>>, vector<128x128xbf16>
    %cst_20 = arith.constant dense<0.000000e+00> : vector<128x128xf32>
    %27 = tpu.matmul %25, %26, %cst_20 {dimension_numbers = #tpu.dot_dimension_numbers<[1], [0], [0], [1], [0, 0, 1, 1], [], []>} : vector<128x128xbf16>, vector<128x128xbf16>, vector<128x128xf32> -> vector<128x128xf32>
    %c0_21 = arith.constant 0 : index
    %c0_22 = arith.constant 0 : index
    %28 = vector.load %arg9[%c0_21, %c0_22] : memref<1x128xf32, #tpu.memory_space<vmem>>, vector<1x128xf32>
    %29 = vector.broadcast %28 : vector<1x128xf32> to vector<128x128xf32>
    %30 = arith.addf %27, %29 : vector<128x128xf32>
    %c0_23 = arith.constant 0 : index
    %c0_24 = arith.constant 0 : index
    %31 = vector.load %arg10[%c0_23, %c0_24] : memref<128x128xf32, #tpu.memory_space<vmem>>, vector<128x128xf32>
    tpu.vector_store %arg10[%c0_23, %c0_24], %30 {strides = array<i32>} : memref<128x128xf32, #tpu.memory_space<vmem>>, vector<128x128xf32>,
    return
  }
  func.func @transform_0(%arg0: i32) -> (i32, i32) {
    %c0_i32 = arith.constant 0 : i32
    %c0_i32_0 = arith.constant 0 : i32
    return %arg0, %c0_i32 : i32, i32
  }
  func.func @transform_1(%arg0: i32) -> (i32, i32) {
    %c0_i32 = arith.constant 0 : i32
    %c0_i32_0 = arith.constant 0 : i32
    %c0_i32_1 = arith.constant 0 : i32
    return %c0_i32, %c0_i32_0 : i32, i32
  }
  func.func @transform_2(%arg0: i32) -> (i32, i32) {
    %c0_i32 = arith.constant 0 : i32
    %c0_i32_0 = arith.constant 0 : i32
    %c0_i32_1 = arith.constant 0 : i32
    return %c0_i32, %c0_i32_0 : i32, i32
  }
  func.func @transform_3(%arg0: i32) -> (i32, i32) {
    %c0_i32 = arith.constant 0 : i32
    %c0_i32_0 = arith.constant 0 : i32
    %c0_i32_1 = arith.constant 0 : i32
    return %c0_i32, %c0_i32_0 : i32, i32
  }
  func.func @transform_4(%arg0: i32) -> (i32, i32) {
    %c0_i32 = arith.constant 0 : i32
    %c0_i32_0 = arith.constant 0 : i32
    %c0_i32_1 = arith.constant 0 : i32
    return %c0_i32, %c0_i32_0 : i32, i32
  }
  func.func @transform_5(%arg0: i32) -> (i32, i32) {
    %c0_i32 = arith.constant 0 : i32
    %c0_i32_0 = arith.constant 0 : i32
    %c0_i32_1 = arith.constant 0 : i32
    return %c0_i32, %c0_i32_0 : i32, i32
  }
  func.func @transform_6(%arg0: i32) -> (i32, i32) {
    %c0_i32 = arith.constant 0 : i32
    %c0_i32_0 = arith.constant 0 : i32
    %c0_i32_1 = arith.constant 0 : i32
    return %c0_i32, %c0_i32_0 : i32, i32
  }
  func.func @transform_7(%arg0: i32) -> (i32, i32) {
    %c0_i32 = arith.constant 0 : i32
    %c0_i32_0 = arith.constant 0 : i32
    %c0_i32_1 = arith.constant 0 : i32
    return %c0_i32, %c0_i32_0 : i32, i32
  }
  func.func @transform_8(%arg0: i32) -> (i32, i32) {
    %c0_i32 = arith.constant 0 : i32
    %c0_i32_0 = arith.constant 0 : i32
    %c0_i32_1 = arith.constant 0 : i32
    return %c0_i32, %c0_i32_0 : i32, i32
  }
  func.func @transform_9(%arg0: i32) -> (i32, i32) {
    %c0_i32 = arith.constant 0 : i32
    %c0_i32_0 = arith.constant 0 : i32
    return %arg0, %c0_i32 : i32, i32
  }
}

</mosaic_0001>

<bundles_post_ra>
// kernel: tpu_custom_call.1
= control target key start
LH: loop header
LB: loop body
LE: loop exit
PB: predicated region body
PF: predicated region fallthrough
CT: control target
= control target key end

     0   :  { %6 = vsyncpa [#allocation3], 0  ;;  %s453_s0 = inlined_call_operand.hbm [shape: f32[8,128], index: 0, kind: input, shape index: {}]   ;;  %s454_s1 = inlined_call_operand.hbm [shape: f32[16,128], index: 1, kind: output, shape index: {}]  }
   0x1   :  { %7 = vsyncpa [#allocation4], 0 }
   0x2   :  { %9 = vsyncpa [#allocation4 + $0x1], 0  ;;  %s347_s6 = smov 0   ;;  %s349_s7 = smov 0  }
   0x3   :  { %s351_s8 = smov 0   ;;  %s353_s9 = smov 0  }
   0x4 LB: > { %s368_s10 = sadd.s32 4294967295, %s333_s9   ;;  %s183_s11 = sadd.s32 4294967294, %s333_s9   ;;  %s333_s9 = sphi %s353_s9, %s462_s9   ;;  %s329_s8 = sphi %s351_s8, %s461_s8   ;;  %s325_s7 = sphi %s349_s7, %s460_s7   ;;  %s321_s6 = sphi %s347_s6, %s459_s6  }
   0x5   : > { %s372_s12 = sadd.s32 1, %s333_s9   ;;  %s43_s13 = sadd.s32 1, %s329_s8 }
   0x6   : > { %s40_s14 = ssub.s32 %s333_s9, %s372_s12  ;;  %p53_p0 = scmp.ne.s32.totalorder %s329_s8, %s325_s7 }
   0x7   : > { %p41_p1 = scmp.eq.s32.totalorder %s40_s14, 0  ;;  %p54_p2 = scmp.eq.s32.totalorder %s368_s10, 1 }
   0x8   : > { %p59_p3 = scmp.ne.s32.totalorder %s325_s7, %s321_s6  ;;  %p60_p4 = scmp.eq.s32.totalorder %s183_s11, 1 }
   0x9   : > { %s383_s15 = scalar_select %p41_p1, %s329_s8, %s43_s13  }
   0xa   : > { %p385_p5 = por %p54_p2, %p53_p0  ;;  %p389_p6 = por %p60_p4, %p59_p3 }
   0xb   : > { %p184_p7 = scmp.ge.s32.totalorder %s333_s9, 1  ;;  %p67_p8 = scmp.lt.s32.totalorder %s333_s9, 3 }
   0xc   : > { %s456_s17 = scalar_select %p389_p6, 1, 0 }
   0xd   : > { %p207_p9 = scmp.eq.s32.totalorder %s368_s10, 0  ;;  %p396_p10 = pnand %p184_p7, %p67_p8 }
   0xe   : > { %s335_s19 = smov [#allocation2]  }
   0xf   : > { %s80_s20 = sshll.u32 %s335_s19, 4  ;;  %p199_p11 = pneg %p396_p10  ;;  %s81_s20 = int_to_ptr.vmem [resolvable:$true] %s80_s20 }
  0x10   : > { %s254_s21 = scalar_lea.vmem %s81_s20, 128  ;;  %p262_p3 = scmp.lt.s32.totalorder %s81_s20, %s81_s20 }
  0x11   : > { %p200_p12 = pnand %p207_p9, %p199_p11  ;;  %p255_p0 = scmp.ne.s32.totalorder %s81_s20, %s254_s21 }
  0x12   : > { %p263_p4 = scmp.lt.s32.totalorder %s254_s21, %s254_s21 }
  0x13   : > { %p245_p13 = pneg %p200_p12 }
  0x14   : > { %p264_p6 = por %p263_p4, %p262_p3 }
  0x15   : > { %p257_p1 = pnand %p255_p0, %p245_p13 }
  0x17   : > { %p258_p2 = pneg %p257_p1 }
  0x19   : > { %p265_p7 = pnand %p264_p6, %p258_p2 }
  0x1b   : > { %268 = shalt.err (!%p265_p7)
}
  0x1c   : > { %202 = dma.hbm_to_vmem [thread:$0]  (!%p200_p12), %s453_s0, 128, %s81_s20, [#allocation3]  }
  0x1d   : > { %93 = sbr.rel (%p396_p10) target bundleno = 60 (0x3c), region = 24 }
  0x22   : > { %312 = dma.done.wait (%p207_p9), [#allocation3], 128  }
  0x23   : > { %314 = vsyncadd (%p207_p9), [#allocation3], 4294967168  ;;  %s105_s24 = sand.u32 1, %s325_s7   ;;  %s190_s28 = sshll.u32 %s368_s10, 7  ;;  %v108_v0 = vld [vmem:[#allocation2] sm:$0xff] }
  0x24   : > { %s188_s25 = sshll.u32 %s105_s24, 3  ;;  %s122_s2 = scalar_lea.hbm %s454_s1, %s190_s28 }
  0x25   : > { %s107_s26 = scalar_lea.vmem [#allocation5], %s188_s25  ;;  %s111_s3 = scalar_lea.sflag [#allocation4], %s105_s24 }
  0x26   : > { %s124_s27 = sshll.u32 %s107_s26, 4  ;;  %109 = vst [vmem:[%s107_s26] sm:$0xff] %v108_v0  ;;  %s336_s5 = smov [#allocation5]   ;;  %s415_s27 = int_to_ptr.vmem [resolvable:$true] %s124_s27 }
  0x27   : > { %s269_s4 = scalar_lea.vmem %s415_s27, 128  ;;  %s273_s11 = sshll.u32 %s336_s5, 4  ;;  %s274_s11 = int_to_ptr.vmem [resolvable:$false] %s273_s11 }
  0x28   : > { %p270_p6 = scmp.ne.s32.totalorder %s415_s27, %s269_s4  ;;  %s275_s10 = scalar_lea.vmem %s274_s11, 256 }
  0x29   : > { %p276_p10 = scmp.lt.s32.totalorder %s415_s27, %s274_s11  ;;  %p277_p11 = scmp.lt.s32.totalorder %s275_s10, %s269_s4 }
  0x2a   : > { %p271_p8 = pnand %p270_p6, %p385_p5 }
  0x2b   : > { %p278_p12 = por %p277_p11, %p276_p10 }
  0x2c   : > { %p272_p9 = pneg %p271_p8 }
  0x2e   : > { %p279_p13 = pnand %p278_p12, %p272_p9 }
  0x30   : > { %282 = shalt.err (!%p279_p13)
}
  0x31   : > { %s283_s13 = scalar_lea.hbm %s122_s2, 128  ;;  %s287_s19 = scalar_lea.hbm %s454_s1, 256 }
  0x32   : > { %p284_p0 = scmp.ne.s32.totalorder %s122_s2, %s283_s13  ;;  %p288_p3 = scmp.lt.s32.totalorder %s122_s2, %s454_s1 }
  0x33   : > { %p289_p4 = scmp.lt.s32.totalorder %s287_s19, %s283_s13 }
  0x34   : > { %p285_p1 = pnand %p284_p0, %p385_p5 }
  0x35   : > { %p290_p7 = por %p289_p4, %p288_p3 }
  0x36   : > { %p286_p2 = pneg %p285_p1 }
  0x38   : > { %p291_p6 = pnand %p290_p7, %p286_p2 }
  0x3a   : > { %294 = shalt.err (!%p291_p6)
}
  0x3b   : > { %197 = dma.vmem_to_hbm [thread:$0]  (%p385_p5), %s415_s27, 128, %s122_s2, %s111_s3  }
  0x3c PF: > { %p209_p8 = scmp.ge.s32.totalorder %s333_s9, 2  ;;  %s136_s22 = sand.u32 1, %s321_s6  }
  0x3d   : > { %p458_p9 = scmp.ne.s32.totalorder %s456_s17, 0  ;;  %s137_s23 = scalar_lea.sflag [#allocation4], %s136_s22 }
  0x3f   : > { %p204_p10 = pnand %p209_p8, %p458_p9 }
  0x41   : > { %p205_p11 = pneg %p204_p10 }
  0x43   : > { %316 = dma.done.wait (%p205_p11), %s137_s23, 128  }
  0x44   : > { %318 = vsyncadd (%p205_p11), %s137_s23, 4294967168  ;;  %p12_p12 = scmp.ge.s32.totalorder %s372_s12, 4   ;;  %s459_s6 = smov %s325_s7 }
  0x45   : > { %s460_s7 = smov %s329_s8  ;;  %s461_s8 = smov %s383_s15 }
  0x46   : > { %s462_s9 = smov %s372_s12  ;;  %14 = sbr.rel (!%p12_p12) target bundleno = 4 (0x4), region = 61 }
  0x4b   :  { %142 = vsyncpa [#allocation3], 1 }
  0x4c   :  { %144 = vsyncpa [#allocation3 + $0x1], 1 }
  0x4d   :  { %145 = vsyncpa [#allocation4], 1 }
  0x4e   :  { %147 = vsyncpa [#allocation4 + $0x1], 1 }

// kernel: tpu_custom_call.1
= control target key start
LH: loop header
LB: loop body
LE: loop exit
PB: predicated region body
PF: predicated region fallthrough
CT: control target
= control target key end

     0   :  { %14 = vsyncpa [#allocation3], 0  ;;  %s8119_s0 = inlined_call_operand.hbm [shape: bf16[200,256], index: 0, kind: input, shape index: {}]   ;;  %s8120_s1 = inlined_call_operand.hbm [shape: bf16[256,1024], index: 1, kind: input, shape index: {}]   ;;  %s8121_s2 = inlined_call_operand.hbm [shape: f32[1,1024], index: 2, kind: input, shape index: {}]   ;;  %s8122_s3 = inlined_call_operand.hbm [shape: bf16[1024,512], index: 3, kind: input, shape index: {}]   ;;  %s8123_s4 = inlined_call_operand.vmem [shape: f32[1,512], index: 4, kind: input, shape index: {}]   ;;  %s8124_s5 = inlined_call_operand.hbm [shape: bf16[512,128], index: 5, kind: input, shape index: {}]   ;;  %s8125_s6 = inlined_call_operand.vmem [shape: f32[1,128], index: 6, kind: input, shape index: {}]   ;;  %s8126_s7 = inlined_call_operand.hbm [shape: bf16[128,128], index: 7, kind: input, shape index: {}]   ;;  %s8127_s8 = inlined_call_operand.vmem [shape: f32[1,128], index: 8, kind: input, shape index: {}]   ;;  %s8128_s9 = inlined_call_operand.hbm [shape: f32[200,128], index: 9, kind: output, shape index: {}]  }
   0x1   :  { %16 = vsyncpa [#allocation3 + $0x1], 0 }
   0x2   :  { %17 = vsyncpa [#allocation6], 0 }
   0x3   :  { %18 = vsyncpa [#allocation9], 0 }
   0x4   :  { %19 = vsyncpa [#allocation12], 0 }
   0x5   :  { %20 = vsyncpa [#allocation4], 0 }
   0x6   :  { %22 = vsyncpa [#allocation4 + $0x1], 0  ;;  %s6894_s30 = smov 0   ;;  %s6896_s10 = smov 0  }
   0x7   :  { %s6898_s11 = smov 0   ;;  %s6900_s12 = smov 0  }
   0x8 LB: > { %8169 = sst [smem:[#allocation19_spill]] %s6813_s30  ;;  %s6915_s13 = sadd.s32 4294967295, %s6825_s12   ;;  %s6825_s12 = sphi %s6900_s12, %s8268_s12   ;;  %s6821_s11 = sphi %s6898_s11, %s8272_s11   ;;  %s6817_s10 = sphi %s6896_s10, %s8271_s10   ;;  %s6813_s30 = sphi %s6894_s30, %s8270_s30  }
   0x9   : > { %s5372_s14 = sadd.s32 4294967294, %s6825_s12   ;;  %s6919_s15 = sadd.s32 1, %s6825_s12  }
   0xa   : > { %8170 = sst [smem:[#allocation20_spill]] %s6919_s15  ;;  %s35_s16 = sadd.s32 1, %s6821_s11 }
   0xb   : > { %s32_s17 = ssub.s32 %s6825_s12, %s6919_s15  ;;  %p42_p0 = scmp.ne.s32.totalorder %s6821_s11, %s6817_s10 }
   0xc   : > { %p33_p1 = scmp.eq.s32.totalorder %s32_s17, 0  ;;  %p43_p2 = scmp.eq.s32.totalorder %s6825_s12, 0 }
   0xd   : > { %p48_p3 = scmp.ne.s32.totalorder %s6817_s10, %s6813_s30  ;;  %p8129_p4 = scmp.eq.s32.totalorder %s6915_s13, 0 }
   0xe   : > { %s6931_s18 = scalar_select %p33_p1, %s6821_s11, %s35_s16  }
   0xf   : > { %p6933_p5 = por %p43_p2, %p42_p0  ;;  %p6939_p6 = por %p8129_p4, %p48_p3 }
  0x10   : > { %8171 = sst [smem:[#allocation21_spill]] %s6931_s18  ;;  %p240_p7 = scmp.eq.s32.totalorder %s6915_s13, 1 }
  0x11   : > { %s8172_s19 = scalar_select %p6933_p5, 1, 0 }
  0x12   : > { %s8173_s20 = scalar_select %p6939_p6, 1, 0 }
  0x13   : > { %p246_p8 = scmp.eq.s32.totalorder %s5372_s14, 1  ;;  %p5373_p9 = scmp.ge.s32.totalorder %s6825_s12, 1 }
  0x14   : > { %p253_p10 = scmp.lt.s32.totalorder %s6825_s12, 3  ;;  %p6946_p11 = por %p240_p7, %p42_p0 }
  0x15   : > { %p6950_p12 = por %p246_p8, %p48_p3  ;;  %s6827_s24 = smov [#allocation5]  }
  0x16   : > { %s8174_s21 = scalar_select %p6946_p11, 1, 0 }
  0x17   : > { %s8175_s22 = scalar_select %p6950_p12, 1, 0 }
  0x18   : > { %p6954_p13 = pnand %p5373_p9, %p253_p10  ;;  %s265_s25 = sshll.u32 %s6827_s24, 4  ;;  %s266_s25 = int_to_ptr.vmem [resolvable:$true] %s265_s25 }
  0x19   : > { %8176 = sst [smem:[#allocation22_spill]] %s8175_s22  ;;  %s6828_s27 = smov [#allocation8]  }
  0x1a   : > { %s8177_s23 = scalar_select %p6954_p13, 1, 0 }
  0x1b   : > { %p6066_p1 = pneg %p6954_p13  ;;  %s289_s28 = sshll.u32 %s6828_s27, 4  ;;  %s290_s28 = int_to_ptr.vmem [resolvable:$true] %s289_s28 }
  0x1c   : > { %s6604_s14 = scalar_lea.vmem %s266_s25, 16384  ;;  %p6612_p9 = scmp.lt.s32.totalorder %s266_s25, %s266_s25 }
  0x1d   : > { %p6962_p2 = pnand %p6066_p1, %p8129_p4  ;;  %p6605_p3 = scmp.ne.s32.totalorder %s266_s25, %s6604_s14 }
  0x1e   : > { %p6613_p10 = scmp.lt.s32.totalorder %s6604_s14, %s6604_s14 }
  0x1f   : > { %p6968_p0 = pneg %p6962_p2 }
  0x20   : > { %p6614_p1 = por %p6613_p10, %p6612_p9 }
  0x21   : > { %p6607_p7 = pnand %p6605_p3, %p6968_p0 }
  0x23   : > { %p6608_p8 = pneg %p6607_p7 }
  0x25   : > { %p6615_p4 = pnand %p6614_p1, %p6608_p8 }
  0x27   : > { %6618 = shalt.err (!%p6615_p4)
}
  0x28   : > { %s6829_s16 = smov 512   ;;  %s6830_s17 = smov 32  }
  0x29   : > { %6069 = dma.hbm_to_vmem [thread:$0]  (!%p6962_p2), %s8120_s1, 16384, %s266_s25, [#allocation6], %s6829_s16, %s6829_s16, %s6830_s17  }
  0x2a   : > { %s6630_s18 = scalar_lea.vmem %s290_s28, 32768  ;;  %p6638_p7 = scmp.lt.s32.totalorder %s290_s28, %s290_s28 }
  0x2b   : > { %p6631_p12 = scmp.ne.s32.totalorder %s290_s28, %s6630_s18  ;;  %p6639_p6 = scmp.lt.s32.totalorder %s6630_s18, %s6630_s18 }
  0x2d   : > { %p6633_p11 = pnand %p6631_p12, %p6968_p0  ;;  %p6640_p13 = por %p6639_p6, %p6638_p7 }
  0x2f   : > { %p6634_p3 = pneg %p6633_p11 }
  0x31   : > { %p6641_p9 = pnand %p6640_p13, %p6634_p3 }
  0x33   : > { %6644 = shalt.err (!%p6641_p9)
}
  0x34   : > { %s6831_s14 = smov 256   ;;  %s6832_s15 = smov 16  }
  0x35   : > { %6075 = dma.hbm_to_vmem [thread:$0]  (!%p6962_p2), %s8122_s3, 32768, %s290_s28, [#allocation9], %s6831_s14, %s6831_s14, %s6832_s15  }
  0x36   : > { %s6833_s25 = smov [#allocation7]   ;;  %s6834_s17 = smov [#allocation10]  }
  0x37   : > { %s279_s16 = sshll.u32 %s6833_s25, 4  ;;  %s305_s24 = sshll.u32 %s6834_s17, 4  ;;  %s280_s16 = int_to_ptr.vmem [resolvable:$true] %s279_s16  ;;  %s306_s24 = int_to_ptr.vmem [resolvable:$true] %s305_s24 }
  0x38   : > { %s6656_s27 = scalar_lea.vmem %s280_s16, 128  ;;  %p6664_p12 = scmp.lt.s32.totalorder %s280_s16, %s280_s16 }
  0x39   : > { %p6657_p4 = scmp.ne.s32.totalorder %s280_s16, %s6656_s27  ;;  %p6665_p13 = scmp.lt.s32.totalorder %s6656_s27, %s6656_s27 }
  0x3b   : > { %p6659_p6 = pnand %p6657_p4, %p6968_p0  ;;  %p6666_p8 = por %p6665_p13, %p6664_p12 }
  0x3d   : > { %p6660_p11 = pneg %p6659_p6 }
  0x3f   : > { %p6667_p10 = pnand %p6666_p8, %p6660_p11 }
  0x41   : > { %6670 = shalt.err (!%p6667_p10)
}
  0x42   : > { %6072 = dma.hbm_to_vmem [thread:$0]  (!%p6962_p2), %s8121_s2, 128, %s280_s16, [#allocation6]  }
  0x43   : > { %s6682_s15 = scalar_lea.vmem %s306_s24, 4096  ;;  %p6690_p9 = scmp.lt.s32.totalorder %s306_s24, %s306_s24 }
  0x44   : > { %p6683_p1 = scmp.ne.s32.totalorder %s306_s24, %s6682_s15  ;;  %p6691_p4 = scmp.lt.s32.totalorder %s6682_s15, %s6682_s15 }
  0x46   : > { %p6685_p3 = pnand %p6683_p1, %p6968_p0  ;;  %p6692_p6 = por %p6691_p4, %p6690_p9 }
  0x48   : > { %p6686_p7 = pneg %p6685_p3 }
  0x4a   : > { %p6693_p5 = pnand %p6692_p6, %p6686_p7 }
  0x4c   : > { %6696 = shalt.err (!%p6693_p5)
}
  0x4d   : > { %s6835_s22 = smov 64   ;;  %s6836_s28 = smov 4  }
  0x4e   : > { %6078 = dma.hbm_to_vmem [thread:$0]  (!%p6962_p2), %s8124_s5, 4096, %s306_s24, [#allocation9], %s6835_s22, %s6835_s22, %s6836_s28  }
  0x4f   : > { %s6837_s16 = smov [#allocation11]  }
  0x50   : > { %s321_s17 = sshll.u32 %s6837_s16, 4  ;;  %s322_s17 = int_to_ptr.vmem [resolvable:$true] %s321_s17 }
  0x51   : > { %s6708_s27 = scalar_lea.vmem %s322_s17, 1024  ;;  %p6716_p8 = scmp.lt.s32.totalorder %s322_s17, %s322_s17 }
  0x52   : > { %p6709_p11 = scmp.ne.s32.totalorder %s322_s17, %s6708_s27  ;;  %p6717_p10 = scmp.lt.s32.totalorder %s6708_s27, %s6708_s27 }
  0x54   : > { %p6711_p12 = pnand %p6709_p11, %p6968_p0  ;;  %p6718_p5 = por %p6717_p10, %p6716_p8 }
  0x56   : > { %p6712_p13 = pneg %p6711_p12 }
  0x58   : > { %p6719_p1 = pnand %p6718_p5, %p6712_p13 }
  0x5a   : > { %6722 = shalt.err (!%p6719_p1)
}
  0x5b   : > { %6081 = dma.hbm_to_vmem [thread:$0]  (!%p6962_p2), %s8126_s7, 1024, %s322_s17, [#allocation12], %s6835_s22, %s6835_s22, %s6836_s28  }
  0x5c   : > { %p5379_p3 = scmp.ge.s32.totalorder %s6825_s12, 2 }
  0x5d   : > { %p8180_p7 = scmp.ne.s32.totalorder (!%p5379_p3), %s8172_s19, 0 }
  0x5e   : > { %334 = sbr.rel (%p5379_p3) target bundleno = 131 (0x83), region = 48 }
  0x63   : > { %337 = sbr.rel (!%p8180_p7) target bundleno = 131 (0x83), region = 52  ;;  %s338_s29 = sand.u32 (%p8180_p7), 1, %s6821_s11  }
  0x64   : > { %s5381_s24 = sshll.u32 (%p8180_p7), %s6825_s12, 4  ;;  %s5380_s15 = sshll.u32 (%p8180_p7), %s338_s29, 7 }
  0x65   : > { %s344_s14 = ssub.s32 (%p8180_p7), 25, %s5381_s24  ;;  %s7017_s28 = scalar_lea.sflag (%p8180_p7), [#allocation3], %s338_s29 }
  0x66   : > { %p345_p0 = scmp.lt.s32.totalorder (%p8180_p7), %s344_s14, 16  ;;  %s342_s25 = scalar_lea.vmem (%p8180_p7), [#allocation2], %s5380_s15 }
  0x68   : > { %s8274_s14 = smov (!%p345_p0, %s344_s14), 16 }
  0x69   : > { %s7014_s26 = sshll.u32 %s8274_s14, 7 }
  0x6a   : > { %s350_s22 = ssub.s32 2048, %s7014_s26 }
  0x6b   : > { %351 = vsyncadd %s7017_s28, %s350_s22  ;;  %p5384_p2 = scmp.ne.s32.totalorder %s7014_s26, 0  ;;  %s5850_s19 = sshll.u32 %s6825_s12, 11 }
  0x6c   : > { %s7025_s27 = scalar_lea.hbm %s8119_s0, %s5850_s19  ;;  %s357_s18 = sshll.u32 %s342_s25, 4  ;;  %s7027_s18 = int_to_ptr.vmem [resolvable:$true] %s357_s18 }
  0x6d   : > { %s6723_s30 = scalar_lea.hbm %s7025_s27, %s7014_s26  ;;  %s6727_s15 = scalar_lea.hbm %s8119_s0, 3200 }
  0x6e   : > { %p6724_p9 = scmp.ne.s32.totalorder %s7025_s27, %s6723_s30  ;;  %p6728_p11 = scmp.lt.s32.totalorder %s7025_s27, %s8119_s0 }
  0x6f   : > { %p6729_p12 = scmp.lt.s32.totalorder %s6727_s15, %s6723_s30 }
  0x70   : > { %p6725_p4 = pnand %p6724_p9, %p5384_p2 }
  0x71   : > { %p6730_p13 = por %p6729_p12, %p6728_p11 }
  0x72   : > { %p6726_p6 = pneg %p6725_p4 }
  0x74   : > { %p6731_p8 = pnand %p6730_p13, %p6726_p6 }
  0x76   : > { %6734 = shalt.err (!%p6731_p8)
}
  0x77   : > { %s6735_s25 = scalar_lea.vmem %s7027_s18, %s7014_s26  ;;  %s6838_s19 = smov [#allocation2]  }
  0x78   : > { %p6736_p10 = scmp.ne.s32.totalorder %s7027_s18, %s6735_s25  ;;  %s6739_s16 = sshll.u32 %s6838_s19, 4  ;;  %s6740_s16 = int_to_ptr.vmem [resolvable:$false] %s6739_s16 }
  0x79   : > { %s6741_s17 = scalar_lea.vmem %s6740_s16, 4096  ;;  %p6742_p7 = scmp.lt.s32.totalorder %s7027_s18, %s6740_s16 }
  0x7a   : > { %p6737_p5 = pnand %p6736_p10, %p5384_p2  ;;  %p6743_p0 = scmp.lt.s32.totalorder %s6741_s17, %s6735_s25 }
  0x7c   : > { %p6738_p1 = pneg %p6737_p5  ;;  %p6744_p9 = por %p6743_p0, %p6742_p7 }
  0x7e   : > { %p6745_p4 = pnand %p6744_p9, %p6738_p1 }
  0x80   : > { %6748 = shalt.err (!%p6745_p4)
}
  0x81   : > { %s6839_s30 = smov 128   ;;  %s6840_s29 = smov 8  }
  0x82   : > { %363 = dma.hbm_to_vmem [thread:$0]  (%p5384_p2), %s7025_s27, %s7014_s26, %s7027_s18, %s7017_s28, %s6839_s30, %s6839_s30, %s6840_s29  }
  0x83 PF: > { %p8181_p6 = scmp.ne.s32.totalorder %s8177_s23, 0 }
  0x85   : > { %369 = sbr.rel (%p8181_p6) target bundleno = 1320 (0x528), region = 56 }
  0x8a   : > { %s7056_s24 = sand.u32 1, %s6817_s10   ;;  %p8182_p11 = scmp.ne.s32.totalorder %s8173_s20, 0 }
  0x8b   : > { %s5390_s15 = sshll.u32 %s7056_s24, 7  ;;  %s372_s14 = scalar_lea.sflag [#allocation3], %s7056_s24 }
  0x8c   : > { %s7062_s22 = scalar_lea.vmem [#allocation2], %s5390_s15 }
  0x8d   : > { %6792 = dma.done.wait (%p8182_p11), %s372_s14, 2048  }
  0x8e   : > { %6794 = vsyncadd (%p8182_p11), %s372_s14, 4294965248  ;;  %p8183_p2 = scmp.eq.s32.totalorder %s6915_s13, 0 }
  0x90   : > { %6796 = dma.done.wait (%p8183_p2), [#allocation6], 16512   ;;  %p8184_p12 = pmov %p8183_p2 }
  0x91   : > { %p8185_p13 = pmov %p8183_p2 }
  0x92   : > { %6798 = vsyncadd (%p8184_p12), [#allocation6], 4294950784 }
  0x93   : > { %6800 = dma.done.wait (%p8185_p13), [#allocation9], 36864   ;;  %p8186_p8 = pmov %p8183_p2 }
  0x94   : > { %p8187_p10 = pmov %p8183_p2 }
  0x95   : > { %6802 = vsyncadd (%p8186_p8), [#allocation9], 4294930432 }
  0x96   : > { %6804 = dma.done.wait (%p8187_p10), [#allocation12], 1024   ;;  %p8188_p5 = pmov %p8183_p2 }
  0x97   : > { %v514_v0 = vld [vmem:[#allocation5 + $0x1c0] sm:$0xff]  ;;  %v515_v2 = vld [vmem:[#allocation5 + $0x1c8] sm:$0xff]  ;;  %s8039_s25 = scalar_lea.vmem [#allocation13], %s5390_s15  ;;  %s5232_s19 = scalar_lea.sflag [#allocation4], %s7056_s24 }
  0x98   : > { %6806 = vsyncadd (%p8188_p5), [#allocation12], 4294966272  ;;  %v518_v1 = vld [vmem:[#allocation5 + $0x1e0] sm:$0xff]  ;;  %v519_v4 = vld [vmem:[#allocation5 + $0x1e8] sm:$0xff]  ;;  %p8264_p1 = scmp.ne.s32.totalorder %s8174_s21, 0 }
  0x99   : > { %v5470_v3 = vcombine.high %v514_v0, %v518_v1  ;;  %v5469_v5 = vcombine.low %v514_v0, %v518_v1  ;;  %v506_v6 = vld [vmem:[#allocation5 + $0x180] sm:$0xff]  ;;  %v5472_v8 = vcombine.high %v515_v2, %v519_v4  ;;  %v5471_v9 = vcombine.low %v515_v2, %v519_v4  ;;  %v507_v11 = vld [vmem:[#allocation5 + $0x188] sm:$0xff]  ;;  %s5840_s16 = sshll.u32 (%p8264_p1), %s6915_s13, 4 }
  0x9a   : > { %v510_v7 = vld [vmem:[#allocation5 + $0x1a0] sm:$0xff]  ;;  %v511_v12 = vld [vmem:[#allocation5 + $0x1a8] sm:$0xff]  ;;  %s5240_s17 = ssub.s32 (%p8264_p1), 25, %s5840_s16 }
  0x9b   : > { %v5462_v10 = vcombine.high %v506_v6, %v510_v7  ;;  %v498_v13 = vld [vmem:[#allocation5 + $0x140] sm:$0xff]  ;;  %1348 = vmatprep.subr.bf16.mxu0 %v5470_v3  ;;  %v5464_v14 = vcombine.high %v507_v11, %v511_v12  ;;  %v499_v16 = vld [vmem:[#allocation5 + $0x148] sm:$0xff]  ;;  %1461 = vmatprep.subr.bf16.mxu1 %v5472_v8  ;;  %v5461_v18 = vcombine.low %v506_v6, %v510_v7  ;;  %p5241_p7 = scmp.lt.s32.totalorder (%p8264_p1), %s5240_s17, 16 }
  0x9c   : > { %v502_v15 = vld [vmem:[#allocation5 + $0x160] sm:$0xff]  ;;  %v503_v17 = vld [vmem:[#allocation5 + $0x168] sm:$0xff]  ;;  %1349 = vmatpush1.bf16.msra.mxu0 %v5469_v5  ;;  %1462 = vmatpush1.bf16.msra.mxu1 %v5471_v9  ;;  %v5463_v19 = vcombine.low %v507_v11, %v511_v12 }
  0x9d   : > { %1350 = vmatprep.subr.bf16.mxu0 %v5462_v10  ;;  %v5454_v20 = vcombine.high %v498_v13, %v502_v15  ;;  %1463 = vmatprep.subr.bf16.mxu1 %v5464_v14  ;;  %v5456_v21 = vcombine.high %v499_v16, %v503_v17  ;;  %v490_v22 = vld [vmem:[#allocation5 + $0x100] sm:$0xff]  ;;  %v491_v24 = vld [vmem:[#allocation5 + $0x108] sm:$0xff]  ;;  %v5453_v26 = vcombine.low %v498_v13, %v502_v15 }
  0x9e   : > { %v494_v23 = vld [vmem:[#allocation5 + $0x120] sm:$0xff]  ;;  %v495_v25 = vld [vmem:[#allocation5 + $0x128] sm:$0xff]  ;;  %v5455_v27 = vcombine.low %v499_v16, %v503_v17 }
  0x9f   : > { %v5446_v28 = vcombine.high %v490_v22, %v494_v23  ;;  %v5448_v29 = vcombine.high %v491_v24, %v495_v25  ;;  %v482_v30 = vld [vmem:[#allocation5 + $0xc0] sm:$0xff]  ;;  %v483_v32 = vld [vmem:[#allocation5 + $0xc8] sm:$0xff]  ;;  %v5445_v34 = vcombine.low %v490_v22, %v494_v23  ;;  %v5447_v35 = vcombine.low %v491_v24, %v495_v25 }
  0xa0   : > { %1351 = vmatpush1.bf16.msra.mxu0 %v5461_v18  ;;  %1464 = vmatpush1.bf16.msra.mxu1 %v5463_v19  ;;  %v486_v31 = vld [vmem:[#allocation5 + $0xe0] sm:$0xff]  ;;  %v487_v33 = vld [vmem:[#allocation5 + $0xe8] sm:$0xff] }
  0xa1   : > { %1352 = vmatprep.subr.bf16.mxu0 %v5454_v20  ;;  %1465 = vmatprep.subr.bf16.mxu1 %v5456_v21  ;;  %v5438_v36 = vcombine.high %v482_v30, %v486_v31  ;;  %v5440_v37 = vcombine.high %v483_v32, %v487_v33  ;;  %v474_v38 = vld [vmem:[#allocation5 + $0x80] sm:$0xff]  ;;  %v475_v40 = vld [vmem:[#allocation5 + $0x88] sm:$0xff]  ;;  %v5437_v42 = vcombine.low %v482_v30, %v486_v31 }
  0xa2   : > { %v478_v39 = vld [vmem:[#allocation5 + $0xa0] sm:$0xff]  ;;  %v479_v41 = vld [vmem:[#allocation5 + $0xa8] sm:$0xff]  ;;  %v5439_v43 = vcombine.low %v483_v32, %v487_v33 }
  0xa3   : > { %v5430_v44 = vcombine.high %v474_v38, %v478_v39  ;;  %v5432_v45 = vcombine.high %v475_v40, %v479_v41  ;;  %v466_v46 = vld [vmem:[#allocation5 + $0x40] sm:$0xff]  ;;  %v467_v48 = vld [vmem:[#allocation5 + $0x48] sm:$0xff]  ;;  %v5429_v50 = vcombine.low %v474_v38, %v478_v39  ;;  %v5431_v51 = vcombine.low %v475_v40, %v479_v41 }
  0xa4   : > { %1353 = vmatpush1.bf16.msra.mxu0 %v5453_v26  ;;  %1466 = vmatpush1.bf16.msra.mxu1 %v5455_v27  ;;  %v470_v47 = vld [vmem:[#allocation5 + $0x60] sm:$0xff]  ;;  %v471_v49 = vld [vmem:[#allocation5 + $0x68] sm:$0xff] }
  0xa5   : > { %1354 = vmatprep.subr.bf16.mxu0 %v5446_v28  ;;  %1467 = vmatprep.subr.bf16.mxu1 %v5448_v29  ;;  %v5422_v52 = vcombine.high %v466_v46, %v470_v47  ;;  %v5424_v53 = vcombine.high %v467_v48, %v471_v49  ;;  %v458_v54 = vld [vmem:[#allocation5] sm:$0xff]  ;;  %v459_v57 = vld [vmem:[#allocation5 + $0x8] sm:$0xff]  ;;  %v5421_v59 = vcombine.low %v466_v46, %v470_v47 }
  0xa6   : > { %v462_v55 = vld [vmem:[#allocation5 + $0x20] sm:$0xff]  ;;  %v463_v58 = vld [vmem:[#allocation5 + $0x28] sm:$0xff]  ;;  %v5423_v60 = vcombine.low %v467_v48, %v471_v49 }
  0xa7   : > { %v6144_v56 = vld [vmem:[%s7062_s22 + $0x4] ss:$8 sps:$4 sm:$0xff]   ;;  %v5414_v61 = vcombine.high %v458_v54, %v462_v55  ;;  %v5416_v62 = vcombine.high %v459_v57, %v463_v58  ;;  %v5413_v3 = vcombine.low %v458_v54, %v462_v55  ;;  %v5415_v4 = vcombine.low %v459_v57, %v463_v58 }
  0xa8   : > { %1355 = vmatpush1.bf16.msra.mxu0 %v5445_v34  ;;  %1468 = vmatpush1.bf16.msra.mxu1 %v5447_v35  ;;  %v578_v63 = vld [vmem:[#allocation5 + $0x3c0] sm:$0xff]  ;;  %v579_v1 = vld [vmem:[#allocation5 + $0x3c8] sm:$0xff] }
  0xa9   : > { %1356 = vmatprep.subr.bf16.mxu0 %v5438_v36  ;;  %1469 = vmatprep.subr.bf16.mxu1 %v5440_v37  ;;  %v582_v0 = vld [vmem:[#allocation5 + $0x3e0] sm:$0xff]  ;;  %v583_v2 = vld [vmem:[#allocation5 + $0x3e8] sm:$0xff] }
  0xaa   : > { %1380 = vmatprep.mubr.bf16.mxu0 %v6144_v56  ;;  %1493 = vmatprep.mubr.bf16.mxu1 %v6144_v56  ;;  %v5534_v5 = vcombine.high %v578_v63, %v582_v0  ;;  %v5536_v6 = vcombine.high %v579_v1, %v583_v2  ;;  %v570_v7 = vld [vmem:[#allocation5 + $0x380] sm:$0xff]  ;;  %v571_v9 = vld [vmem:[#allocation5 + $0x388] sm:$0xff]  ;;  %v5533_v11 = vcombine.low %v578_v63, %v582_v0  ;;  %v517_v0 = vld [vmem:[#allocation5 + $0x1d8] sm:$0xff] }
  0xab   : > { %v574_v8 = vld [vmem:[#allocation5 + $0x3a0] sm:$0xff]  ;;  %v575_v10 = vld [vmem:[#allocation5 + $0x3a8] sm:$0xff]  ;;  %v5535_v12 = vcombine.low %v579_v1, %v583_v2  ;;  %v521_v1 = vld [vmem:[#allocation5 + $0x1f8] sm:$0xff] }
  0xac   : > { %1357 = vmatpush1.bf16.msra.mxu0 %v5437_v42  ;;  %1470 = vmatpush1.bf16.msra.mxu1 %v5439_v43  ;;  %v5526_v13 = vcombine.high %v570_v7, %v574_v8  ;;  %v5528_v14 = vcombine.high %v571_v9, %v575_v10  ;;  %v562_v15 = vld [vmem:[#allocation5 + $0x340] sm:$0xff]  ;;  %v563_v17 = vld [vmem:[#allocation5 + $0x348] sm:$0xff]  ;;  %v5525_v19 = vcombine.low %v570_v7, %v574_v8  ;;  %v508_v7 = vld [vmem:[#allocation5 + $0x190] sm:$0xff] }
  0xad   : > { %1358 = vmatprep.subr.bf16.mxu0 %v5430_v44  ;;  %1471 = vmatprep.subr.bf16.mxu1 %v5432_v45  ;;  %v566_v16 = vld [vmem:[#allocation5 + $0x360] sm:$0xff]  ;;  %v567_v18 = vld [vmem:[#allocation5 + $0x368] sm:$0xff]  ;;  %v5527_v20 = vcombine.low %v571_v9, %v575_v10  ;;  %v512_v8 = vld [vmem:[#allocation5 + $0x1b0] sm:$0xff] }
  0xae   : > { %v5518_v21 = vcombine.high %v562_v15, %v566_v16  ;;  %v5520_v22 = vcombine.high %v563_v17, %v567_v18  ;;  %v554_v23 = vld [vmem:[#allocation5 + $0x300] sm:$0xff]  ;;  %v555_v25 = vld [vmem:[#allocation5 + $0x308] sm:$0xff]  ;;  %v5517_v27 = vcombine.low %v562_v15, %v566_v16  ;;  %v5519_v28 = vcombine.low %v563_v17, %v567_v18  ;;  %v509_v10 = vld [vmem:[#allocation5 + $0x198] sm:$0xff] }
  0xaf   : > { %v558_v24 = vld [vmem:[#allocation5 + $0x320] sm:$0xff]  ;;  %v559_v26 = vld [vmem:[#allocation5 + $0x328] sm:$0xff]  ;;  %v7085_v15 = vld [vmem:[%s7062_s22 + $0x14] ss:$8 sps:$4 sm:$0xff]  }
  0xb0   : > { %1359 = vmatpush1.bf16.msra.mxu0 %v5429_v50  ;;  %1472 = vmatpush1.bf16.msra.mxu1 %v5431_v51  ;;  %v5510_v29 = vcombine.high %v554_v23, %v558_v24  ;;  %v5512_v30 = vcombine.high %v555_v25, %v559_v26  ;;  %v546_v31 = vld [vmem:[#allocation5 + $0x2c0] sm:$0xff]  ;;  %v547_v33 = vld [vmem:[#allocation5 + $0x2c8] sm:$0xff]  ;;  %v5509_v35 = vcombine.low %v554_v23, %v558_v24  ;;  %v500_v17 = vld [vmem:[#allocation5 + $0x150] sm:$0xff] }
  0xb1   : > { %1360 = vmatprep.subr.bf16.mxu0 %v5422_v52  ;;  %1473 = vmatprep.subr.bf16.mxu1 %v5424_v53  ;;  %v550_v32 = vld [vmem:[#allocation5 + $0x2e0] sm:$0xff]  ;;  %v551_v34 = vld [vmem:[#allocation5 + $0x2e8] sm:$0xff]  ;;  %v5511_v36 = vcombine.low %v555_v25, %v559_v26  ;;  %v504_v18 = vld [vmem:[#allocation5 + $0x170] sm:$0xff] }
  0xb2   : > { %v5502_v37 = vcombine.high %v546_v31, %v550_v32  ;;  %v5504_v38 = vcombine.high %v547_v33, %v551_v34  ;;  %v538_v39 = vld [vmem:[#allocation5 + $0x280] sm:$0xff]  ;;  %v539_v41 = vld [vmem:[#allocation5 + $0x288] sm:$0xff]  ;;  %v5501_v43 = vcombine.low %v546_v31, %v550_v32  ;;  %v5503_v44 = vcombine.low %v547_v33, %v551_v34  ;;  %v7090_v23 = vld [vmem:[%s7062_s22 + $0x10] ss:$8 sps:$4 sm:$0xff]  }
  0xb3   : > { %v542_v40 = vld [vmem:[#allocation5 + $0x2a0] sm:$0xff]  ;;  %v543_v42 = vld [vmem:[#allocation5 + $0x2a8] sm:$0xff]  ;;  %v5458_v24 = vcombine.high %v500_v17, %v504_v18  ;;  %v492_v26 = vld [vmem:[#allocation5 + $0x110] sm:$0xff] }
  0xb4   : > { %1361 = vmatpush1.bf16.msra.mxu0 %v5421_v59  ;;  %1474 = vmatpush1.bf16.msra.mxu1 %v5423_v60  ;;  %v5494_v45 = vcombine.high %v538_v39, %v542_v40  ;;  %v5496_v46 = vcombine.high %v539_v41, %v543_v42  ;;  %v530_v47 = vld [vmem:[#allocation5 + $0x240] sm:$0xff]  ;;  %v531_v49 = vld [vmem:[#allocation5 + $0x248] sm:$0xff]  ;;  %v5493_v51 = vcombine.low %v538_v39, %v542_v40  ;;  %v516_v60 = vld [vmem:[#allocation5 + $0x1d0] sm:$0xff] }
  0xb5   : > { %1362 = vmatprep.subr.bf16.mxu0 %v5414_v61  ;;  %1475 = vmatprep.subr.bf16.mxu1 %v5416_v62  ;;  %v534_v48 = vld [vmem:[#allocation5 + $0x260] sm:$0xff]  ;;  %v535_v50 = vld [vmem:[#allocation5 + $0x268] sm:$0xff]  ;;  %v5495_v54 = vcombine.low %v539_v41, %v543_v42  ;;  %v520_v61 = vld [vmem:[#allocation5 + $0x1f0] sm:$0xff] }
  0xb6   : > { %v522_v52 = vld [vmem:[#allocation5 + $0x200] sm:$0xff]  ;;  %v5486_v55 = vcombine.high %v530_v47, %v534_v48  ;;  %v523_v56 = vld [vmem:[#allocation5 + $0x208] sm:$0xff]  ;;  %v5488_v58 = vcombine.high %v531_v49, %v535_v50  ;;  %v5485_v59 = vcombine.low %v530_v47, %v534_v48  ;;  %v5487_v62 = vcombine.low %v531_v49, %v535_v50  ;;  %v481_v47 = vld [vmem:[#allocation5 + $0xb8] sm:$0xff] }
  0xb7   : > { %v526_v53 = vld [vmem:[#allocation5 + $0x220] sm:$0xff]  ;;  %v527_v57 = vld [vmem:[#allocation5 + $0x228] sm:$0xff] }
  0xb8   : > { %1363 = vmatpush1.bf16.msra.mxu0 %v5413_v3  ;;  %1476 = vmatpush1.bf16.msra.mxu1 %v5415_v4  ;;  %v5478_v63 = vcombine.high %v522_v52, %v526_v53  ;;  %v5480_v2 = vcombine.high %v523_v56, %v527_v57  ;;  %v5477_v3 = vcombine.low %v522_v52, %v526_v53  ;;  %v7082_v9 = vld [vmem:[%s7062_s22] ss:$8 sps:$4 sm:$0xff]   ;;  %v7095_v33 = vld [vmem:[%s7062_s22 + $0x24] ss:$8 sps:$4 sm:$0xff]   ;;  %v468_v53 = vld [vmem:[#allocation5 + $0x50] sm:$0xff] }
  0xb9   : > { %1364 = vmatprep.subr.bf16.mxu0 %v5534_v5  ;;  %1477 = vmatprep.subr.bf16.mxu1 %v5536_v6  ;;  %v5479_v4 = vcombine.low %v523_v56, %v527_v57  ;;  %v5474_v5 = vcombine.high %v516_v60, %v520_v61  ;;  %v5476_v6 = vcombine.high %v517_v0, %v521_v1  ;;  %v7100_v41 = vld [vmem:[%s7062_s22 + $0x20] ss:$8 sps:$4 sm:$0xff]   ;;  %v473_v56 = vld [vmem:[#allocation5 + $0x78] sm:$0xff] }
  0xbc   : > { %1365 = vmatpush2.bf16.msra.mxu0 %v5533_v11  ;;  %1478 = vmatpush2.bf16.msra.mxu1 %v5535_v12  ;;  %v513_v11 = vld [vmem:[#allocation5 + $0x1b8] sm:$0xff]  ;;  %v5473_v12 = vcombine.low %v516_v60, %v520_v61 }
  0xbd   : > { %1366 = vmatprep.subr.bf16.mxu0 %v5526_v13  ;;  %1479 = vmatprep.subr.bf16.mxu1 %v5528_v14  ;;  %v5475_v13 = vcombine.low %v517_v0, %v521_v1  ;;  %v5466_v14 = vcombine.high %v508_v7, %v512_v8  ;;  %v5468_v16 = vcombine.high %v509_v10, %v513_v11  ;;  %v461_v0 = vld [vmem:[#allocation5 + $0x18] sm:$0xff] }
  0xbe   : > { %v465_v1 = vld [vmem:[#allocation5 + $0x38] sm:$0xff] }
  0xc0   : > { %1367 = vmatpush2.bf16.msra.mxu0 %v5525_v19  ;;  %1480 = vmatpush2.bf16.msra.mxu1 %v5527_v20  ;;  %v501_v19 = vld [vmem:[#allocation5 + $0x158] sm:$0xff] }
  0xc1   : > { %1368 = vmatprep.subr.bf16.mxu0 %v5518_v21  ;;  %1481 = vmatprep.subr.bf16.mxu1 %v5520_v22  ;;  %v505_v20 = vld [vmem:[#allocation5 + $0x178] sm:$0xff]  ;;  %v5465_v21 = vcombine.low %v508_v7, %v512_v8  ;;  %v5467_v22 = vcombine.low %v509_v10, %v513_v11  ;;  %v5420_v11 = vcombine.high %v461_v0, %v465_v1 }
  0xc2   : > { %v5460_v25 = vcombine.high %v501_v19, %v505_v20  ;;  %v5459_v31 = vcombine.low %v501_v19, %v505_v20  ;;  %v581_v8 = vld [vmem:[#allocation5 + $0x3d8] sm:$0xff] }
  0xc3   : > { %v585_v10 = vld [vmem:[#allocation5 + $0x3f8] sm:$0xff] }
  0xc4   : > { %1369 = vmatpush2.bf16.msra.mxu0 %v5517_v27  ;;  %1482 = vmatpush2.bf16.msra.mxu1 %v5519_v28  ;;  %v496_v27 = vld [vmem:[#allocation5 + $0x130] sm:$0xff]  ;;  %v493_v28 = vld [vmem:[#allocation5 + $0x118] sm:$0xff] }
  0xc5   : > { %1370 = vmatprep.subr.bf16.mxu0 %v5510_v29  ;;  %1483 = vmatprep.subr.bf16.mxu1 %v5512_v30  ;;  %v497_v29 = vld [vmem:[#allocation5 + $0x138] sm:$0xff]  ;;  %v5457_v30 = vcombine.low %v500_v17, %v504_v18  ;;  %v5450_v32 = vcombine.high %v492_v26, %v496_v27  ;;  %v5449_v39 = vcombine.low %v492_v26, %v496_v27  ;;  %v7120_v17 = vld [vmem:[%s7062_s22 + $0x40] ss:$8 sps:$4 sm:$0xff]   ;;  %v568_v26 = vld [vmem:[#allocation5 + $0x370] sm:$0xff] }
  0xc6   : > { %v5452_v34 = vcombine.high %v493_v28, %v497_v29  ;;  %v5451_v40 = vcombine.low %v493_v28, %v497_v29  ;;  %v573_v19 = vld [vmem:[#allocation5 + $0x398] sm:$0xff]  ;;  %v5539_v27 = vcombine.low %v581_v8, %v585_v10 }
  0xc7   : > { %v577_v20 = vld [vmem:[#allocation5 + $0x3b8] sm:$0xff] }
  0xc8   : > { %1371 = vmatpush2.bf16.msra.mxu0 %v5509_v35  ;;  %1484 = vmatpush2.bf16.msra.mxu1 %v5511_v36  ;;  %v484_v35 = vld [vmem:[#allocation5 + $0xd0] sm:$0xff]  ;;  %v565_v29 = vld [vmem:[#allocation5 + $0x358] sm:$0xff] }
  0xc9   : > { %1372 = vmatprep.subr.bf16.mxu0 %v5502_v37  ;;  %1485 = vmatprep.subr.bf16.mxu1 %v5504_v38  ;;  %v488_v36 = vld [vmem:[#allocation5 + $0xf0] sm:$0xff]  ;;  %v485_v37 = vld [vmem:[#allocation5 + $0xd8] sm:$0xff] }
  0xca   : > { %v489_v38 = vld [vmem:[#allocation5 + $0xf8] sm:$0xff]  ;;  %v5442_v42 = vcombine.high %v484_v35, %v488_v36  ;;  %v5441_v48 = vcombine.low %v484_v35, %v488_v36  ;;  %v560_v35 = vld [vmem:[#allocation5 + $0x330] sm:$0xff]  ;;  %v5531_v36 = vcombine.low %v573_v19, %v577_v20 }
  0xcb   : > { %v5443_v49 = vcombine.low %v485_v37, %v489_v38 }
  0xcc   : > { %1373 = vmatpush2.bf16.msra.mxu0 %v5501_v43  ;;  %1486 = vmatpush2.bf16.msra.mxu1 %v5503_v44  ;;  %v5444_v43 = vcombine.high %v485_v37, %v489_v38  ;;  %v476_v44 = vld [vmem:[#allocation5 + $0x90] sm:$0xff] }
  0xcd   : > { %1374 = vmatprep.subr.bf16.mxu0 %v5494_v45  ;;  %1487 = vmatprep.subr.bf16.mxu1 %v5496_v46  ;;  %v480_v45 = vld [vmem:[#allocation5 + $0xb0] sm:$0xff]  ;;  %v477_v46 = vld [vmem:[#allocation5 + $0x98] sm:$0xff] }
  0xce   : > { %v5434_v50 = vcombine.high %v476_v44, %v480_v45  ;;  %v5436_v52 = vcombine.high %v477_v46, %v481_v47  ;;  %v5433_v57 = vcombine.low %v476_v44, %v480_v45  ;;  %v7130_v37 = vld [vmem:[%s7062_s22 + $0x50] ss:$8 sps:$4 sm:$0xff]   ;;  %v7135_v44 = vld [vmem:[%s7062_s22 + $0x64] ss:$8 sps:$4 sm:$0xff]  }
  0xcf   : > { %v548_v45 = vld [vmem:[#allocation5 + $0x2d0] sm:$0xff] }
  0xd0   : > { %1375 = vmatpush2.bf16.msra.mxu0 %v5493_v51  ;;  %1488 = vmatpush2.bf16.msra.mxu1 %v5495_v54  ;;  %v7105_v51 = vld [vmem:[%s7062_s22 + $0x34] ss:$8 sps:$4 sm:$0xff]  }
  0xd1   : > { %1376 = vmatprep.subr.bf16.mxu0 %v5486_v55  ;;  %1489 = vmatprep.subr.bf16.mxu1 %v5488_v58  ;;  %v472_v54 = vld [vmem:[#allocation5 + $0x70] sm:$0xff]  ;;  %v469_v55 = vld [vmem:[#allocation5 + $0x58] sm:$0xff]  ;;  %v5435_v58 = vcombine.low %v477_v46, %v481_v47 }
  0xd2   : > { %v5426_v60 = vcombine.high %v468_v53, %v472_v54  ;;  %v5428_v61 = vcombine.high %v469_v55, %v473_v56  ;;  %v552_v46 = vld [vmem:[#allocation5 + $0x2f0] sm:$0xff] }
  0xd4   : > { %1377 = vmatpush2.bf16.msra.mxu0 %v5485_v59  ;;  %1490 = vmatpush2.bf16.msra.mxu1 %v5487_v62  ;;  %v7110_v59 = vld [vmem:[%s7062_s22 + $0x30] ss:$8 sps:$4 sm:$0xff]  }
  0xd5   : > { %1378 = vmatprep.subr.bf16.mxu0 %v5478_v63  ;;  %1491 = vmatprep.subr.bf16.mxu1 %v5480_v2  ;;  %v460_v62 = vld [vmem:[#allocation5 + $0x10] sm:$0xff]  ;;  %v5425_v2 = vcombine.low %v468_v53, %v472_v54 }
  0xd6   : > { %v464_v63 = vld [vmem:[#allocation5 + $0x30] sm:$0xff] }
  0xd7   : > { %v5418_v7 = vcombine.high %v460_v62, %v464_v63  ;;  %v540_v54 = vld [vmem:[#allocation5 + $0x290] sm:$0xff] }
  0xd8   : > { %1379 = vmatpush2.bf16.msra.mxu0 %v5477_v3  ;;  %1492 = vmatpush2.bf16.msra.mxu1 %v5479_v4  ;;  %v7115_v3 = vld [vmem:[%s7062_s22 + $0x44] ss:$8 sps:$4 sm:$0xff]   ;;  %v580_v4 = vld [vmem:[#allocation5 + $0x3d0] sm:$0xff] }
  0xd9   : > { %1574 = vmatprep.subr.bf16.mxu0 %v5474_v5  ;;  %1687 = vmatprep.subr.bf16.mxu1 %v5476_v6  ;;  %v584_v5 = vld [vmem:[#allocation5 + $0x3f0] sm:$0xff]  ;;  %v5427_v6 = vcombine.low %v469_v55, %v473_v56 }
  0xda   : > { %v5538_v18 = vcombine.high %v580_v4, %v584_v5  ;;  %v544_v55 = vld [vmem:[#allocation5 + $0x2b0] sm:$0xff] }
  0xdb   : > { %1381 = vmatmul.mubr.bf16.vlgmr.msra.gmra.mxu0 %v7082_v9  ;;  %1494 = vmatmul.mubr.bf16.vlgmr.msra.gmra.mxu1 %v7082_v9 }
  0xdc   : > { %1575 = vmatpush1.bf16.msra.mxu0 %v5473_v12  ;;  %1688 = vmatpush1.bf16.msra.mxu1 %v5475_v13  ;;  %v5417_v12 = vcombine.low %v460_v62, %v464_v63  ;;  %v572_v13 = vld [vmem:[#allocation5 + $0x390] sm:$0xff]  ;;  %v5505_v63 = vcombine.low %v548_v45, %v552_v46 }
  0xdd   : > { %1576 = vmatprep.subr.bf16.mxu0 %v5466_v14  ;;  %1689 = vmatprep.subr.bf16.mxu1 %v5468_v16  ;;  %v576_v14 = vld [vmem:[#allocation5 + $0x3b0] sm:$0xff]  ;;  %v5419_v16 = vcombine.low %v461_v0, %v465_v1 }
  0xde   : > { %1390 = vmatprep.mubr.bf16.mxu0 %v7085_v15  ;;  %1503 = vmatprep.mubr.bf16.mxu1 %v7085_v15  ;;  %v5530_v28 = vcombine.high %v572_v13, %v576_v14  ;;  %v7145_v0 = vld [vmem:[%s7062_s22 + $0x74] ss:$8 sps:$4 sm:$0xff]  }
  0xdf   : > { %v532_v1 = vld [vmem:[#allocation5 + $0x250] sm:$0xff] }
  0xe0   : > { %1577 = vmatpush1.bf16.msra.mxu0 %v5465_v21  ;;  %1690 = vmatpush1.bf16.msra.mxu1 %v5467_v22  ;;  %v5540_v21 = vcombine.high %v581_v8, %v585_v10  ;;  %v5537_v22 = vcombine.low %v580_v4, %v584_v5  ;;  %v5498_v5 = vcombine.high %v540_v54, %v544_v55 }
  0xe1   : > { %1578 = vmatprep.subr.bf16.mxu0 %v5458_v24  ;;  %1691 = vmatprep.subr.bf16.mxu1 %v5460_v25  ;;  %v7125_v24 = vld [vmem:[%s7062_s22 + $0x54] ss:$8 sps:$4 sm:$0xff]   ;;  %v5497_v10 = vcombine.low %v540_v54, %v544_v55 }
  0xe2   : > { %v564_v25 = vld [vmem:[#allocation5 + $0x350] sm:$0xff]  ;;  %v6203_v54 = vld [vmem:[#allocation8 + $0x244] ss:$16 sps:$4 sm:$0xff]  }
  0xe3   : > { %1391 = vmatmul.mubr.bf16.gmra.mxu0 %v7090_v23  ;;  %1504 = vmatmul.mubr.bf16.gmra.mxu1 %v7090_v23  ;;  %v5522_v38 = vcombine.high %v564_v25, %v568_v26  ;;  %v6206_v55 = vld [vmem:[#allocation8 + $0x24] ss:$16 sps:$4 sm:$0xff]  }
  0xe4   : > { %1579 = vmatpush1.bf16.msra.mxu0 %v5457_v30  ;;  %1692 = vmatpush1.bf16.msra.mxu1 %v5459_v31  ;;  %v569_v30 = vld [vmem:[#allocation5 + $0x378] sm:$0xff]  ;;  %v5532_v31 = vcombine.high %v573_v19, %v577_v20 }
  0xe5   : > { %1580 = vmatprep.subr.bf16.mxu0 %v5450_v32  ;;  %1693 = vmatprep.subr.bf16.mxu1 %v5452_v34  ;;  %v5529_v32 = vcombine.low %v572_v13, %v576_v14  ;;  %v556_v34 = vld [vmem:[#allocation5 + $0x310] sm:$0xff]  ;;  %v5523_v47 = vcombine.low %v565_v29, %v569_v30  ;;  %v529_v19 = vld [vmem:[#allocation5 + $0x238] sm:$0xff] }
  0xe6   : > { %1400 = vmatprep.mubr.bf16.mxu0 %v7095_v33  ;;  %1513 = vmatprep.mubr.bf16.mxu1 %v7095_v33  ;;  %v5513_v53 = vcombine.low %v556_v34, %v560_v35  ;;  %v7150_v14 = vld [vmem:[%s7062_s22 + $0x70] ss:$8 sps:$4 sm:$0xff]  }
  0xe8   : > { %1581 = vmatpush1.bf16.msra.mxu0 %v5449_v39  ;;  %1694 = vmatpush1.bf16.msra.mxu1 %v5451_v40  ;;  %v557_v39 = vld [vmem:[#allocation5 + $0x318] sm:$0xff] }
  0xe9   : > { %1582 = vmatprep.subr.bf16.mxu0 %v5442_v42  ;;  %1695 = vmatprep.subr.bf16.mxu1 %v5444_v43  ;;  %v561_v40 = vld [vmem:[#allocation5 + $0x338] sm:$0xff]  ;;  %v5524_v42 = vcombine.high %v565_v29, %v569_v30  ;;  %v5521_v43 = vcombine.low %v564_v25, %v568_v26 }
  0xea   : > { %v5515_v56 = vcombine.low %v557_v39, %v561_v40  ;;  %v6173_v29 = vld [vmem:[#allocation8 + $0x2e4] ss:$16 sps:$4 sm:$0xff]  }
  0xeb   : > { %1401 = vmatmul.mubr.bf16.gmra.mxu0 %v7100_v41  ;;  %1514 = vmatmul.mubr.bf16.gmra.mxu1 %v7100_v41 }
  0xec   : > { %1583 = vmatpush1.bf16.msra.mxu0 %v5441_v48  ;;  %1696 = vmatpush1.bf16.msra.mxu1 %v5443_v49  ;;  %v5514_v48 = vcombine.high %v556_v34, %v560_v35  ;;  %v549_v49 = vld [vmem:[#allocation5 + $0x2d8] sm:$0xff] }
  0xed   : > { %1584 = vmatprep.subr.bf16.mxu0 %v5434_v50  ;;  %1697 = vmatprep.subr.bf16.mxu1 %v5436_v52  ;;  %v553_v50 = vld [vmem:[#allocation5 + $0x2f8] sm:$0xff]  ;;  %v5516_v52 = vcombine.high %v557_v39, %v561_v40 }
  0xee   : > { %1410 = vmatprep.mubr.bf16.mxu0 %v7105_v51  ;;  %1523 = vmatprep.mubr.bf16.mxu1 %v7105_v51  ;;  %v5508_v62 = vcombine.high %v549_v49, %v553_v50  ;;  %v5507_v4 = vcombine.low %v549_v49, %v553_v50  ;;  %v6171_v34 = vld [vmem:[#allocation8 + $0x2e0] ss:$16 sps:$4 sm:$0xff]   ;;  %v6176_v35 = vld [vmem:[#allocation8 + $0xc4] ss:$16 sps:$4 sm:$0xff]  }
  0xef   : > { %v6177_v39 = vld [vmem:[#allocation8 + $0x2c0] ss:$16 sps:$4 sm:$0xff]   ;;  %v6182_v40 = vld [vmem:[#allocation8 + $0xa4] ss:$16 sps:$4 sm:$0xff]  }
  0xf0   : > { %1585 = vmatpush1.bf16.msra.mxu0 %v5433_v57  ;;  %1698 = vmatpush1.bf16.msra.mxu1 %v5435_v58  ;;  %v7140_v57 = vld [vmem:[%s7062_s22 + $0x60] ss:$8 sps:$4 sm:$0xff]   ;;  %v5506_v58 = vcombine.high %v548_v45, %v552_v46  ;;  %v6188_v46 = vld [vmem:[#allocation8 + $0x84] ss:$16 sps:$4 sm:$0xff]  }
  0xf1   : > { %1586 = vmatprep.subr.bf16.mxu0 %v5426_v60  ;;  %1699 = vmatprep.subr.bf16.mxu1 %v5428_v61  ;;  %v541_v60 = vld [vmem:[#allocation5 + $0x298] sm:$0xff] }
  0xf2   : > { %v545_v61 = vld [vmem:[#allocation5 + $0x2b8] sm:$0xff] }
  0xf3   : > { %1411 = vmatmul.mubr.bf16.gmra.mxu0 %v7110_v59  ;;  %1524 = vmatmul.mubr.bf16.gmra.mxu1 %v7110_v59  ;;  %v5500_v8 = vcombine.high %v541_v60, %v545_v61  ;;  %v5499_v13 = vcombine.low %v541_v60, %v545_v61  ;;  %v6183_v45 = vld [vmem:[#allocation8 + $0x2a0] ss:$16 sps:$4 sm:$0xff]   ;;  %v6197_v49 = vld [vmem:[#allocation8 + $0x264] ss:$16 sps:$4 sm:$0xff]  }
  0xf4   : > { %1587 = vmatpush1.bf16.msra.mxu0 %v5425_v2  ;;  %1700 = vmatpush1.bf16.msra.mxu1 %v5427_v6  ;;  %v536_v2 = vld [vmem:[#allocation5 + $0x270] sm:$0xff]  ;;  %v533_v6 = vld [vmem:[#allocation5 + $0x258] sm:$0xff] }
  0xf5   : > { %1588 = vmatprep.subr.bf16.mxu0 %v5418_v7  ;;  %1701 = vmatprep.subr.bf16.mxu1 %v5420_v11  ;;  %v537_v7 = vld [vmem:[#allocation5 + $0x278] sm:$0xff]  ;;  %v524_v11 = vld [vmem:[#allocation5 + $0x210] sm:$0xff] }
  0xf6   : > { %1420 = vmatprep.mubr.bf16.mxu0 %v7115_v3  ;;  %1533 = vmatprep.mubr.bf16.mxu1 %v7115_v3  ;;  %v5492_v20 = vcombine.high %v533_v6, %v537_v7  ;;  %v6192_v50 = vld [vmem:[#allocation8 + $0x60] ss:$16 sps:$4 sm:$0xff]   ;;  %v6212_v61 = vld [vmem:[#allocation8 + $0x4] ss:$16 sps:$4 sm:$0xff]  }
  0xf7   : > { %v6207_v60 = vld [vmem:[#allocation8 + $0x220] ss:$16 sps:$4 sm:$0xff]  }
  0xf8   : > { %1589 = vmatpush1.bf16.msra.mxu0 %v5417_v12  ;;  %1702 = vmatpush1.bf16.msra.mxu1 %v5419_v16  ;;  %v528_v12 = vld [vmem:[#allocation5 + $0x230] sm:$0xff]  ;;  %v5490_v16 = vcombine.high %v532_v1, %v536_v2 }
  0xf9   : > { %1590 = vmatprep.subr.bf16.mxu0 %v5538_v18  ;;  %1703 = vmatprep.subr.bf16.mxu1 %v5540_v21  ;;  %v525_v18 = vld [vmem:[#allocation5 + $0x218] sm:$0xff]  ;;  %v5489_v21 = vcombine.low %v532_v1, %v536_v2  ;;  %v5482_v25 = vcombine.high %v524_v11, %v528_v12 }
  0xfa   : > { %v5484_v26 = vcombine.high %v525_v18, %v529_v19  ;;  %v5483_v30 = vcombine.low %v525_v18, %v529_v19  ;;  %v6221_v1 = vld [vmem:[#allocation8 + $0x3e4] ss:$16 sps:$4 sm:$0xff]   ;;  %v6216_v2 = vld [vmem:[#allocation8 + $0x1e0] ss:$16 sps:$4 sm:$0xff]  }
  0xfb   : > { %1421 = vmatmul.mubr.bf16.gmra.mxu0 %v7120_v17  ;;  %1534 = vmatmul.mubr.bf16.gmra.mxu1 %v7120_v17  ;;  %v6245_v18 = vld [vmem:[#allocation8 + $0x364] ss:$16 sps:$4 sm:$0xff]   ;;  %v6240_v19 = vld [vmem:[#allocation8 + $0x160] ss:$16 sps:$4 sm:$0xff]  }
  0xfc   : > { %1591 = vmatpush2.bf16.msra.mxu0 %v5537_v22  ;;  %1704 = vmatpush2.bf16.msra.mxu1 %v5539_v27  ;;  %v5491_v22 = vcombine.low %v533_v6, %v537_v7  ;;  %v6170_v27 = vld [vmem:[#allocation8 + $0xe4] ss:$16 sps:$4 sm:$0xff]  }
  0xfd   : > { %1592 = vmatprep.subr.bf16.mxu0 %v5530_v28  ;;  %1705 = vmatprep.subr.bf16.mxu1 %v5532_v31  ;;  %v5481_v28 = vcombine.low %v524_v11, %v528_v12  ;;  %v6592_v31 = vld [vmem:[%s7062_s22 + $0x4] ss:$8 sps:$4 sm:$0xff]   ;;  %v6231_v11 = vld [vmem:[#allocation8 + $0x3a0] ss:$16 sps:$4 sm:$0xff]  }
  0xfe   : > { %1430 = vmatprep.mubr.bf16.mxu0 %v7125_v24  ;;  %1543 = vmatprep.mubr.bf16.mxu1 %v7125_v24  ;;  %v6227_v6 = vld [vmem:[#allocation8 + $0x3c4] ss:$16 sps:$4 sm:$0xff]  }
  0xff   : > { %v6230_v7 = vld [vmem:[#allocation8 + $0x1a4] ss:$16 sps:$4 sm:$0xff]  }
 0x100   : > { %1593 = vmatpush2.bf16.msra.mxu0 %v5529_v32  ;;  %1706 = vmatpush2.bf16.msra.mxu1 %v5531_v36  ;;  %v6168_v32 = vld [vmem:[#allocation8 + $0xe0] ss:$16 sps:$4 sm:$0xff]   ;;  %v6179_v36 = vld [vmem:[#allocation8 + $0x2c4] ss:$16 sps:$4 sm:$0xff]  }
 0x101   : > { %1594 = vmatprep.subr.bf16.mxu0 %v5522_v38  ;;  %1707 = vmatprep.subr.bf16.mxu1 %v5524_v42  ;;  %v6174_v38 = vld [vmem:[#allocation8 + $0xc0] ss:$16 sps:$4 sm:$0xff]   ;;  %v6185_v42 = vld [vmem:[#allocation8 + $0x2a4] ss:$16 sps:$4 sm:$0xff]  }
 0x102   : > { %v6236_v12 = vld [vmem:[#allocation8 + $0x184] ss:$16 sps:$4 sm:$0xff]  }
 0x103   : > { %1431 = vmatmul.mubr.bf16.gmra.mxu0 %v7130_v37  ;;  %1544 = vmatmul.mubr.bf16.gmra.mxu1 %v7130_v37 }
 0x104   : > { %1595 = vmatpush2.bf16.msra.mxu0 %v5521_v43  ;;  %1708 = vmatpush2.bf16.msra.mxu1 %v5523_v47  ;;  %v6180_v43 = vld [vmem:[#allocation8 + $0xa0] ss:$16 sps:$4 sm:$0xff]   ;;  %v6191_v47 = vld [vmem:[#allocation8 + $0x284] ss:$16 sps:$4 sm:$0xff]  }
 0x105   : > { %1596 = vmatprep.subr.bf16.mxu0 %v5514_v48  ;;  %1709 = vmatprep.subr.bf16.mxu1 %v5516_v52  ;;  %v6194_v48 = vld [vmem:[#allocation8 + $0x64] ss:$16 sps:$4 sm:$0xff]   ;;  %v6195_v52 = vld [vmem:[#allocation8 + $0x260] ss:$16 sps:$4 sm:$0xff]  }
 0x106   : > { %1440 = vmatprep.mubr.bf16.mxu0 %v7135_v44  ;;  %1553 = vmatprep.mubr.bf16.mxu1 %v7135_v44 }
 0x108   : > { %1597 = vmatpush2.bf16.msra.mxu0 %v5513_v53  ;;  %1710 = vmatpush2.bf16.msra.mxu1 %v5515_v56  ;;  %v6200_v53 = vld [vmem:[#allocation8 + $0x44] ss:$16 sps:$4 sm:$0xff]  }
 0x109   : > { %1598 = vmatprep.subr.bf16.mxu0 %v5506_v58  ;;  %1711 = vmatprep.subr.bf16.mxu1 %v5508_v62  ;;  %v6209_v56 = vld [vmem:[#allocation8 + $0x224] ss:$16 sps:$4 sm:$0xff]   ;;  %v6204_v58 = vld [vmem:[#allocation8 + $0x20] ss:$16 sps:$4 sm:$0xff]  }
 0x10a   : > { %v6215_v62 = vld [vmem:[#allocation8 + $0x204] ss:$16 sps:$4 sm:$0xff]  }
 0x10b   : > { %1441 = vmatmul.mubr.bf16.gmra.mxu0 %v7140_v57  ;;  %1554 = vmatmul.mubr.bf16.gmra.mxu1 %v7140_v57 }
 0x10c   : > { %1599 = vmatpush2.bf16.msra.mxu0 %v5505_v63  ;;  %1712 = vmatpush2.bf16.msra.mxu1 %v5507_v4  ;;  %v6218_v63 = vld [vmem:[#allocation8 + $0x1e4] ss:$16 sps:$4 sm:$0xff]   ;;  %v6219_v4 = vld [vmem:[#allocation8 + $0x3e0] ss:$16 sps:$4 sm:$0xff]  }
 0x10d   : > { %1600 = vmatprep.subr.bf16.mxu0 %v5498_v5  ;;  %1713 = vmatprep.subr.bf16.mxu1 %v5500_v8  ;;  %v6224_v5 = vld [vmem:[#allocation8 + $0x1c4] ss:$16 sps:$4 sm:$0xff]  }
 0x10e   : > { %1450 = vmatprep.mubr.bf16.mxu0 %v7145_v0  ;;  %1563 = vmatprep.mubr.bf16.mxu1 %v7145_v0  ;;  %v6233_v8 = vld [vmem:[#allocation8 + $0x3a4] ss:$16 sps:$4 sm:$0xff]  }
 0x110   : > { %1601 = vmatpush2.bf16.msra.mxu0 %v5497_v10  ;;  %1714 = vmatpush2.bf16.msra.mxu1 %v5499_v13  ;;  %v6228_v10 = vld [vmem:[#allocation8 + $0x1a0] ss:$16 sps:$4 sm:$0xff]   ;;  %v6239_v13 = vld [vmem:[#allocation8 + $0x384] ss:$16 sps:$4 sm:$0xff]  }
 0x111   : > { %1602 = vmatprep.subr.bf16.mxu0 %v5490_v16  ;;  %1715 = vmatprep.subr.bf16.mxu1 %v5492_v20  ;;  %v6242_v16 = vld [vmem:[#allocation8 + $0x164] ss:$16 sps:$4 sm:$0xff]   ;;  %v6243_v20 = vld [vmem:[#allocation8 + $0x360] ss:$16 sps:$4 sm:$0xff]  }
 0x113   : > { %1451 = vmatmul.mubr.bf16.gmra.mxu0 %v7150_v14  ;;  %1564 = vmatmul.mubr.bf16.gmra.mxu1 %v7150_v14 }
 0x114   : > { %1603 = vmatpush2.bf16.msra.mxu0 %v5489_v21  ;;  %1716 = vmatpush2.bf16.msra.mxu1 %v5491_v22  ;;  %v6248_v21 = vld [vmem:[#allocation8 + $0x144] ss:$16 sps:$4 sm:$0xff]  }
 0x115   : > { %1604 = vmatprep.subr.bf16.mxu0 %v5482_v25  ;;  %1717 = vmatprep.subr.bf16.mxu1 %v5484_v26  ;;  %v6251_v22 = vld [vmem:[#allocation8 + $0x344] ss:$16 sps:$4 sm:$0xff]  }
 0x116   : > { %1606 = vmatprep.mubr.bf16.mxu0 %v6592_v31  ;;  %1719 = vmatprep.mubr.bf16.mxu1 %v6592_v31  ;;  %v6254_v25 = vld [vmem:[#allocation8 + $0x124] ss:$16 sps:$4 sm:$0xff]  }
 0x117   : > { %v6257_v26 = vld [vmem:[#allocation8 + $0x324] ss:$16 sps:$4 sm:$0xff]  }
 0x118   : > { %1605 = vmatpush2.bf16.msra.mxu0 %v5481_v28  ;;  %1718 = vmatpush2.bf16.msra.mxu1 %v5483_v30  ;;  %v6255_v28 = vld [vmem:[#allocation8 + $0x320] ss:$16 sps:$4 sm:$0xff]   ;;  %v6263_v30 = vld [vmem:[#allocation8 + $0x304] ss:$16 sps:$4 sm:$0xff]  }
 0x119   : > { %3550 = vmatprep.subr.bf16.mxu0 %v6170_v27  ;;  %3663 = vmatprep.subr.bf16.mxu1 %v6173_v29  ;;  %v6252_v27 = vld [vmem:[#allocation8 + $0x120] ss:$16 sps:$4 sm:$0xff]   ;;  %v6260_v29 = vld [vmem:[#allocation8 + $0x104] ss:$16 sps:$4 sm:$0xff]  }
 0x11a   : > { %v6266_v31 = vld [vmem:[#allocation8 + $0x4e4] ss:$16 sps:$4 sm:$0xff]  }
 0x11b   : > { %1607 = vmatmul.mubr.bf16.vlgmr.msra.gmra.mxu0 %v7082_v9  ;;  %1720 = vmatmul.mubr.bf16.vlgmr.msra.gmra.mxu1 %v7082_v9  ;;  %v6186_v9 = vld [vmem:[#allocation8 + $0x80] ss:$16 sps:$4 sm:$0xff]  }
 0x11c   : > { %1616 = vmatprep.mubr.bf16.mxu0 %v7085_v15  ;;  %1729 = vmatprep.mubr.bf16.mxu1 %v7085_v15  ;;  %v6189_v15 = vld [vmem:[#allocation8 + $0x280] ss:$16 sps:$4 sm:$0xff]  }
 0x11d   : > { %3551 = vmatpush1.bf16.msra.mxu0 %v6168_v32  ;;  %3664 = vmatpush1.bf16.msra.mxu1 %v6171_v34  ;;  %v6269_v32 = vld [vmem:[#allocation8 + $0x6e4] ss:$16 sps:$4 sm:$0xff]   ;;  %v588_v34 = vlaneseq }
 0x11e   : > { %3552 = vmatprep.subr.bf16.mxu0 %v6176_v35  ;;  %3665 = vmatprep.subr.bf16.mxu1 %v6179_v36 }
 0x11f   : > { %v7187_v35 = vshrl.u32 %v588_v34, 7 }
 0x121   : > { %3553 = vmatpush1.bf16.msra.mxu0 %v6174_v38  ;;  %3666 = vmatpush1.bf16.msra.mxu1 %v6177_v39  ;;  %8189 = vst [vmem:[#allocation23_spill] sm:$0xff] %v7187_v35  ;;  %v8138_v36 = vsub.s32 1, %v7187_v35  ;;  %v8139_v38 = vsub.s32 0, %v7187_v35  ;;  %v7192_v39 = vld [vmem:[#allocation7] sm:$0xff] }
 0x122   : > { %3554 = vmatprep.subr.bf16.mxu0 %v6182_v40  ;;  %3667 = vmatprep.subr.bf16.mxu1 %v6185_v42  ;;  %v8137_v40 = vsub.s32 2, %v7187_v35 }
 0x123   : > { %1617 = vmatmul.mubr.bf16.gmra.mxu0 %v7090_v23  ;;  %1730 = vmatmul.mubr.bf16.gmra.mxu1 %v7090_v23  ;;  %v6198_v23 = vld [vmem:[#allocation8 + $0x40] ss:$16 sps:$4 sm:$0xff]  }
 0x124   : > { %1626 = vmatprep.mubr.bf16.mxu0 %v7095_v33  ;;  %1739 = vmatprep.mubr.bf16.mxu1 %v7095_v33  ;;  %v6201_v33 = vld [vmem:[#allocation8 + $0x240] ss:$16 sps:$4 sm:$0xff]  }
 0x125   : > { %3555 = vmatpush1.bf16.msra.mxu0 %v6180_v43  ;;  %3668 = vmatpush1.bf16.msra.mxu1 %v6183_v45  ;;  %v7198_v45 = vrot.slane %v7192_v39, %v8138_v36 }
 0x126   : > { %3556 = vmatprep.subr.bf16.mxu0 %v6188_v46  ;;  %3669 = vmatprep.subr.bf16.mxu1 %v6191_v47  ;;  %v7203_v46 = vrot.slane %v7192_v39, %v8139_v38 }
 0x129   : > { %3557 = vmatpush1.bf16.msra.mxu0 %v6186_v9  ;;  %3670 = vmatpush1.bf16.msra.mxu1 %v6189_v15  ;;  %v7213_v15 = vrot.slane %v7192_v39, %v8137_v40 }
 0x12a   : > { %3558 = vmatprep.subr.bf16.mxu0 %v6194_v48  ;;  %3671 = vmatprep.subr.bf16.mxu1 %v6197_v49 }
 0x12b   : > { %1627 = vmatmul.mubr.bf16.gmra.mxu0 %v7100_v41  ;;  %1740 = vmatmul.mubr.bf16.gmra.mxu1 %v7100_v41  ;;  %v6210_v41 = vld [vmem:[#allocation8] ss:$16 sps:$4 sm:$0xff]  }
 0x12c   : > { %1636 = vmatprep.mubr.bf16.mxu0 %v7105_v51  ;;  %1749 = vmatprep.mubr.bf16.mxu1 %v7105_v51  ;;  %v6213_v51 = vld [vmem:[#allocation8 + $0x200] ss:$16 sps:$4 sm:$0xff]  }
 0x12d   : > { %3559 = vmatpush1.bf16.msra.mxu0 %v6192_v50  ;;  %3672 = vmatpush1.bf16.msra.mxu1 %v6195_v52 }
 0x12e   : > { %3560 = vmatprep.subr.bf16.mxu0 %v6200_v53  ;;  %3673 = vmatprep.subr.bf16.mxu1 %v6203_v54 }
 0x131   : > { %3561 = vmatpush1.bf16.msra.mxu0 %v6198_v23  ;;  %3674 = vmatpush1.bf16.msra.mxu1 %v6201_v33 }
 0x132   : > { %3562 = vmatprep.subr.bf16.mxu0 %v6206_v55  ;;  %3675 = vmatprep.subr.bf16.mxu1 %v6209_v56 }
 0x133   : > { %1637 = vmatmul.mubr.bf16.gmra.mxu0 %v7110_v59  ;;  %1750 = vmatmul.mubr.bf16.gmra.mxu1 %v7110_v59  ;;  %v6222_v59 = vld [vmem:[#allocation8 + $0x1c0] ss:$16 sps:$4 sm:$0xff]  }
 0x134   : > { %1646 = vmatprep.mubr.bf16.mxu0 %v7115_v3  ;;  %1759 = vmatprep.mubr.bf16.mxu1 %v7115_v3  ;;  %v6225_v3 = vld [vmem:[#allocation8 + $0x3c0] ss:$16 sps:$4 sm:$0xff]  }
 0x135   : > { %3563 = vmatpush1.bf16.msra.mxu0 %v6204_v58  ;;  %3676 = vmatpush1.bf16.msra.mxu1 %v6207_v60 }
 0x136   : > { %3564 = vmatprep.subr.bf16.mxu0 %v6212_v61  ;;  %3677 = vmatprep.subr.bf16.mxu1 %v6215_v62 }
 0x139   : > { %3565 = vmatpush1.bf16.msra.mxu0 %v6210_v41  ;;  %3678 = vmatpush1.bf16.msra.mxu1 %v6213_v51 }
 0x13a   : > { %3566 = vmatprep.subr.bf16.mxu0 %v6218_v63  ;;  %3679 = vmatprep.subr.bf16.mxu1 %v6221_v1 }
 0x13b   : > { %1647 = vmatmul.mubr.bf16.gmra.mxu0 %v7120_v17  ;;  %1760 = vmatmul.mubr.bf16.gmra.mxu1 %v7120_v17  ;;  %v6234_v17 = vld [vmem:[#allocation8 + $0x180] ss:$16 sps:$4 sm:$0xff]  }
 0x13c   : > { %1656 = vmatprep.mubr.bf16.mxu0 %v7125_v24  ;;  %1769 = vmatprep.mubr.bf16.mxu1 %v7125_v24  ;;  %v6237_v24 = vld [vmem:[#allocation8 + $0x380] ss:$16 sps:$4 sm:$0xff]  }
 0x13d   : > { %3567 = vmatpush2.bf16.msra.mxu0 %v6216_v2  ;;  %3680 = vmatpush2.bf16.msra.mxu1 %v6219_v4 }
 0x13e   : > { %3568 = vmatprep.subr.bf16.mxu0 %v6224_v5  ;;  %3681 = vmatprep.subr.bf16.mxu1 %v6227_v6 }
 0x141   : > { %3569 = vmatpush2.bf16.msra.mxu0 %v6222_v59  ;;  %3682 = vmatpush2.bf16.msra.mxu1 %v6225_v3 }
 0x142   : > { %3570 = vmatprep.subr.bf16.mxu0 %v6230_v7  ;;  %3683 = vmatprep.subr.bf16.mxu1 %v6233_v8 }
 0x143   : > { %1657 = vmatmul.mubr.bf16.gmra.mxu0 %v7130_v37  ;;  %1770 = vmatmul.mubr.bf16.gmra.mxu1 %v7130_v37  ;;  %v6246_v37 = vld [vmem:[#allocation8 + $0x140] ss:$16 sps:$4 sm:$0xff]  }
 0x144   : > { %1666 = vmatprep.mubr.bf16.mxu0 %v7135_v44  ;;  %1779 = vmatprep.mubr.bf16.mxu1 %v7135_v44  ;;  %v6249_v44 = vld [vmem:[#allocation8 + $0x340] ss:$16 sps:$4 sm:$0xff]  }
 0x145   : > { %3571 = vmatpush2.bf16.msra.mxu0 %v6228_v10  ;;  %3684 = vmatpush2.bf16.msra.mxu1 %v6231_v11  ;;  %v6264_v10 = vld [vmem:[#allocation8 + $0x4e0] ss:$16 sps:$4 sm:$0xff]  }
 0x146   : > { %3572 = vmatprep.subr.bf16.mxu0 %v6236_v12  ;;  %3685 = vmatprep.subr.bf16.mxu1 %v6239_v13 }
 0x149   : > { %3573 = vmatpush2.bf16.msra.mxu0 %v6234_v17  ;;  %3686 = vmatpush2.bf16.msra.mxu1 %v6237_v24  ;;  %v6267_v17 = vld [vmem:[#allocation8 + $0x6e0] ss:$16 sps:$4 sm:$0xff]   ;;  %v6272_v24 = vld [vmem:[#allocation8 + $0x4c4] ss:$16 sps:$4 sm:$0xff]  }
 0x14a   : > { %3574 = vmatprep.subr.bf16.mxu0 %v6242_v16  ;;  %3687 = vmatprep.subr.bf16.mxu1 %v6245_v18 }
 0x14b   : > { %1667 = vmatmul.mubr.bf16.gmra.mxu0 %v7140_v57  ;;  %1780 = vmatmul.mubr.bf16.gmra.mxu1 %v7140_v57  ;;  %v6258_v57 = vld [vmem:[#allocation8 + $0x100] ss:$16 sps:$4 sm:$0xff]  }
 0x14c   : > { %1676 = vmatprep.mubr.bf16.mxu0 %v7145_v0  ;;  %1789 = vmatprep.mubr.bf16.mxu1 %v7145_v0  ;;  %v6261_v0 = vld [vmem:[#allocation8 + $0x300] ss:$16 sps:$4 sm:$0xff]  }
 0x14d   : > { %3575 = vmatpush2.bf16.msra.mxu0 %v6240_v19  ;;  %3688 = vmatpush2.bf16.msra.mxu1 %v6243_v20 }
 0x14e   : > { %3576 = vmatprep.subr.bf16.mxu0 %v6248_v21  ;;  %3689 = vmatprep.subr.bf16.mxu1 %v6251_v22  ;;  %v6275_v21 = vld [vmem:[#allocation8 + $0x6c4] ss:$16 sps:$4 sm:$0xff]  }
 0x151   : > { %3577 = vmatpush2.bf16.msra.mxu0 %v6246_v37  ;;  %3690 = vmatpush2.bf16.msra.mxu1 %v6249_v44 }
 0x152   : > { %3578 = vmatprep.subr.bf16.mxu0 %v6254_v25  ;;  %3691 = vmatprep.subr.bf16.mxu1 %v6257_v26 }
 0x153   : > { %1677 = vmatmul.mubr.bf16.gmra.mxu0 %v7150_v14  ;;  %1790 = vmatmul.mubr.bf16.gmra.mxu1 %v7150_v14  ;;  %v8136_v14 = vsub.s32 3, %v7187_v35 }
 0x155   : > { %3579 = vmatpush2.bf16.msra.mxu0 %v6252_v27  ;;  %3692 = vmatpush2.bf16.msra.mxu1 %v6255_v28  ;;  %v7208_v9 = vrot.slane %v7192_v39, %v8136_v14 }
 0x156   : > { %3580 = vmatprep.subr.bf16.mxu0 %v6260_v29  ;;  %3693 = vmatprep.subr.bf16.mxu1 %v6263_v30  ;;  %v6270_v29 = vld [vmem:[#allocation8 + $0x4c0] ss:$16 sps:$4 sm:$0xff]  }
 0x159   : > { %3581 = vmatpush2.bf16.msra.mxu0 %v6258_v57  ;;  %3694 = vmatpush2.bf16.msra.mxu1 %v6261_v0 }
 0x15a   : > { %3776 = vmatprep.subr.bf16.mxu0 %v6266_v31  ;;  %3889 = vmatprep.subr.bf16.mxu1 %v6269_v32  ;;  %v6273_v31 = vld [vmem:[#allocation8 + $0x6c0] ss:$16 sps:$4 sm:$0xff]   ;;  %v6278_v32 = vld [vmem:[#allocation8 + $0x4a4] ss:$16 sps:$4 sm:$0xff]  }
 0x19b   : > { %v1382_v42 = vpop.f32.mrf.mxu0  ;;  %v1495_v43 = vpop.f32.mrf.mxu1 }
 0x19c   : > { %v1383_v54 = vadd.f32 %v1382_v42, %v7203_v46  ;;  %v1496_v56 = vadd.f32 %v1495_v43, %v7213_v15 }
 0x19d   : > { %v1384_v47 = vpop.f32.mrf.mxu0  ;;  %v1497_v48 = vpop.f32.mrf.mxu1 }
 0x19e   : > { %v1385_v50 = vadd.f32 %v1384_v47, %v7198_v45  ;;  %v1498_v23 = vadd.f32 %v1497_v48, %v7208_v9  ;;  %v1800_v4 = vmax.f32 %v1383_v54, 0.0  ;;  %v1802_v3 = vmax.f32 %v1496_v56, 0.0  ;;  %v6281_v48 = vld [vmem:[#allocation8 + $0x6a4] ss:$16 sps:$4 sm:$0xff]  }
 0x19f   : > { %v1386_v49 = vpop.f32.mrf.mxu0  ;;  %v1499_v53 = vpop.f32.mrf.mxu1 }
 0x1a0   : > { %v1387_v52 = vadd.f32 %v1386_v49, %v7203_v46  ;;  %v1500_v33 = vadd.f32 %v1499_v53, %v7213_v15  ;;  %v1801_v51 = vmax.f32 %v1385_v50, 0.0  ;;  %v1803_v5 = vmax.f32 %v1498_v23, 0.0 }
 0x1a1   : > { %v1388_v55 = vpop.f32.mrf.mxu0  ;;  %v1501_v60 = vpop.f32.mrf.mxu1 }
 0x1a2   : > { %v1389_v58 = vadd.f32 %v1388_v55, %v7198_v45  ;;  %v1808_v61 = vmax.f32 %v1387_v52, 0.0  ;;  %v1502_v62 = vadd.f32 %v1501_v60, %v7208_v9  ;;  %v1810_v63 = vmax.f32 %v1500_v33, 0.0  ;;  %v6276_v55 = vld [vmem:[#allocation8 + $0x4a0] ss:$16 sps:$4 sm:$0xff]  }
 0x1a3   : > { %v1392_v41 = vpop.f32.mrf.mxu0  ;;  %v1505_v2 = vpop.f32.mrf.mxu1 }
 0x1a4   : > { %v1809_v1 = vmax.f32 %v1389_v58, 0.0  ;;  %v1811_v6 = vmax.f32 %v1502_v62, 0.0  ;;  %v7225_v11 = vpack.c.bf16 %v1808_v61, %v1800_v4  ;;  %v7229_v16 = vpack.c.bf16 %v1810_v63, %v1802_v3  ;;  %v6279_v61 = vld [vmem:[#allocation8 + $0x6a0] ss:$16 sps:$4 sm:$0xff]   ;;  %v6284_v62 = vld [vmem:[#allocation8 + $0x484] ss:$16 sps:$4 sm:$0xff]  }
 0x1a5   : > { %v1394_v59 = vpop.f32.mrf.mxu0  ;;  %v1507_v7 = vpop.f32.mrf.mxu1  ;;  %v1393_v22 = vadd.f32 %v1392_v41, %v7203_v46  ;;  %v1506_v26 = vadd.f32 %v1505_v2, %v7213_v15  ;;  %v6287_v2 = vld [vmem:[#allocation8 + $0x684] ss:$16 sps:$4 sm:$0xff]  }
 0x1a6   : > { %v7223_v8 = vpack.c.bf16 %v1809_v1, %v1801_v51  ;;  %v7227_v13 = vpack.c.bf16 %v1811_v6, %v1803_v5  ;;  %v1395_v18 = vadd.f32 %v1394_v59, %v7198_v45  ;;  %v1508_v37 = vadd.f32 %v1507_v7, %v7208_v9 }
 0x1a7   : > { %v1396_v12 = vpop.f32.mrf.mxu0  ;;  %v1509_v20 = vpop.f32.mrf.mxu1  ;;  %v1816_v49 = vmax.f32 %v1393_v22, 0.0  ;;  %v1818_v54 = vmax.f32 %v1506_v26, 0.0 }
 0x1a8   : > { %v1397_v19 = vadd.f32 %v1396_v12, %v7203_v46  ;;  %3582 = vmatprep.mubr.bf16.mxu0 %v7223_v8  ;;  %v1510_v44 = vadd.f32 %v1509_v20, %v7213_v15  ;;  %3695 = vmatprep.mubr.bf16.mxu1 %v7227_v13  ;;  %v1817_v34 = vmax.f32 %v1395_v18, 0.0  ;;  %v1819_v50 = vmax.f32 %v1508_v37, 0.0  ;;  %v6282_v12 = vld [vmem:[#allocation8 + $0x480] ss:$16 sps:$4 sm:$0xff]   ;;  %v6290_v20 = vld [vmem:[#allocation8 + $0x464] ss:$16 sps:$4 sm:$0xff]  }
 0x1a9   : > { %v1398_v25 = vpop.f32.mrf.mxu0  ;;  %3583 = vmatmul.mubr.bf16.vlgmr.msra.gmra.mxu0 %v7225_v11  ;;  %v1511_v28 = vpop.f32.mrf.mxu1  ;;  %3696 = vmatmul.mubr.bf16.vlgmr.msra.gmra.mxu1 %v7229_v16 }
 0x1aa   : > { %v1399_v27 = vadd.f32 %v1398_v25, %v7198_v45  ;;  %3777 = vmatpush1.bf16.msra.mxu0 %v6264_v10  ;;  %v1824_v30 = vmax.f32 %v1397_v19, 0.0  ;;  %v1512_v57 = vadd.f32 %v1511_v28, %v7208_v9  ;;  %3890 = vmatpush1.bf16.msra.mxu1 %v6267_v17  ;;  %v1826_v42 = vmax.f32 %v1510_v44, 0.0  ;;  %v6285_v19 = vld [vmem:[#allocation8 + $0x680] ss:$16 sps:$4 sm:$0xff]   ;;  %v6293_v25 = vld [vmem:[#allocation8 + $0x664] ss:$16 sps:$4 sm:$0xff]  }
 0x1ab   : > { %v1402_v0 = vpop.f32.mrf.mxu0  ;;  %3778 = vmatprep.subr.bf16.mxu0 %v6272_v24  ;;  %v1515_v47 = vpop.f32.mrf.mxu1  ;;  %3891 = vmatprep.subr.bf16.mxu1 %v6275_v21 }
 0x1ac   : > { %v1825_v43 = vmax.f32 %v1399_v27, 0.0  ;;  %v1827_v52 = vmax.f32 %v1512_v57, 0.0  ;;  %v7245_v56 = vpack.c.bf16 %v1824_v30, %v1816_v49  ;;  %v7249_v41 = vpack.c.bf16 %v1826_v42, %v1818_v54 }
 0x1ad   : > { %v1404_v53 = vpop.f32.mrf.mxu0  ;;  %v1517_v23 = vpop.f32.mrf.mxu1  ;;  %v1403_v4 = vadd.f32 %v1402_v0, %v7203_v46  ;;  %v1516_v3 = vadd.f32 %v1515_v47, %v7213_v15  ;;  %v6296_v47 = vld [vmem:[#allocation8 + $0x444] ss:$16 sps:$4 sm:$0xff]  }
 0x1ae   : > { %3779 = vmatpush1.bf16.msra.mxu0 %v6270_v29  ;;  %v7243_v33 = vpack.c.bf16 %v1825_v43, %v1817_v34  ;;  %3892 = vmatpush1.bf16.msra.mxu1 %v6273_v31  ;;  %v7247_v60 = vpack.c.bf16 %v1827_v52, %v1819_v50  ;;  %v1405_v51 = vadd.f32 %v1404_v53, %v7198_v45  ;;  %v6288_v31 = vld [vmem:[#allocation8 + $0x460] ss:$16 sps:$4 sm:$0xff]   ;;  %v6299_v53 = vld [vmem:[#allocation8 + $0x644] ss:$16 sps:$4 sm:$0xff]  }
 0x1af   : > { %v1406_v58 = vpop.f32.mrf.mxu0  ;;  %3780 = vmatprep.subr.bf16.mxu0 %v6278_v32  ;;  %v1519_v1 = vpop.f32.mrf.mxu1  ;;  %3893 = vmatprep.subr.bf16.mxu1 %v6281_v48  ;;  %v1518_v5 = vadd.f32 %v1517_v23, %v7208_v9  ;;  %v1832_v26 = vmax.f32 %v1403_v4, 0.0  ;;  %v1834_v30 = vmax.f32 %v1516_v3, 0.0  ;;  %v6291_v43 = vld [vmem:[#allocation8 + $0x660] ss:$16 sps:$4 sm:$0xff]  }
 0x1b0   : > { %v1407_v63 = vadd.f32 %v1406_v58, %v7203_v46  ;;  %3592 = vmatprep.mubr.bf16.mxu0 %v7243_v33  ;;  %v1520_v6 = vadd.f32 %v1519_v1, %v7213_v15  ;;  %3705 = vmatprep.mubr.bf16.mxu1 %v7247_v60  ;;  %v1833_v21 = vmax.f32 %v1405_v51, 0.0 }
 0x1b1   : > { %v1408_v59 = vpop.f32.mrf.mxu0  ;;  %3593 = vmatmul.mubr.bf16.gmra.mxu0 %v7245_v56  ;;  %v1521_v10 = vpop.f32.mrf.mxu1  ;;  %3706 = vmatmul.mubr.bf16.gmra.mxu1 %v7249_v41  ;;  %v1835_v27 = vmax.f32 %v1518_v5, 0.0  ;;  %v6297_v5 = vld [vmem:[#allocation8 + $0x640] ss:$16 sps:$4 sm:$0xff]  }
 0x1b2   : > { %v1409_v7 = vadd.f32 %v1408_v59, %v7198_v45  ;;  %3781 = vmatpush1.bf16.msra.mxu0 %v6276_v55  ;;  %v1840_v17 = vmax.f32 %v1407_v63, 0.0  ;;  %v1522_v24 = vadd.f32 %v1521_v10, %v7208_v9  ;;  %3894 = vmatpush1.bf16.msra.mxu1 %v6279_v61  ;;  %v1842_v22 = vmax.f32 %v1520_v6, 0.0  ;;  %v6294_v63 = vld [vmem:[#allocation8 + $0x440] ss:$16 sps:$4 sm:$0xff]   ;;  %v6302_v6 = vld [vmem:[#allocation8 + $0x424] ss:$16 sps:$4 sm:$0xff]  }
 0x1b3   : > { %v1412_v18 = vpop.f32.mrf.mxu0  ;;  %3782 = vmatprep.subr.bf16.mxu0 %v6284_v62  ;;  %v1525_v44 = vpop.f32.mrf.mxu1  ;;  %3895 = vmatprep.subr.bf16.mxu1 %v6287_v2 }
 0x1b4   : > { %v1841_v37 = vmax.f32 %v1409_v7, 0.0  ;;  %v1843_v28 = vmax.f32 %v1522_v24, 0.0  ;;  %v7265_v32 = vpack.c.bf16 %v1840_v17, %v1832_v26  ;;  %v7269_v48 = vpack.c.bf16 %v1842_v22, %v1834_v30 }
 0x1b5   : > { %v1414_v29 = vpop.f32.mrf.mxu0  ;;  %v1527_v57 = vpop.f32.mrf.mxu1  ;;  %v1413_v54 = vadd.f32 %v1412_v18, %v7203_v46  ;;  %v1526_v61 = vadd.f32 %v1525_v44, %v7213_v15 }
 0x1b6   : > { %3783 = vmatpush1.bf16.msra.mxu0 %v6282_v12  ;;  %v7263_v0 = vpack.c.bf16 %v1841_v37, %v1833_v21  ;;  %3896 = vmatpush1.bf16.msra.mxu1 %v6285_v19  ;;  %v7267_v42 = vpack.c.bf16 %v1843_v28, %v1835_v27  ;;  %v1415_v49 = vadd.f32 %v1414_v29, %v7198_v45  ;;  %v6305_v12 = vld [vmem:[#allocation8 + $0x624] ss:$16 sps:$4 sm:$0xff]   ;;  %v6300_v37 = vld [vmem:[#allocation8 + $0x420] ss:$16 sps:$4 sm:$0xff]  }
 0x1b7   : > { %v1416_v34 = vpop.f32.mrf.mxu0  ;;  %3784 = vmatprep.subr.bf16.mxu0 %v6290_v20  ;;  %v1529_v52 = vpop.f32.mrf.mxu1  ;;  %3897 = vmatprep.subr.bf16.mxu1 %v6293_v25  ;;  %v1528_v23 = vadd.f32 %v1527_v57, %v7208_v9  ;;  %v1848_v17 = vmax.f32 %v1413_v54, 0.0  ;;  %v1850_v20 = vmax.f32 %v1526_v61, 0.0  ;;  %v6303_v27 = vld [vmem:[#allocation8 + $0x620] ss:$16 sps:$4 sm:$0xff]   ;;  %v6308_v28 = vld [vmem:[#allocation8 + $0x404] ss:$16 sps:$4 sm:$0xff]  }
 0x1b8   : > { %v1417_v50 = vadd.f32 %v1416_v34, %v7203_v46  ;;  %3602 = vmatprep.mubr.bf16.mxu0 %v7263_v0  ;;  %v1530_v55 = vadd.f32 %v1529_v52, %v7213_v15  ;;  %3715 = vmatprep.mubr.bf16.mxu1 %v7267_v42  ;;  %v1849_v59 = vmax.f32 %v1415_v49, 0.0  ;;  %v6311_v34 = vld [vmem:[#allocation8 + $0x604] ss:$16 sps:$4 sm:$0xff]  }
 0x1b9   : > { %v1418_v58 = vpop.f32.mrf.mxu0  ;;  %3603 = vmatmul.mubr.bf16.gmra.mxu0 %v7265_v32  ;;  %v1531_v51 = vpop.f32.mrf.mxu1  ;;  %3716 = vmatmul.mubr.bf16.gmra.mxu1 %v7269_v48  ;;  %v1851_v24 = vmax.f32 %v1528_v23, 0.0  ;;  %v6306_v23 = vld [vmem:[#allocation8 + $0x400] ss:$16 sps:$4 sm:$0xff]  }
 0x1ba   : > { %v1419_v62 = vadd.f32 %v1418_v58, %v7198_v45  ;;  %3785 = vmatpush1.bf16.msra.mxu0 %v6288_v31  ;;  %v1856_v1 = vmax.f32 %v1417_v50, 0.0  ;;  %v1532_v2 = vadd.f32 %v1531_v51, %v7208_v9  ;;  %3898 = vmatpush1.bf16.msra.mxu1 %v6291_v43  ;;  %v1858_v3 = vmax.f32 %v1530_v55, 0.0  ;;  %v6314_v51 = vld [vmem:[#allocation8 + $0x5e4] ss:$16 sps:$4 sm:$0xff]  }
 0x1bb   : > { %v1422_v4 = vpop.f32.mrf.mxu0  ;;  %3786 = vmatprep.subr.bf16.mxu0 %v6296_v47  ;;  %v1535_v10 = vpop.f32.mrf.mxu1  ;;  %3899 = vmatprep.subr.bf16.mxu1 %v6299_v53 }
 0x1bc   : > { %v1857_v7 = vmax.f32 %v1419_v62, 0.0  ;;  %v1859_v18 = vmax.f32 %v1532_v2, 0.0  ;;  %v7285_v44 = vpack.c.bf16 %v1856_v1, %v1848_v17  ;;  %v7289_v29 = vpack.c.bf16 %v1858_v3, %v1850_v20  ;;  %v6309_v62 = vld [vmem:[#allocation8 + $0x600] ss:$16 sps:$4 sm:$0xff]  }
 0x1bd   : > { %v1424_v19 = vpop.f32.mrf.mxu0  ;;  %v1537_v21 = vpop.f32.mrf.mxu1  ;;  %v1423_v43 = vadd.f32 %v1422_v4, %v7203_v46  ;;  %v1536_v52 = vadd.f32 %v1535_v10, %v7213_v15 }
 0x1be   : > { %3787 = vmatpush1.bf16.msra.mxu0 %v6294_v63  ;;  %v7283_v22 = vpack.c.bf16 %v1857_v7, %v1849_v59  ;;  %3900 = vmatpush1.bf16.msra.mxu1 %v6297_v5  ;;  %v7287_v26 = vpack.c.bf16 %v1859_v18, %v1851_v24  ;;  %v1425_v30 = vadd.f32 %v1424_v19, %v7198_v45  ;;  %v6317_v5 = vld [vmem:[#allocation8 + $0x7e4] ss:$16 sps:$4 sm:$0xff]   ;;  %v6312_v24 = vld [vmem:[#allocation8 + $0x5e0] ss:$16 sps:$4 sm:$0xff]  }
 0x1bf   : > { %v1426_v25 = vpop.f32.mrf.mxu0  ;;  %3788 = vmatprep.subr.bf16.mxu0 %v6302_v6  ;;  %v1539_v31 = vpop.f32.mrf.mxu1  ;;  %3901 = vmatprep.subr.bf16.mxu1 %v6305_v12  ;;  %v1538_v47 = vadd.f32 %v1537_v21, %v7208_v9  ;;  %v1864_v6 = vmax.f32 %v1423_v43, 0.0  ;;  %v1866_v10 = vmax.f32 %v1536_v52, 0.0  ;;  %v6315_v21 = vld [vmem:[#allocation8 + $0x7e0] ss:$16 sps:$4 sm:$0xff]  }
 0x1c0   : > { %v1427_v57 = vadd.f32 %v1426_v25, %v7203_v46  ;;  %3612 = vmatprep.mubr.bf16.mxu0 %v7283_v22  ;;  %v1540_v49 = vadd.f32 %v1539_v31, %v7213_v15  ;;  %3725 = vmatprep.mubr.bf16.mxu1 %v7287_v26  ;;  %v1865_v63 = vmax.f32 %v1425_v30, 0.0 }
 0x1c1   : > { %v1428_v50 = vpop.f32.mrf.mxu0  ;;  %3613 = vmatmul.mubr.bf16.gmra.mxu0 %v7285_v44  ;;  %v1541_v54 = vpop.f32.mrf.mxu1  ;;  %3726 = vmatmul.mubr.bf16.gmra.mxu1 %v7289_v29  ;;  %v1867_v59 = vmax.f32 %v1538_v47, 0.0 }
 0x1c2   : > { %v1429_v53 = vadd.f32 %v1428_v50, %v7198_v45  ;;  %3789 = vmatpush1.bf16.msra.mxu0 %v6300_v37  ;;  %v1872_v55 = vmax.f32 %v1427_v57, 0.0  ;;  %v1542_v58 = vadd.f32 %v1541_v54, %v7208_v9  ;;  %3902 = vmatpush1.bf16.msra.mxu1 %v6303_v27  ;;  %v1874_v1 = vmax.f32 %v1540_v49, 0.0  ;;  %v6320_v37 = vld [vmem:[#allocation8 + $0x5c4] ss:$16 sps:$4 sm:$0xff]  }
 0x1c3   : > { %v1432_v61 = vpop.f32.mrf.mxu0  ;;  %3790 = vmatprep.subr.bf16.mxu0 %v6308_v28  ;;  %v1545_v4 = vpop.f32.mrf.mxu1  ;;  %3903 = vmatprep.subr.bf16.mxu1 %v6311_v34  ;;  %v6323_v57 = vld [vmem:[#allocation8 + $0x7c4] ss:$16 sps:$4 sm:$0xff]  }
 0x1c4   : > { %v1873_v2 = vmax.f32 %v1429_v53, 0.0  ;;  %v1875_v3 = vmax.f32 %v1542_v58, 0.0  ;;  %v7305_v18 = vpack.c.bf16 %v1872_v55, %v1864_v6  ;;  %v7309_v25 = vpack.c.bf16 %v1874_v1, %v1866_v10  ;;  %v6318_v53 = vld [vmem:[#allocation8 + $0x5c0] ss:$16 sps:$4 sm:$0xff]  }
 0x1c5   : > { %v1434_v7 = vpop.f32.mrf.mxu0  ;;  %v1547_v12 = vpop.f32.mrf.mxu1  ;;  %v1433_v31 = vadd.f32 %v1432_v61, %v7203_v46  ;;  %v1546_v49 = vadd.f32 %v1545_v4, %v7213_v15  ;;  %v6321_v58 = vld [vmem:[#allocation8 + $0x7c0] ss:$16 sps:$4 sm:$0xff]   ;;  %v6326_v61 = vld [vmem:[#allocation8 + $0x5a4] ss:$16 sps:$4 sm:$0xff]  }
 0x1c6   : > { %3791 = vmatpush1.bf16.msra.mxu0 %v6306_v23  ;;  %v7303_v17 = vpack.c.bf16 %v1873_v2, %v1865_v63  ;;  %3904 = vmatpush1.bf16.msra.mxu1 %v6309_v62  ;;  %v7307_v20 = vpack.c.bf16 %v1875_v3, %v1867_v59  ;;  %v1435_v27 = vadd.f32 %v1434_v7, %v7198_v45  ;;  %v6329_v2 = vld [vmem:[#allocation8 + $0x7a4] ss:$16 sps:$4 sm:$0xff]  }
 0x1c7   : > { %v1436_v19 = vpop.f32.mrf.mxu0  ;;  %3792 = vmatprep.subr.bf16.mxu0 %v6314_v51  ;;  %v1549_v30 = vpop.f32.mrf.mxu1  ;;  %3905 = vmatprep.subr.bf16.mxu1 %v6317_v5  ;;  %v1548_v34 = vadd.f32 %v1547_v12, %v7208_v9  ;;  %v1880_v4 = vmax.f32 %v1433_v31, 0.0  ;;  %v1882_v3 = vmax.f32 %v1546_v49, 0.0  ;;  %v6324_v12 = vld [vmem:[#allocation8 + $0x5a0] ss:$16 sps:$4 sm:$0xff]  }
 0x1c8   : > { %v1437_v28 = vadd.f32 %v1436_v19, %v7203_v46  ;;  %3622 = vmatprep.mubr.bf16.mxu0 %v7303_v17  ;;  %v1550_v43 = vadd.f32 %v1549_v30, %v7213_v15  ;;  %3735 = vmatprep.mubr.bf16.mxu1 %v7307_v20  ;;  %v1881_v62 = vmax.f32 %v1435_v27, 0.0  ;;  %v6332_v27 = vld [vmem:[#allocation8 + $0x584] ss:$16 sps:$4 sm:$0xff]  }
 0x1c9   : > { %v1438_v47 = vpop.f32.mrf.mxu0  ;;  %3623 = vmatmul.mubr.bf16.gmra.mxu0 %v7305_v18  ;;  %v1551_v52 = vpop.f32.mrf.mxu1  ;;  %3736 = vmatmul.mubr.bf16.gmra.mxu1 %v7309_v25  ;;  %v1883_v5 = vmax.f32 %v1548_v34, 0.0  ;;  %v6335_v34 = vld [vmem:[#allocation8 + $0x784] ss:$16 sps:$4 sm:$0xff]  }
 0x1ca   : > { %v1439_v50 = vadd.f32 %v1438_v47, %v7198_v45  ;;  %3793 = vmatpush2.bf16.msra.mxu0 %v6312_v24  ;;  %v1888_v54 = vmax.f32 %v1437_v28, 0.0  ;;  %v1552_v23 = vadd.f32 %v1551_v52, %v7208_v9  ;;  %3906 = vmatpush2.bf16.msra.mxu1 %v6315_v21  ;;  %v1890_v51 = vmax.f32 %v1550_v43, 0.0 }
 0x1cb   : > { %v1442_v55 = vpop.f32.mrf.mxu0  ;;  %3794 = vmatprep.subr.bf16.mxu0 %v6320_v37  ;;  %v1555_v1 = vpop.f32.mrf.mxu1  ;;  %3907 = vmatprep.subr.bf16.mxu1 %v6323_v57  ;;  %v6327_v37 = vld [vmem:[#allocation8 + $0x7a0] ss:$16 sps:$4 sm:$0xff]  }
 0x1cc   : > { %v1889_v63 = vmax.f32 %v1439_v50, 0.0  ;;  %v1891_v6 = vmax.f32 %v1552_v23, 0.0  ;;  %v7325_v24 = vpack.c.bf16 %v1888_v54, %v1880_v4  ;;  %v7329_v28 = vpack.c.bf16 %v1890_v51, %v1882_v3  ;;  %v6330_v23 = vld [vmem:[#allocation8 + $0x580] ss:$16 sps:$4 sm:$0xff]   ;;  %v6338_v51 = vld [vmem:[#allocation8 + $0x564] ss:$16 sps:$4 sm:$0xff]  }
 0x1cd   : > { %v1444_v59 = vpop.f32.mrf.mxu0  ;;  %v1557_v7 = vpop.f32.mrf.mxu1  ;;  %v1443_v43 = vadd.f32 %v1442_v55, %v7203_v46  ;;  %v1556_v52 = vadd.f32 %v1555_v1, %v7213_v15  ;;  %v6341_v1 = vld [vmem:[#allocation8 + $0x764] ss:$16 sps:$4 sm:$0xff]  }
 0x1ce   : > { %3795 = vmatpush2.bf16.msra.mxu0 %v6318_v53  ;;  %v7323_v10 = vpack.c.bf16 %v1889_v63, %v1881_v62  ;;  %3908 = vmatpush2.bf16.msra.mxu1 %v6321_v58  ;;  %v7327_v21 = vpack.c.bf16 %v1891_v6, %v1883_v5  ;;  %v1445_v30 = vadd.f32 %v1444_v59, %v7198_v45  ;;  %v6333_v62 = vld [vmem:[#allocation8 + $0x780] ss:$16 sps:$4 sm:$0xff]  }
 0x1cf   : > { %v1446_v19 = vpop.f32.mrf.mxu0  ;;  %3796 = vmatprep.subr.bf16.mxu0 %v6326_v61  ;;  %v1559_v31 = vpop.f32.mrf.mxu1  ;;  %3909 = vmatprep.subr.bf16.mxu1 %v6329_v2  ;;  %v1558_v47 = vadd.f32 %v1557_v7, %v7208_v9  ;;  %v1896_v6 = vmax.f32 %v1443_v43, 0.0  ;;  %v6344_v43 = vld [vmem:[#allocation8 + $0x544] ss:$16 sps:$4 sm:$0xff]  }
 0x1d0   : > { %v1447_v57 = vadd.f32 %v1446_v19, %v7203_v46  ;;  %3632 = vmatprep.mubr.bf16.mxu0 %v7323_v10  ;;  %v1560_v49 = vadd.f32 %v1559_v31, %v7213_v15  ;;  %3745 = vmatprep.mubr.bf16.mxu1 %v7327_v21  ;;  %v1897_v63 = vmax.f32 %v1445_v30, 0.0 }
 0x1d1   : > { %v1448_v50 = vpop.f32.mrf.mxu0  ;;  %3633 = vmatmul.mubr.bf16.gmra.mxu0 %v7325_v24  ;;  %v1561_v54 = vpop.f32.mrf.mxu1  ;;  %3746 = vmatmul.mubr.bf16.gmra.mxu1 %v7329_v28  ;;  %v1899_v59 = vmax.f32 %v1558_v47, 0.0 }
 0x1d2   : > { %v1449_v53 = vadd.f32 %v1448_v50, %v7198_v45  ;;  %3797 = vmatpush2.bf16.msra.mxu0 %v6324_v12  ;;  %v1904_v58 = vmax.f32 %v1447_v57, 0.0  ;;  %v1562_v55 = vadd.f32 %v1561_v54, %v7208_v9  ;;  %3910 = vmatpush2.bf16.msra.mxu1 %v6327_v37  ;;  %v1906_v2 = vmax.f32 %v1560_v49, 0.0  ;;  %v6336_v37 = vld [vmem:[#allocation8 + $0x560] ss:$16 sps:$4 sm:$0xff]  }
 0x1d3   : > { %v1452_v61 = vpop.f32.mrf.mxu0  ;;  %3798 = vmatprep.subr.bf16.mxu0 %v6332_v27  ;;  %v1565_v5 = vpop.f32.mrf.mxu1  ;;  %3911 = vmatprep.subr.bf16.mxu1 %v6335_v34  ;;  %v1898_v12 = vmax.f32 %v1556_v52, 0.0  ;;  %v6339_v49 = vld [vmem:[#allocation8 + $0x760] ss:$16 sps:$4 sm:$0xff]   ;;  %v606_v34 = vsub.s32 4, %v7187_v35  ;;  %v610_v54 = vsub.s32 5, %v7187_v35 }
 0x1d4   : > { %v1905_v4 = vmax.f32 %v1449_v53, 0.0  ;;  %v1907_v3 = vmax.f32 %v1562_v55, 0.0  ;;  %v7345_v31 = vpack.c.bf16 %v1904_v58, %v1896_v6  ;;  %v1453_v58 = vadd.f32 %v1452_v61, %v7203_v46  ;;  %v6342_v61 = vld [vmem:[#allocation8 + $0x540] ss:$16 sps:$4 sm:$0xff]  }
 0x1d5   : > { %v1454_v7 = vpop.f32.mrf.mxu0  ;;  %v1567_v19 = vpop.f32.mrf.mxu1  ;;  %v7350_v47 = vpack.c.bf16 %v1906_v2, %v1898_v12  ;;  %v1566_v2 = vadd.f32 %v1565_v5, %v7213_v15  ;;  %v6345_v12 = vld [vmem:[#allocation8 + $0x740] ss:$16 sps:$4 sm:$0xff]  }
 0x1d6   : > { %3799 = vmatpush2.bf16.msra.mxu0 %v6330_v23  ;;  %v7343_v57 = vpack.c.bf16 %v1905_v4, %v1897_v63  ;;  %3912 = vmatpush2.bf16.msra.mxu1 %v6333_v62  ;;  %v7347_v30 = vpack.c.bf16 %v1907_v3, %v1899_v59  ;;  %v1455_v50 = vadd.f32 %v1454_v7, %v7198_v45  ;;  %v6347_v23 = vld [vmem:[#allocation8 + $0x744] ss:$16 sps:$4 sm:$0xff]   ;;  %v618_v63 = vsub.s32 7, %v7187_v35 }
 0x1d7   : > { %v1456_v27 = vpop.f32.mrf.mxu0  ;;  %3800 = vmatprep.subr.bf16.mxu0 %v6338_v51  ;;  %v1569_v53 = vpop.f32.mrf.mxu1  ;;  %3913 = vmatprep.subr.bf16.mxu1 %v6341_v1  ;;  %v1568_v55 = vadd.f32 %v1567_v19, %v7208_v9  ;;  %v7368_v3 = vrot.slane %v7192_v39, %v606_v34 }
 0x1d8   : > { %v1457_v52 = vadd.f32 %v1456_v27, %v7203_v46  ;;  %3642 = vmatprep.mubr.bf16.mxu0 %v7343_v57  ;;  %v1570_v62 = vadd.f32 %v1569_v53, %v7213_v15  ;;  %3755 = vmatprep.mubr.bf16.mxu1 %v7347_v30  ;;  %v614_v46 = vsub.s32 6, %v7187_v35  ;;  %v6350_v15 = vld [vmem:[#allocation8 + $0x524] ss:$16 sps:$4 sm:$0xff]   ;;  %v1913_v5 = vmax.f32 %v1455_v50, 0.0 }
 0x1d9   : > { %v1458_v51 = vpop.f32.mrf.mxu0  ;;  %3643 = vmatmul.mubr.bf16.gmra.mxu0 %v7345_v31  ;;  %v1571_v1 = vpop.f32.mrf.mxu1  ;;  %3756 = vmatmul.mubr.bf16.gmra.mxu1 %v7350_v47  ;;  %v6353_v53 = vld [vmem:[#allocation8 + $0x724] ss:$16 sps:$4 sm:$0xff]   ;;  %v7374_v34 = vrot.slane %v7192_v39, %v618_v63 }
 0x1da   : > { %v1459_v4 = vadd.f32 %v1458_v51, %v7198_v45  ;;  %3801 = vmatpush2.bf16.msra.mxu0 %v6336_v37  ;;  %v1920_v6 = vmax.f32 %v1457_v52, 0.0  ;;  %v1572_v59 = vadd.f32 %v1571_v1, %v7208_v9  ;;  %3914 = vmatpush2.bf16.msra.mxu1 %v6339_v49  ;;  %v1922_v45 = vmax.f32 %v1570_v62, 0.0 }
 0x1db   : > { %v1608_v7 = vpop.f32.mrf.mxu0  ;;  %3802 = vmatprep.subr.bf16.mxu0 %v6344_v43  ;;  %v1721_v27 = vpop.f32.mrf.mxu1  ;;  %v7371_v37 = vrot.slane %v7192_v39, %v610_v54  ;;  %3915 = vmatprep.subr.bf16.mxu1 %v6347_v23  ;;  %v1912_v52 = vmax.f32 %v1453_v58, 0.0  ;;  %v1915_v51 = vmax.f32 %v1568_v55, 0.0  ;;  %v1914_v1 = vmax.f32 %v1566_v2, 0.0  ;;  %v6351_v55 = vld [vmem:[#allocation8 + $0x720] ss:$16 sps:$4 sm:$0xff]  }
 0x1dc   : > { %v1921_v19 = vmax.f32 %v1459_v4, 0.0  ;;  %v1923_v9 = vmax.f32 %v1572_v59, 0.0  ;;  %v7377_v43 = vrot.slane %v7192_v39, %v614_v46  ;;  %v6348_v4 = vld [vmem:[#allocation8 + $0x520] ss:$16 sps:$4 sm:$0xff]   ;;  %v6356_v59 = vld [vmem:[#allocation8 + $0x504] ss:$16 sps:$4 sm:$0xff]  }
 0x1dd   : > { %v1610_v49 = vpop.f32.mrf.mxu0  ;;  %v1723_v50 = vpop.f32.mrf.mxu1  ;;  %v7381_v54 = vpack.c.bf16 %v1920_v6, %v1912_v52  ;;  %v7385_v63 = vpack.c.bf16 %v1922_v45, %v1914_v1  ;;  %v1609_v6 = vadd.f32 %v1608_v7, %v7368_v3  ;;  %v6362_v1 = vld [vmem:[#allocation8 + $0xec] ss:$16 sps:$4 sm:$0xff]  }
 0x1de   : > { %3803 = vmatpush2.bf16.msra.mxu0 %v6342_v61  ;;  %v7379_v62 = vpack.c.bf16 %v1921_v19, %v1913_v5  ;;  %3916 = vmatpush2.bf16.msra.mxu1 %v6345_v12  ;;  %v7383_v58 = vpack.c.bf16 %v1923_v9, %v1915_v51  ;;  %v1611_v2 = vadd.f32 %v1610_v49, %v7371_v37  ;;  %v6359_v61 = vld [vmem:[#allocation8 + $0x704] ss:$16 sps:$4 sm:$0xff]   ;;  %v6357_v49 = vld [vmem:[#allocation8 + $0x700] ss:$16 sps:$4 sm:$0xff]  }
 0x1df   : > { %v1612_v23 = vpop.f32.mrf.mxu0  ;;  %3804 = vmatprep.subr.bf16.mxu0 %v6350_v15  ;;  %v1725_v46 = vpop.f32.mrf.mxu1  ;;  %3917 = vmatprep.subr.bf16.mxu1 %v6353_v53  ;;  %v1724_v12 = vadd.f32 %v1723_v50, %v7374_v34  ;;  %v1722_v45 = vadd.f32 %v1721_v27, %v7377_v43  ;;  %v6354_v53 = vld [vmem:[#allocation8 + $0x500] ss:$16 sps:$4 sm:$0xff]   ;;  %v6365_v27 = vld [vmem:[#allocation8 + $0x2ec] ss:$16 sps:$4 sm:$0xff]  }
 0x1e0   : > { %v1613_v39 = vadd.f32 %v1612_v23, %v7368_v3  ;;  %3652 = vmatprep.mubr.bf16.mxu0 %v7379_v62  ;;  %v1726_v5 = vadd.f32 %v1725_v46, %v7377_v43  ;;  %3765 = vmatprep.mubr.bf16.mxu1 %v7383_v58  ;;  %v1805_v50 = vmax.f32 %v1611_v2, 0.0 }
 0x1e1   : > { %v1614_v15 = vpop.f32.mrf.mxu0  ;;  %3653 = vmatmul.mubr.bf16.gmra.mxu0 %v7381_v54  ;;  %v1727_v52 = vpop.f32.mrf.mxu1  ;;  %3766 = vmatmul.mubr.bf16.gmra.mxu1 %v7385_v63  ;;  %v1807_v40 = vmax.f32 %v1724_v12, 0.0 }
 0x1e2   : > { %v1615_v19 = vadd.f32 %v1614_v15, %v7371_v37  ;;  %3805 = vmatpush2.bf16.msra.mxu0 %v6348_v4  ;;  %v1812_v51 = vmax.f32 %v1613_v39, 0.0  ;;  %v1728_v7 = vadd.f32 %v1727_v52, %v7374_v34  ;;  %3918 = vmatpush2.bf16.msra.mxu1 %v6351_v55  ;;  %v1814_v23 = vmax.f32 %v1726_v5, 0.0  ;;  %v6360_v55 = vld [vmem:[#allocation8 + $0xe8] ss:$16 sps:$4 sm:$0xff]  }
 0x1e3   : > { %v1618_v9 = vpop.f32.mrf.mxu0  ;;  %3806 = vmatprep.subr.bf16.mxu0 %v6356_v59  ;;  %v1731_v14 = vpop.f32.mrf.mxu1  ;;  %3919 = vmatprep.subr.bf16.mxu1 %v6359_v61  ;;  %v1804_v15 = vmax.f32 %v1609_v6, 0.0  ;;  %v1806_v4 = vmax.f32 %v1722_v45, 0.0  ;;  %v6363_v5 = vld [vmem:[#allocation8 + $0x2e8] ss:$16 sps:$4 sm:$0xff]   ;;  %v6368_v61 = vld [vmem:[#allocation8 + $0xcc] ss:$16 sps:$4 sm:$0xff]  }
 0x1e4   : > { %v1813_v46 = vmax.f32 %v1615_v19, 0.0  ;;  %v1815_v36 = vmax.f32 %v1728_v7, 0.0 }
 0x1e5   : > { %v1620_v38 = vpop.f32.mrf.mxu0  ;;  %v1733_v35 = vpop.f32.mrf.mxu1  ;;  %v7401_v52 = vpack.c.bf16 %v1812_v51, %v1804_v15  ;;  %v7405_v19 = vpack.c.bf16 %v1814_v23, %v1806_v4  ;;  %v1619_v51 = vadd.f32 %v1618_v9, %v7368_v3 }
 0x1e6   : > { %3807 = vmatpush2.bf16.msra.mxu0 %v6354_v53  ;;  %v7399_v39 = vpack.c.bf16 %v1813_v46, %v1805_v50  ;;  %3920 = vmatpush2.bf16.msra.mxu1 %v6357_v49  ;;  %v7403_v2 = vpack.c.bf16 %v1815_v36, %v1807_v40  ;;  %v1621_v6 = vadd.f32 %v1620_v38, %v7371_v37  ;;  %v6371_v53 = vld [vmem:[#allocation8 + $0x2cc] ss:$16 sps:$4 sm:$0xff]   ;;  %v6366_v50 = vld [vmem:[#allocation8 + $0xc8] ss:$16 sps:$4 sm:$0xff]  }
 0x1e7   : > { %8191 = vst [vmem:[#allocation25_spill] sm:$0xff] %v7401_v52  ;;  %v1622_v59 = vpop.f32.mrf.mxu0  ;;  %4002 = vmatprep.subr.bf16.mxu0 %v6362_v1  ;;  %8193 = vst [vmem:[#allocation27_spill] sm:$0xff] %v7405_v19  ;;  %v1735_v45 = vpop.f32.mrf.mxu1  ;;  %4115 = vmatprep.subr.bf16.mxu1 %v6365_v27  ;;  %v1734_v7 = vadd.f32 %v1733_v35, %v7374_v34  ;;  %v1732_v38 = vadd.f32 %v1731_v14, %v7377_v43  ;;  %v6369_v46 = vld [vmem:[#allocation8 + $0x2c8] ss:$16 sps:$4 sm:$0xff]   ;;  %v6374_v27 = vld [vmem:[#allocation8 + $0xac] ss:$16 sps:$4 sm:$0xff]  }
 0x1e8   : > { %8190 = vst [vmem:[#allocation24_spill] sm:$0xff] %v7399_v39  ;;  %8192 = vst [vmem:[#allocation26_spill] sm:$0xff] %v7403_v2  ;;  %v1623_v12 = vadd.f32 %v1622_v59, %v7368_v3  ;;  %3808 = vmatprep.mubr.bf16.mxu0 %v7399_v39  ;;  %v1736_v36 = vadd.f32 %v1735_v45, %v7377_v43  ;;  %3921 = vmatprep.mubr.bf16.mxu1 %v7403_v2  ;;  %v1821_v15 = vmax.f32 %v1621_v6, 0.0  ;;  %v6377_v14 = vld [vmem:[#allocation8 + $0x2ac] ss:$16 sps:$4 sm:$0xff]  }
 0x1e9   : > { %v1624_v40 = vpop.f32.mrf.mxu0  ;;  %3809 = vmatmul.mubr.bf16.vlgmr.msra.gmra.mxu0 %v7401_v52  ;;  %v1737_v1 = vpop.f32.mrf.mxu1  ;;  %3922 = vmatmul.mubr.bf16.vlgmr.msra.gmra.mxu1 %v7405_v19  ;;  %v1823_v52 = vmax.f32 %v1734_v7, 0.0 }
 0x1ea   : > { %v1625_v49 = vadd.f32 %v1624_v40, %v7371_v37  ;;  %4003 = vmatpush1.bf16.msra.mxu0 %v6360_v55  ;;  %v1828_v23 = vmax.f32 %v1623_v12, 0.0  ;;  %v1738_v9 = vadd.f32 %v1737_v1, %v7374_v34  ;;  %4116 = vmatpush1.bf16.msra.mxu1 %v6363_v5  ;;  %v1830_v4 = vmax.f32 %v1736_v36, 0.0  ;;  %v6372_v5 = vld [vmem:[#allocation8 + $0xa8] ss:$16 sps:$4 sm:$0xff]  }
 0x1eb   : > { %v1628_v35 = vpop.f32.mrf.mxu0  ;;  %4004 = vmatprep.subr.bf16.mxu0 %v6368_v61  ;;  %v1741_v45 = vpop.f32.mrf.mxu1  ;;  %4117 = vmatprep.subr.bf16.mxu1 %v6371_v53  ;;  %v1820_v40 = vmax.f32 %v1619_v51, 0.0  ;;  %v1822_v55 = vmax.f32 %v1732_v38, 0.0  ;;  %v6375_v36 = vld [vmem:[#allocation8 + $0x2a8] ss:$16 sps:$4 sm:$0xff]   ;;  %v6380_v53 = vld [vmem:[#allocation8 + $0x8c] ss:$16 sps:$4 sm:$0xff]  }
 0x1ec   : > { %v1829_v59 = vmax.f32 %v1625_v49, 0.0  ;;  %v1831_v2 = vmax.f32 %v1738_v9, 0.0 }
 0x1ed   : > { %v1630_v19 = vpop.f32.mrf.mxu0  ;;  %v1743_v39 = vpop.f32.mrf.mxu1  ;;  %v7421_v1 = vpack.c.bf16 %v1828_v23, %v1820_v40  ;;  %v7425_v49 = vpack.c.bf16 %v1830_v4, %v1822_v55  ;;  %v1629_v23 = vadd.f32 %v1628_v35, %v7368_v3 }
 0x1ee   : > { %4005 = vmatpush1.bf16.msra.mxu0 %v6366_v50  ;;  %v7419_v12 = vpack.c.bf16 %v1829_v59, %v1821_v15  ;;  %4118 = vmatpush1.bf16.msra.mxu1 %v6369_v46  ;;  %v7423_v6 = vpack.c.bf16 %v1831_v2, %v1823_v52  ;;  %v1631_v51 = vadd.f32 %v1630_v19, %v7371_v37  ;;  %v6383_v50 = vld [vmem:[#allocation8 + $0x28c] ss:$16 sps:$4 sm:$0xff]   ;;  %v6378_v15 = vld [vmem:[#allocation8 + $0x88] ss:$16 sps:$4 sm:$0xff]  }
 0x1ef   : > { %8195 = vst [vmem:[#allocation29_spill] sm:$0xff] %v7421_v1  ;;  %v1632_v61 = vpop.f32.mrf.mxu0  ;;  %4006 = vmatprep.subr.bf16.mxu0 %v6374_v27  ;;  %8197 = vst [vmem:[#allocation31_spill] sm:$0xff] %v7425_v49  ;;  %v1745_v38 = vpop.f32.mrf.mxu1  ;;  %4119 = vmatprep.subr.bf16.mxu1 %v6377_v14  ;;  %v1744_v9 = vadd.f32 %v1743_v39, %v7374_v34  ;;  %v1742_v19 = vadd.f32 %v1741_v45, %v7377_v43  ;;  %v6381_v59 = vld [vmem:[#allocation8 + $0x288] ss:$16 sps:$4 sm:$0xff]   ;;  %v6386_v14 = vld [vmem:[#allocation8 + $0x6c] ss:$16 sps:$4 sm:$0xff]  }
 0x1f0   : > { %8194 = vst [vmem:[#allocation28_spill] sm:$0xff] %v7419_v12  ;;  %8196 = vst [vmem:[#allocation30_spill] sm:$0xff] %v7423_v6  ;;  %v1633_v7 = vadd.f32 %v1632_v61, %v7368_v3  ;;  %3818 = vmatprep.mubr.bf16.mxu0 %v7419_v12  ;;  %v1746_v52 = vadd.f32 %v1745_v38, %v7377_v43  ;;  %3931 = vmatprep.mubr.bf16.mxu1 %v7423_v6  ;;  %v1837_v40 = vmax.f32 %v1631_v51, 0.0  ;;  %v6389_v45 = vld [vmem:[#allocation8 + $0x26c] ss:$16 sps:$4 sm:$0xff]  }
 0x1f1   : > { %v1634_v2 = vpop.f32.mrf.mxu0  ;;  %3819 = vmatmul.mubr.bf16.gmra.mxu0 %v7421_v1  ;;  %v1747_v27 = vpop.f32.mrf.mxu1  ;;  %3932 = vmatmul.mubr.bf16.gmra.mxu1 %v7425_v49  ;;  %v1839_v1 = vmax.f32 %v1744_v9, 0.0 }
 0x1f2   : > { %v1635_v46 = vadd.f32 %v1634_v2, %v7371_v37  ;;  %4007 = vmatpush1.bf16.msra.mxu0 %v6372_v5  ;;  %v1844_v4 = vmax.f32 %v1633_v7, 0.0  ;;  %v1748_v35 = vadd.f32 %v1747_v27, %v7374_v34  ;;  %4120 = vmatpush1.bf16.msra.mxu1 %v6375_v36  ;;  %v1846_v55 = vmax.f32 %v1746_v52, 0.0  ;;  %v6384_v36 = vld [vmem:[#allocation8 + $0x68] ss:$16 sps:$4 sm:$0xff]  }
 0x1f3   : > { %v1638_v39 = vpop.f32.mrf.mxu0  ;;  %4008 = vmatprep.subr.bf16.mxu0 %v6380_v53  ;;  %v1751_v38 = vpop.f32.mrf.mxu1  ;;  %4121 = vmatprep.subr.bf16.mxu1 %v6383_v50  ;;  %v1836_v2 = vmax.f32 %v1629_v23, 0.0  ;;  %v1838_v5 = vmax.f32 %v1742_v19, 0.0  ;;  %v6387_v52 = vld [vmem:[#allocation8 + $0x268] ss:$16 sps:$4 sm:$0xff]   ;;  %v6392_v50 = vld [vmem:[#allocation8 + $0x4c] ss:$16 sps:$4 sm:$0xff]  }
 0x1f4   : > { %v1845_v61 = vmax.f32 %v1635_v46, 0.0  ;;  %v1847_v6 = vmax.f32 %v1748_v35, 0.0 }
 0x1f5   : > { %v1640_v49 = vpop.f32.mrf.mxu0  ;;  %v1753_v12 = vpop.f32.mrf.mxu1  ;;  %v7441_v27 = vpack.c.bf16 %v1844_v4, %v1836_v2  ;;  %v7445_v46 = vpack.c.bf16 %v1846_v55, %v1838_v5  ;;  %v1639_v4 = vadd.f32 %v1638_v39, %v7368_v3 }
 0x1f6   : > { %4009 = vmatpush1.bf16.msra.mxu0 %v6378_v15  ;;  %v7439_v7 = vpack.c.bf16 %v1845_v61, %v1837_v40  ;;  %4122 = vmatpush1.bf16.msra.mxu1 %v6381_v59  ;;  %v7443_v51 = vpack.c.bf16 %v1847_v6, %v1839_v1  ;;  %v1641_v23 = vadd.f32 %v1640_v49, %v7371_v37  ;;  %v6395_v15 = vld [vmem:[#allocation8 + $0x24c] ss:$16 sps:$4 sm:$0xff]   ;;  %v6390_v40 = vld [vmem:[#allocation8 + $0x48] ss:$16 sps:$4 sm:$0xff]  }
 0x1f7   : > { %8199 = vst [vmem:[#allocation33_spill] sm:$0xff] %v7441_v27  ;;  %v1642_v53 = vpop.f32.mrf.mxu0  ;;  %4010 = vmatprep.subr.bf16.mxu0 %v6386_v14  ;;  %8201 = vst [vmem:[#allocation35_spill] sm:$0xff] %v7445_v46  ;;  %v1755_v19 = vpop.f32.mrf.mxu1  ;;  %4123 = vmatprep.subr.bf16.mxu1 %v6389_v45  ;;  %v1754_v35 = vadd.f32 %v1753_v12, %v7374_v34  ;;  %v1752_v49 = vadd.f32 %v1751_v38, %v7377_v43  ;;  %v6393_v61 = vld [vmem:[#allocation8 + $0x248] ss:$16 sps:$4 sm:$0xff]   ;;  %v6398_v45 = vld [vmem:[#allocation8 + $0x2c] ss:$16 sps:$4 sm:$0xff]  }
 0x1f8   : > { %8198 = vst [vmem:[#allocation32_spill] sm:$0xff] %v7439_v7  ;;  %8200 = vst [vmem:[#allocation34_spill] sm:$0xff] %v7443_v51  ;;  %v1643_v9 = vadd.f32 %v1642_v53, %v7368_v3  ;;  %3828 = vmatprep.mubr.bf16.mxu0 %v7439_v7  ;;  %v1756_v1 = vadd.f32 %v1755_v19, %v7377_v43  ;;  %3941 = vmatprep.mubr.bf16.mxu1 %v7443_v51  ;;  %v1853_v2 = vmax.f32 %v1641_v23, 0.0  ;;  %v6401_v38 = vld [vmem:[#allocation8 + $0x22c] ss:$16 sps:$4 sm:$0xff]  }
 0x1f9   : > { %v1644_v6 = vpop.f32.mrf.mxu0  ;;  %3829 = vmatmul.mubr.bf16.gmra.mxu0 %v7441_v27  ;;  %v1757_v14 = vpop.f32.mrf.mxu1  ;;  %3942 = vmatmul.mubr.bf16.gmra.mxu1 %v7445_v46  ;;  %v1855_v27 = vmax.f32 %v1754_v35, 0.0 }
 0x1fa   : > { %v1645_v59 = vadd.f32 %v1644_v6, %v7371_v37  ;;  %4011 = vmatpush1.bf16.msra.mxu0 %v6384_v36  ;;  %v1860_v55 = vmax.f32 %v1643_v9, 0.0  ;;  %v1758_v39 = vadd.f32 %v1757_v14, %v7374_v34  ;;  %4124 = vmatpush1.bf16.msra.mxu1 %v6387_v52  ;;  %v1862_v5 = vmax.f32 %v1756_v1, 0.0  ;;  %v6396_v52 = vld [vmem:[#allocation8 + $0x28] ss:$16 sps:$4 sm:$0xff]  }
 0x1fb   : > { %v1648_v12 = vpop.f32.mrf.mxu0  ;;  %4012 = vmatprep.subr.bf16.mxu0 %v6392_v50  ;;  %v1761_v19 = vpop.f32.mrf.mxu1  ;;  %4125 = vmatprep.subr.bf16.mxu1 %v6395_v15  ;;  %v1852_v6 = vmax.f32 %v1639_v4, 0.0  ;;  %v1854_v36 = vmax.f32 %v1752_v49, 0.0  ;;  %v6399_v1 = vld [vmem:[#allocation8 + $0x228] ss:$16 sps:$4 sm:$0xff]   ;;  %v6404_v15 = vld [vmem:[#allocation8 + $0xc] ss:$16 sps:$4 sm:$0xff]  }
 0x1fc   : > { %v1861_v53 = vmax.f32 %v1645_v59, 0.0  ;;  %v1863_v51 = vmax.f32 %v1758_v39, 0.0 }
 0x1fd   : > { %v1650_v46 = vpop.f32.mrf.mxu0  ;;  %v1763_v7 = vpop.f32.mrf.mxu1  ;;  %v7461_v14 = vpack.c.bf16 %v1860_v55, %v1852_v6  ;;  %v7465_v59 = vpack.c.bf16 %v1862_v5, %v1854_v36  ;;  %v1649_v55 = vadd.f32 %v1648_v12, %v7368_v3 }
 0x1fe   : > { %4013 = vmatpush1.bf16.msra.mxu0 %v6390_v40  ;;  %v7459_v9 = vpack.c.bf16 %v1861_v53, %v1853_v2  ;;  %4126 = vmatpush1.bf16.msra.mxu1 %v6393_v61  ;;  %v7463_v23 = vpack.c.bf16 %v1863_v51, %v1855_v27  ;;  %v1651_v4 = vadd.f32 %v1650_v46, %v7371_v37  ;;  %v6407_v40 = vld [vmem:[#allocation8 + $0x20c] ss:$16 sps:$4 sm:$0xff]   ;;  %v6402_v2 = vld [vmem:[#allocation8 + $0x8] ss:$16 sps:$4 sm:$0xff]  }
 0x1ff   : > { %8203 = vst [vmem:[#allocation37_spill] sm:$0xff] %v7461_v14  ;;  %v1652_v50 = vpop.f32.mrf.mxu0  ;;  %4014 = vmatprep.subr.bf16.mxu0 %v6398_v45  ;;  %8205 = vst [vmem:[#allocation39_spill] sm:$0xff] %v7465_v59  ;;  %v1765_v49 = vpop.f32.mrf.mxu1  ;;  %4127 = vmatprep.subr.bf16.mxu1 %v6401_v38  ;;  %v1764_v39 = vadd.f32 %v1763_v7, %v7374_v34  ;;  %v1762_v46 = vadd.f32 %v1761_v19, %v7377_v43  ;;  %v6405_v53 = vld [vmem:[#allocation8 + $0x208] ss:$16 sps:$4 sm:$0xff]   ;;  %v6410_v38 = vld [vmem:[#allocation8 + $0x1ec] ss:$16 sps:$4 sm:$0xff]  }
 0x200   : > { %8202 = vst [vmem:[#allocation36_spill] sm:$0xff] %v7459_v9  ;;  %8204 = vst [vmem:[#allocation38_spill] sm:$0xff] %v7463_v23  ;;  %v1653_v35 = vadd.f32 %v1652_v50, %v7368_v3  ;;  %3838 = vmatprep.mubr.bf16.mxu0 %v7459_v9  ;;  %v1766_v27 = vadd.f32 %v1765_v49, %v7377_v43  ;;  %3951 = vmatprep.mubr.bf16.mxu1 %v7463_v23  ;;  %v1869_v6 = vmax.f32 %v1651_v4, 0.0  ;;  %v6413_v19 = vld [vmem:[#allocation8 + $0x3ec] ss:$16 sps:$4 sm:$0xff]  }
 0x201   : > { %v1654_v51 = vpop.f32.mrf.mxu0  ;;  %3839 = vmatmul.mubr.bf16.gmra.mxu0 %v7461_v14  ;;  %v1767_v45 = vpop.f32.mrf.mxu1  ;;  %3952 = vmatmul.mubr.bf16.gmra.mxu1 %v7465_v59  ;;  %v1871_v14 = vmax.f32 %v1764_v39, 0.0 }
 0x202   : > { %v1655_v61 = vadd.f32 %v1654_v51, %v7371_v37  ;;  %4015 = vmatpush1.bf16.msra.mxu0 %v6396_v52  ;;  %v1876_v5 = vmax.f32 %v1653_v35, 0.0  ;;  %v1768_v12 = vadd.f32 %v1767_v45, %v7374_v34  ;;  %4128 = vmatpush1.bf16.msra.mxu1 %v6399_v1  ;;  %v1878_v36 = vmax.f32 %v1766_v27, 0.0  ;;  %v6408_v1 = vld [vmem:[#allocation8 + $0x1e8] ss:$16 sps:$4 sm:$0xff]  }
 0x203   : > { %v1658_v7 = vpop.f32.mrf.mxu0  ;;  %4016 = vmatprep.subr.bf16.mxu0 %v6404_v15  ;;  %v1771_v49 = vpop.f32.mrf.mxu1  ;;  %4129 = vmatprep.subr.bf16.mxu1 %v6407_v40  ;;  %v1868_v51 = vmax.f32 %v1649_v55, 0.0  ;;  %v1870_v52 = vmax.f32 %v1762_v46, 0.0  ;;  %v6411_v27 = vld [vmem:[#allocation8 + $0x3e8] ss:$16 sps:$4 sm:$0xff]   ;;  %v6416_v40 = vld [vmem:[#allocation8 + $0x1cc] ss:$16 sps:$4 sm:$0xff]  }
 0x204   : > { %v1877_v50 = vmax.f32 %v1655_v61, 0.0  ;;  %v1879_v23 = vmax.f32 %v1768_v12, 0.0 }
 0x205   : > { %v1660_v59 = vpop.f32.mrf.mxu0  ;;  %v1773_v9 = vpop.f32.mrf.mxu1  ;;  %v7481_v45 = vpack.c.bf16 %v1876_v5, %v1868_v51  ;;  %v7485_v61 = vpack.c.bf16 %v1878_v36, %v1870_v52  ;;  %v1659_v5 = vadd.f32 %v1658_v7, %v7368_v3 }
 0x206   : > { %4017 = vmatpush1.bf16.msra.mxu0 %v6402_v2  ;;  %v7479_v35 = vpack.c.bf16 %v1877_v50, %v1869_v6  ;;  %4130 = vmatpush1.bf16.msra.mxu1 %v6405_v53  ;;  %v7483_v4 = vpack.c.bf16 %v1879_v23, %v1871_v14  ;;  %v1661_v55 = vadd.f32 %v1660_v59, %v7371_v37  ;;  %v6419_v2 = vld [vmem:[#allocation8 + $0x3cc] ss:$16 sps:$4 sm:$0xff]   ;;  %v6414_v6 = vld [vmem:[#allocation8 + $0x1c8] ss:$16 sps:$4 sm:$0xff]  }
 0x207   : > { %8207 = vst [vmem:[#allocation41_spill] sm:$0xff] %v7481_v45  ;;  %v1662_v15 = vpop.f32.mrf.mxu0  ;;  %4018 = vmatprep.subr.bf16.mxu0 %v6410_v38  ;;  %8209 = vst [vmem:[#allocation43_spill] sm:$0xff] %v7485_v61  ;;  %v1775_v46 = vpop.f32.mrf.mxu1  ;;  %4131 = vmatprep.subr.bf16.mxu1 %v6413_v19  ;;  %v1774_v12 = vadd.f32 %v1773_v9, %v7374_v34  ;;  %v1772_v59 = vadd.f32 %v1771_v49, %v7377_v43  ;;  %v6417_v50 = vld [vmem:[#allocation8 + $0x3c8] ss:$16 sps:$4 sm:$0xff]   ;;  %v6422_v19 = vld [vmem:[#allocation8 + $0x1ac] ss:$16 sps:$4 sm:$0xff]  }
 0x208   : > { %8206 = vst [vmem:[#allocation40_spill] sm:$0xff] %v7479_v35  ;;  %8208 = vst [vmem:[#allocation42_spill] sm:$0xff] %v7483_v4  ;;  %v1663_v39 = vadd.f32 %v1662_v15, %v7368_v3  ;;  %3848 = vmatprep.mubr.bf16.mxu0 %v7479_v35  ;;  %v1776_v14 = vadd.f32 %v1775_v46, %v7377_v43  ;;  %3961 = vmatprep.mubr.bf16.mxu1 %v7483_v4  ;;  %v1885_v51 = vmax.f32 %v1661_v55, 0.0  ;;  %v6425_v49 = vld [vmem:[#allocation8 + $0x3ac] ss:$16 sps:$4 sm:$0xff]  }
 0x209   : > { %v1664_v23 = vpop.f32.mrf.mxu0  ;;  %3849 = vmatmul.mubr.bf16.gmra.mxu0 %v7481_v45  ;;  %v1777_v38 = vpop.f32.mrf.mxu1  ;;  %3962 = vmatmul.mubr.bf16.gmra.mxu1 %v7485_v61  ;;  %v1887_v45 = vmax.f32 %v1774_v12, 0.0 }
 0x20a   : > { %v1665_v53 = vadd.f32 %v1664_v23, %v7371_v37  ;;  %4019 = vmatpush2.bf16.msra.mxu0 %v6408_v1  ;;  %v1892_v36 = vmax.f32 %v1663_v39, 0.0  ;;  %v1778_v7 = vadd.f32 %v1777_v38, %v7374_v34  ;;  %4132 = vmatpush2.bf16.msra.mxu1 %v6411_v27  ;;  %v1894_v52 = vmax.f32 %v1776_v14, 0.0  ;;  %v6420_v27 = vld [vmem:[#allocation8 + $0x1a8] ss:$16 sps:$4 sm:$0xff]  }
 0x20b   : > { %v1668_v9 = vpop.f32.mrf.mxu0  ;;  %4020 = vmatprep.subr.bf16.mxu0 %v6416_v40  ;;  %v1781_v46 = vpop.f32.mrf.mxu1  ;;  %4133 = vmatprep.subr.bf16.mxu1 %v6419_v2  ;;  %v1884_v23 = vmax.f32 %v1659_v5, 0.0  ;;  %v1886_v1 = vmax.f32 %v1772_v59, 0.0  ;;  %v6423_v14 = vld [vmem:[#allocation8 + $0x3a8] ss:$16 sps:$4 sm:$0xff]   ;;  %v6428_v2 = vld [vmem:[#allocation8 + $0x18c] ss:$16 sps:$4 sm:$0xff]  }
 0x20c   : > { %v1893_v15 = vmax.f32 %v1665_v53, 0.0  ;;  %v1895_v4 = vmax.f32 %v1778_v7, 0.0 }
 0x20d   : > { %v1670_v61 = vpop.f32.mrf.mxu0  ;;  %v1783_v35 = vpop.f32.mrf.mxu1  ;;  %v7501_v38 = vpack.c.bf16 %v1892_v36, %v1884_v23  ;;  %v7505_v53 = vpack.c.bf16 %v1894_v52, %v1886_v1  ;;  %v1669_v36 = vadd.f32 %v1668_v9, %v7368_v3 }
 0x20e   : > { %4021 = vmatpush2.bf16.msra.mxu0 %v6414_v6  ;;  %v7499_v39 = vpack.c.bf16 %v1893_v15, %v1885_v51  ;;  %4134 = vmatpush2.bf16.msra.mxu1 %v6417_v50  ;;  %v7503_v55 = vpack.c.bf16 %v1895_v4, %v1887_v45  ;;  %v1671_v5 = vadd.f32 %v1670_v61, %v7371_v37  ;;  %v6431_v6 = vld [vmem:[#allocation8 + $0x38c] ss:$16 sps:$4 sm:$0xff]   ;;  %v6426_v51 = vld [vmem:[#allocation8 + $0x188] ss:$16 sps:$4 sm:$0xff]  }
 0x20f   : > { %8211 = vst [vmem:[#allocation45_spill] sm:$0xff] %v7501_v38  ;;  %v1672_v40 = vpop.f32.mrf.mxu0  ;;  %4022 = vmatprep.subr.bf16.mxu0 %v6422_v19  ;;  %8213 = vst [vmem:[#allocation47_spill] sm:$0xff] %v7505_v53  ;;  %v1785_v59 = vpop.f32.mrf.mxu1  ;;  %4135 = vmatprep.subr.bf16.mxu1 %v6425_v49  ;;  %v1784_v7 = vadd.f32 %v1783_v35, %v7374_v34  ;;  %v1782_v61 = vadd.f32 %v1781_v46, %v7377_v43  ;;  %v6429_v15 = vld [vmem:[#allocation8 + $0x388] ss:$16 sps:$4 sm:$0xff]   ;;  %v6434_v49 = vld [vmem:[#allocation8 + $0x16c] ss:$16 sps:$4 sm:$0xff]  }
 0x210   : > { %8210 = vst [vmem:[#allocation44_spill] sm:$0xff] %v7499_v39  ;;  %8212 = vst [vmem:[#allocation46_spill] sm:$0xff] %v7503_v55  ;;  %v1673_v12 = vadd.f32 %v1672_v40, %v7368_v3  ;;  %3858 = vmatprep.mubr.bf16.mxu0 %v7499_v39  ;;  %v1786_v45 = vadd.f32 %v1785_v59, %v7377_v43  ;;  %3971 = vmatprep.mubr.bf16.mxu1 %v7503_v55  ;;  %v1901_v23 = vmax.f32 %v1671_v5, 0.0  ;;  %v6437_v46 = vld [vmem:[#allocation8 + $0x36c] ss:$16 sps:$4 sm:$0xff]  }
 0x211   : > { %v1674_v4 = vpop.f32.mrf.mxu0  ;;  %3859 = vmatmul.mubr.bf16.gmra.mxu0 %v7501_v38  ;;  %v1787_v19 = vpop.f32.mrf.mxu1  ;;  %3972 = vmatmul.mubr.bf16.gmra.mxu1 %v7505_v53  ;;  %v1903_v38 = vmax.f32 %v1784_v7, 0.0 }
 0x212   : > { %v1675_v50 = vadd.f32 %v1674_v4, %v7371_v37  ;;  %4023 = vmatpush2.bf16.msra.mxu0 %v6420_v27  ;;  %v1908_v52 = vmax.f32 %v1673_v12, 0.0  ;;  %v1788_v9 = vadd.f32 %v1787_v19, %v7374_v34  ;;  %4136 = vmatpush2.bf16.msra.mxu1 %v6423_v14  ;;  %v1910_v1 = vmax.f32 %v1786_v45, 0.0  ;;  %v6432_v14 = vld [vmem:[#allocation8 + $0x168] ss:$16 sps:$4 sm:$0xff]  }
 0x213   : > { %v1678_v35 = vpop.f32.mrf.mxu0  ;;  %4024 = vmatprep.subr.bf16.mxu0 %v6428_v2  ;;  %v1791_v59 = vpop.f32.mrf.mxu1  ;;  %4137 = vmatprep.subr.bf16.mxu1 %v6431_v6  ;;  %v1900_v4 = vmax.f32 %v1669_v36, 0.0  ;;  %v1902_v27 = vmax.f32 %v1782_v61, 0.0  ;;  %v6435_v45 = vld [vmem:[#allocation8 + $0x368] ss:$16 sps:$4 sm:$0xff]   ;;  %v6440_v6 = vld [vmem:[#allocation8 + $0x14c] ss:$16 sps:$4 sm:$0xff]  }
 0x214   : > { %v1909_v40 = vmax.f32 %v1675_v50, 0.0  ;;  %v1911_v55 = vmax.f32 %v1788_v9, 0.0 }
 0x215   : > { %v1680_v53 = vpop.f32.mrf.mxu0  ;;  %v1793_v39 = vpop.f32.mrf.mxu1  ;;  %v7521_v19 = vpack.c.bf16 %v1908_v52, %v1900_v4  ;;  %v7525_v50 = vpack.c.bf16 %v1910_v1, %v1902_v27  ;;  %v1679_v52 = vadd.f32 %v1678_v35, %v7368_v3  ;;  %v6446_v35 = vld [vmem:[#allocation8 + $0x12c] ss:$16 sps:$4 sm:$0xff]  }
 0x216   : > { %4025 = vmatpush2.bf16.msra.mxu0 %v6426_v51  ;;  %v7519_v12 = vpack.c.bf16 %v1909_v40, %v1901_v23  ;;  %4138 = vmatpush2.bf16.msra.mxu1 %v6429_v15  ;;  %v7523_v5 = vpack.c.bf16 %v1911_v55, %v1903_v38  ;;  %v1681_v36 = vadd.f32 %v1680_v53, %v7371_v37  ;;  %v6443_v51 = vld [vmem:[#allocation8 + $0x34c] ss:$16 sps:$4 sm:$0xff]   ;;  %v6438_v23 = vld [vmem:[#allocation8 + $0x148] ss:$16 sps:$4 sm:$0xff]  }
 0x217   : > { %v1682_v2 = vpop.f32.mrf.mxu0  ;;  %4026 = vmatprep.subr.bf16.mxu0 %v6434_v49  ;;  %v1795_v61 = vpop.f32.mrf.mxu1  ;;  %4139 = vmatprep.subr.bf16.mxu1 %v6437_v46  ;;  %v1794_v9 = vadd.f32 %v1793_v39, %v7374_v34  ;;  %v1792_v53 = vadd.f32 %v1791_v59, %v7377_v43  ;;  %v6441_v39 = vld [vmem:[#allocation8 + $0x348] ss:$16 sps:$4 sm:$0xff]   ;;  %v6449_v27 = vld [vmem:[#allocation8 + $0x32c] ss:$16 sps:$4 sm:$0xff]  }
 0x218   : > { %v1683_v7 = vadd.f32 %v1682_v2, %v7368_v3  ;;  %3868 = vmatprep.mubr.bf16.mxu0 %v7519_v12  ;;  %v1796_v38 = vadd.f32 %v1795_v61, %v7377_v43  ;;  %3981 = vmatprep.mubr.bf16.mxu1 %v7523_v5  ;;  %v1917_v40 = vmax.f32 %v1681_v36, 0.0  ;;  %v1916_v43 = vmax.f32 %v1679_v52, 0.0  ;;  %v6452_v36 = vld [vmem:[#allocation8 + $0x10c] ss:$16 sps:$4 sm:$0xff]   ;;  %v6450_v52 = vld [vmem:[#allocation8 + $0x108] ss:$16 sps:$4 sm:$0xff]  }
 0x219   : > { %v1684_v55 = vpop.f32.mrf.mxu0  ;;  %3869 = vmatmul.mubr.bf16.gmra.mxu0 %v7521_v19  ;;  %v1797_v49 = vpop.f32.mrf.mxu1  ;;  %3982 = vmatmul.mubr.bf16.gmra.mxu1 %v7525_v50  ;;  %v1919_v59 = vmax.f32 %v1794_v9, 0.0  ;;  %v1918_v2 = vmax.f32 %v1792_v53, 0.0  ;;  %v6453_v9 = vld [vmem:[#allocation8 + $0x308] ss:$16 sps:$4 sm:$0xff]  }
 0x21a   : > { %v1685_v15 = vadd.f32 %v1684_v55, %v7371_v37  ;;  %4027 = vmatpush2.bf16.msra.mxu0 %v6432_v14  ;;  %v1924_v1 = vmax.f32 %v1683_v7, 0.0  ;;  %v1798_v3 = vadd.f32 %v1797_v49, %v7374_v34  ;;  %4140 = vmatpush2.bf16.msra.mxu1 %v6435_v45  ;;  %v1926_v46 = vmax.f32 %v1796_v38, 0.0  ;;  %v6444_v14 = vld [vmem:[#allocation8 + $0x128] ss:$16 sps:$4 sm:$0xff]   ;;  %v6458_v38 = vld [vmem:[#allocation8 + $0x4ec] ss:$16 sps:$4 sm:$0xff]  }
 0x21b   : > { %4028 = vmatprep.subr.bf16.mxu0 %v6440_v6  ;;  %4141 = vmatprep.subr.bf16.mxu1 %v6443_v51  ;;  %v6447_v45 = vld [vmem:[#allocation8 + $0x328] ss:$16 sps:$4 sm:$0xff]   ;;  %v6455_v51 = vld [vmem:[#allocation8 + $0x30c] ss:$16 sps:$4 sm:$0xff]  }
 0x21c   : > { %v1925_v4 = vmax.f32 %v1685_v15, 0.0  ;;  %v1927_v37 = vmax.f32 %v1798_v3, 0.0  ;;  %v7541_v7 = vpack.c.bf16 %v1924_v1, %v1916_v43  ;;  %v7545_v6 = vpack.c.bf16 %v1926_v46, %v1918_v2  ;;  %v6461_v55 = vld [vmem:[#allocation8 + $0x6ec] ss:$16 sps:$4 sm:$0xff]   ;;  %v6456_v53 = vld [vmem:[#allocation8 + $0x4e8] ss:$16 sps:$4 sm:$0xff]  }
 0x21d   : > { %v6459_v15 = vld [vmem:[#allocation8 + $0x6e8] ss:$16 sps:$4 sm:$0xff]   ;;  %v6464_v49 = vld [vmem:[#allocation8 + $0x4cc] ss:$16 sps:$4 sm:$0xff]  }
 0x21e   : > { %4029 = vmatpush2.bf16.msra.mxu0 %v6438_v23  ;;  %v7539_v61 = vpack.c.bf16 %v1925_v4, %v1917_v40  ;;  %4142 = vmatpush2.bf16.msra.mxu1 %v6441_v39  ;;  %v7543_v34 = vpack.c.bf16 %v1927_v37, %v1919_v59  ;;  %v6467_v23 = vld [vmem:[#allocation8 + $0x6cc] ss:$16 sps:$4 sm:$0xff]   ;;  %v6468_v39 = vld [vmem:[#allocation8 + $0x4a8] ss:$16 sps:$4 sm:$0xff]  }
 0x21f   : > { %4030 = vmatprep.subr.bf16.mxu0 %v6446_v35  ;;  %4143 = vmatprep.subr.bf16.mxu1 %v6449_v27  ;;  %v6470_v1 = vld [vmem:[#allocation8 + $0x4ac] ss:$16 sps:$4 sm:$0xff]   ;;  %v6480_v4 = vld [vmem:[#allocation8 + $0x468] ss:$16 sps:$4 sm:$0xff]  }
 0x220   : > { %3878 = vmatprep.mubr.bf16.mxu0 %v7539_v61  ;;  %3991 = vmatprep.mubr.bf16.mxu1 %v7543_v34  ;;  %v6473_v3 = vld [vmem:[#allocation8 + $0x6ac] ss:$16 sps:$4 sm:$0xff]   ;;  %v6492_v37 = vld [vmem:[#allocation8 + $0x428] ss:$16 sps:$4 sm:$0xff]  }
 0x221   : > { %3879 = vmatmul.mubr.bf16.gmra.mxu0 %v7541_v7  ;;  %3992 = vmatmul.mubr.bf16.gmra.mxu1 %v7545_v6  ;;  %v6476_v35 = vld [vmem:[#allocation8 + $0x48c] ss:$16 sps:$4 sm:$0xff]  }
 0x222   : > { %4031 = vmatpush2.bf16.msra.mxu0 %v6444_v14  ;;  %4034 = vmatprep.mubr.bf16.mxu0 %v7223_v8  ;;  %v6462_v8 = vld [vmem:[#allocation8 + $0x4c8] ss:$16 sps:$4 sm:$0xff]   ;;  %v6482_v40 = vld [vmem:[#allocation8 + $0x46c] ss:$16 sps:$4 sm:$0xff]  }
 0x223   : > { %4144 = vmatpush2.bf16.msra.mxu1 %v6447_v45  ;;  %4147 = vmatprep.mubr.bf16.mxu1 %v7227_v13  ;;  %v6465_v13 = vld [vmem:[#allocation8 + $0x6c8] ss:$16 sps:$4 sm:$0xff]   ;;  %v6485_v46 = vld [vmem:[#allocation8 + $0x66c] ss:$16 sps:$4 sm:$0xff]  }
 0x224   : > { %4032 = vmatprep.subr.bf16.mxu0 %v6452_v36  ;;  %4145 = vmatprep.subr.bf16.mxu1 %v6455_v51  ;;  %v6488_v27 = vld [vmem:[#allocation8 + $0x44c] ss:$16 sps:$4 sm:$0xff]   ;;  %v6504_v36 = vld [vmem:[#allocation8 + $0x5e8] ss:$16 sps:$4 sm:$0xff]  }
 0x225   : > { %v6494_v43 = vld [vmem:[#allocation8 + $0x42c] ss:$16 sps:$4 sm:$0xff]  }
 0x226   : > { %4033 = vmatpush2.bf16.msra.mxu0 %v6450_v52  ;;  %v6497_v59 = vld [vmem:[#allocation8 + $0x62c] ss:$16 sps:$4 sm:$0xff]  }
 0x227   : > { %4146 = vmatpush2.bf16.msra.mxu1 %v6453_v9  ;;  %4228 = vmatprep.subr.bf16.mxu0 %v6458_v38  ;;  %v6500_v2 = vld [vmem:[#allocation8 + $0x40c] ss:$16 sps:$4 sm:$0xff]   ;;  %v6516_v38 = vld [vmem:[#allocation8 + $0x5a8] ss:$16 sps:$4 sm:$0xff]  }
 0x228   : > { %4341 = vmatprep.subr.bf16.mxu1 %v6461_v55  ;;  %v6506_v14 = vld [vmem:[#allocation8 + $0x5ec] ss:$16 sps:$4 sm:$0xff]  }
 0x229   : > { %4035 = vmatmul.mubr.bf16.vlgmr.msra.gmra.mxu0 %v7225_v11  ;;  %v6471_v11 = vld [vmem:[#allocation8 + $0x6a8] ss:$16 sps:$4 sm:$0xff]   ;;  %v6509_v45 = vld [vmem:[#allocation8 + $0x7ec] ss:$16 sps:$4 sm:$0xff]  }
 0x22a   : > { %4148 = vmatmul.mubr.bf16.vlgmr.msra.gmra.mxu1 %v7229_v16  ;;  %4044 = vmatprep.mubr.bf16.mxu0 %v7243_v33  ;;  %v6479_v16 = vld [vmem:[#allocation8 + $0x68c] ss:$16 sps:$4 sm:$0xff]   ;;  %v6474_v33 = vld [vmem:[#allocation8 + $0x488] ss:$16 sps:$4 sm:$0xff]  }
 0x22b   : > { %4157 = vmatprep.mubr.bf16.mxu1 %v7247_v60  ;;  %4229 = vmatpush1.bf16.msra.mxu0 %v6456_v53  ;;  %v6477_v60 = vld [vmem:[#allocation8 + $0x688] ss:$16 sps:$4 sm:$0xff]   ;;  %v6512_v51 = vld [vmem:[#allocation8 + $0x5cc] ss:$16 sps:$4 sm:$0xff]  }
 0x22c   : > { %4342 = vmatpush1.bf16.msra.mxu1 %v6459_v15  ;;  %4230 = vmatprep.subr.bf16.mxu0 %v6464_v49  ;;  %v6518_v52 = vld [vmem:[#allocation8 + $0x5ac] ss:$16 sps:$4 sm:$0xff]   ;;  %v6528_v49 = vld [vmem:[#allocation8 + $0x568] ss:$16 sps:$4 sm:$0xff]  }
 0x22d   : > { %4343 = vmatprep.subr.bf16.mxu1 %v6467_v23  ;;  %v6521_v9 = vld [vmem:[#allocation8 + $0x7ac] ss:$16 sps:$4 sm:$0xff]  }
 0x22e   : > { %v6524_v55 = vld [vmem:[#allocation8 + $0x58c] ss:$16 sps:$4 sm:$0xff]  }
 0x22f   : > { %4231 = vmatpush1.bf16.msra.mxu0 %v6462_v8  ;;  %v6530_v53 = vld [vmem:[#allocation8 + $0x56c] ss:$16 sps:$4 sm:$0xff]  }
 0x230   : > { %4344 = vmatpush1.bf16.msra.mxu1 %v6465_v13  ;;  %4232 = vmatprep.subr.bf16.mxu0 %v6470_v1  ;;  %v6533_v15 = vld [vmem:[#allocation8 + $0x76c] ss:$16 sps:$4 sm:$0xff]   ;;  %v6540_v1 = vld [vmem:[#allocation8 + $0x528] ss:$16 sps:$4 sm:$0xff]  }
 0x231   : > { %4045 = vmatmul.mubr.bf16.gmra.mxu0 %v7245_v56  ;;  %4345 = vmatprep.subr.bf16.mxu1 %v6473_v3  ;;  %v6483_v56 = vld [vmem:[#allocation8 + $0x668] ss:$16 sps:$4 sm:$0xff]   ;;  %v6536_v23 = vld [vmem:[#allocation8 + $0x54c] ss:$16 sps:$4 sm:$0xff]  }
 0x232   : > { %4158 = vmatmul.mubr.bf16.gmra.mxu1 %v7249_v41  ;;  %4054 = vmatprep.mubr.bf16.mxu0 %v7263_v0  ;;  %v6491_v41 = vld [vmem:[#allocation8 + $0x64c] ss:$16 sps:$4 sm:$0xff]   ;;  %v6486_v0 = vld [vmem:[#allocation8 + $0x448] ss:$16 sps:$4 sm:$0xff]  }
 0x233   : > { %4167 = vmatprep.mubr.bf16.mxu1 %v7267_v42  ;;  %4233 = vmatpush1.bf16.msra.mxu0 %v6468_v39  ;;  %v6489_v42 = vld [vmem:[#allocation8 + $0x648] ss:$16 sps:$4 sm:$0xff]   ;;  %v6542_v8 = vld [vmem:[#allocation8 + $0x52c] ss:$16 sps:$4 sm:$0xff]  }
 0x234   : > { %4346 = vmatpush1.bf16.msra.mxu1 %v6471_v11  ;;  %4234 = vmatprep.subr.bf16.mxu0 %v6476_v35  ;;  %v6545_v13 = vld [vmem:[#allocation8 + $0x72c] ss:$16 sps:$4 sm:$0xff]   ;;  %v6546_v39 = vld [vmem:[#allocation8 + $0x508] ss:$16 sps:$4 sm:$0xff]  }
 0x235   : > { %4347 = vmatprep.subr.bf16.mxu1 %v6479_v16  ;;  %v6548_v3 = vld [vmem:[#allocation8 + $0x50c] ss:$16 sps:$4 sm:$0xff]   ;;  %v7588_v11 = vld [vmem:[%s8123_s4] sm:$0xf] }
 0x236   : > { %v6549_v35 = vld [vmem:[#allocation8 + $0x708] ss:$16 sps:$4 sm:$0xff]  }
 0x237   : > { %4235 = vmatpush1.bf16.msra.mxu0 %v6474_v33  ;;  %v6552_v16 = vld [vmem:[#allocation10 + $0x78] sm:$0xff]  }
 0x238   : > { %4348 = vmatpush1.bf16.msra.mxu1 %v6477_v60  ;;  %4236 = vmatprep.subr.bf16.mxu0 %v6482_v40 }
 0x239   : > { %4055 = vmatmul.mubr.bf16.gmra.mxu0 %v7265_v32  ;;  %4349 = vmatprep.subr.bf16.mxu1 %v6485_v46  ;;  %v6495_v32 = vld [vmem:[#allocation8 + $0x628] ss:$16 sps:$4 sm:$0xff]  }
 0x23a   : > { %4168 = vmatmul.mubr.bf16.gmra.mxu1 %v7269_v48  ;;  %4064 = vmatprep.mubr.bf16.mxu0 %v7283_v22  ;;  %v6503_v48 = vld [vmem:[#allocation8 + $0x60c] ss:$16 sps:$4 sm:$0xff]   ;;  %v6498_v22 = vld [vmem:[#allocation8 + $0x408] ss:$16 sps:$4 sm:$0xff]  }
 0x23b   : > { %4177 = vmatprep.mubr.bf16.mxu1 %v7287_v26  ;;  %4237 = vmatpush1.bf16.msra.mxu0 %v6480_v4  ;;  %v6501_v26 = vld [vmem:[#allocation8 + $0x608] ss:$16 sps:$4 sm:$0xff]  }
 0x23c   : > { %4350 = vmatpush1.bf16.msra.mxu1 %v6483_v56  ;;  %4238 = vmatprep.subr.bf16.mxu0 %v6488_v27  ;;  %v6553_v46 = vld [vmem:[#allocation10 + $0x38] sm:$0xff]   ;;  %v6554_v56 = vld [vmem:[#allocation10 + $0x70] sm:$0xff]  }
 0x23d   : > { %4351 = vmatprep.subr.bf16.mxu1 %v6491_v41 }
 0x23f   : > { %4239 = vmatpush1.bf16.msra.mxu0 %v6486_v0  ;;  %v8220_v0 = vld [vmem:[#allocation25_spill] sm:$0xff] }
 0x240   : > { %4352 = vmatpush1.bf16.msra.mxu1 %v6489_v42  ;;  %4240 = vmatprep.subr.bf16.mxu0 %v6494_v43  ;;  %v8221_v42 = vld [vmem:[#allocation27_spill] sm:$0xff]  ;;  %v8222_v43 = vld [vmem:[#allocation28_spill] sm:$0xff] }
 0x241   : > { %4065 = vmatmul.mubr.bf16.gmra.mxu0 %v7285_v44  ;;  %4353 = vmatprep.subr.bf16.mxu1 %v6497_v59  ;;  %v6507_v44 = vld [vmem:[#allocation8 + $0x7e8] ss:$16 sps:$4 sm:$0xff]  }
 0x242   : > { %4178 = vmatmul.mubr.bf16.gmra.mxu1 %v7289_v29  ;;  %4074 = vmatprep.mubr.bf16.mxu0 %v7303_v17  ;;  %v6515_v29 = vld [vmem:[#allocation8 + $0x7cc] ss:$16 sps:$4 sm:$0xff]   ;;  %v6510_v17 = vld [vmem:[#allocation8 + $0x5c8] ss:$16 sps:$4 sm:$0xff]  }
 0x243   : > { %4187 = vmatprep.mubr.bf16.mxu1 %v7307_v20  ;;  %4241 = vmatpush1.bf16.msra.mxu0 %v6492_v37  ;;  %v6513_v20 = vld [vmem:[#allocation8 + $0x7c8] ss:$16 sps:$4 sm:$0xff]  }
 0x244   : > { %4354 = vmatpush1.bf16.msra.mxu1 %v6495_v32  ;;  %4242 = vmatprep.subr.bf16.mxu0 %v6500_v2  ;;  %v8223_v32 = vld [vmem:[#allocation30_spill] sm:$0xff] }
 0x245   : > { %4355 = vmatprep.subr.bf16.mxu1 %v6503_v48 }
 0x247   : > { %4243 = vmatpush1.bf16.msra.mxu0 %v6498_v22  ;;  %v6555_v22 = vld [vmem:[#allocation10 + $0x30] sm:$0xff]  }
 0x248   : > { %4356 = vmatpush1.bf16.msra.mxu1 %v6501_v26  ;;  %4244 = vmatprep.subr.bf16.mxu0 %v6506_v14  ;;  %v6556_v14 = vld [vmem:[#allocation10 + $0x68] sm:$0xff]  }
 0x249   : > { %4075 = vmatmul.mubr.bf16.gmra.mxu0 %v7305_v18  ;;  %4357 = vmatprep.subr.bf16.mxu1 %v6509_v45  ;;  %v6519_v18 = vld [vmem:[#allocation8 + $0x7a8] ss:$16 sps:$4 sm:$0xff]  }
 0x24a   : > { %4188 = vmatmul.mubr.bf16.gmra.mxu1 %v7309_v25  ;;  %4084 = vmatprep.mubr.bf16.mxu0 %v7323_v10  ;;  %v6527_v25 = vld [vmem:[#allocation8 + $0x78c] ss:$16 sps:$4 sm:$0xff]   ;;  %v6522_v10 = vld [vmem:[#allocation8 + $0x588] ss:$16 sps:$4 sm:$0xff]  }
 0x24b   : > { %4197 = vmatprep.mubr.bf16.mxu1 %v7327_v21  ;;  %4245 = vmatpush2.bf16.msra.mxu0 %v6504_v36  ;;  %v6525_v21 = vld [vmem:[#allocation8 + $0x788] ss:$16 sps:$4 sm:$0xff]  }
 0x24c   : > { %4358 = vmatpush2.bf16.msra.mxu1 %v6507_v44  ;;  %4246 = vmatprep.subr.bf16.mxu0 %v6512_v51 }
 0x24d   : > { %4359 = vmatprep.subr.bf16.mxu1 %v6515_v29  ;;  %v6557_v29 = vld [vmem:[#allocation10 + $0x28] sm:$0xff]  }
 0x24f   : > { %4247 = vmatpush2.bf16.msra.mxu0 %v6510_v17 }
 0x250   : > { %4360 = vmatpush2.bf16.msra.mxu1 %v6513_v20  ;;  %4248 = vmatprep.subr.bf16.mxu0 %v6518_v52  ;;  %v6558_v20 = vld [vmem:[#allocation10 + $0x60] sm:$0xff]  }
 0x251   : > { %4085 = vmatmul.mubr.bf16.gmra.mxu0 %v7325_v24  ;;  %4361 = vmatprep.subr.bf16.mxu1 %v6521_v9  ;;  %v6531_v24 = vld [vmem:[#allocation8 + $0x768] ss:$16 sps:$4 sm:$0xff]  }
 0x252   : > { %4198 = vmatmul.mubr.bf16.gmra.mxu1 %v7329_v28  ;;  %4094 = vmatprep.mubr.bf16.mxu0 %v7343_v57  ;;  %v6539_v28 = vld [vmem:[#allocation8 + $0x74c] ss:$16 sps:$4 sm:$0xff]   ;;  %v6534_v57 = vld [vmem:[#allocation8 + $0x548] ss:$16 sps:$4 sm:$0xff]  }
 0x253   : > { %4207 = vmatprep.mubr.bf16.mxu1 %v7347_v30  ;;  %4249 = vmatpush2.bf16.msra.mxu0 %v6516_v38  ;;  %v6537_v30 = vld [vmem:[#allocation8 + $0x748] ss:$16 sps:$4 sm:$0xff]   ;;  %v8224_v38 = vld [vmem:[#allocation29_spill] sm:$0xff] }
 0x254   : > { %4362 = vmatpush2.bf16.msra.mxu1 %v6519_v18  ;;  %4250 = vmatprep.subr.bf16.mxu0 %v6524_v55  ;;  %v8225_v18 = vld [vmem:[#allocation31_spill] sm:$0xff]  ;;  %v8226_v55 = vld [vmem:[#allocation32_spill] sm:$0xff] }
 0x255   : > { %4363 = vmatprep.subr.bf16.mxu1 %v6527_v25 }
 0x257   : > { %4251 = vmatpush2.bf16.msra.mxu0 %v6522_v10 }
 0x258   : > { %4364 = vmatpush2.bf16.msra.mxu1 %v6525_v21  ;;  %4252 = vmatprep.subr.bf16.mxu0 %v6530_v53  ;;  %v8227_v21 = vld [vmem:[#allocation34_spill] sm:$0xff] }
 0x259   : > { %4095 = vmatmul.mubr.bf16.gmra.mxu0 %v7345_v31  ;;  %4365 = vmatprep.subr.bf16.mxu1 %v6533_v15  ;;  %v6543_v31 = vld [vmem:[#allocation8 + $0x728] ss:$16 sps:$4 sm:$0xff]  }
 0x25a   : > { %4208 = vmatmul.mubr.bf16.gmra.mxu1 %v7350_v47  ;;  %4104 = vmatprep.mubr.bf16.mxu0 %v7379_v62  ;;  %v6551_v47 = vld [vmem:[#allocation8 + $0x70c] ss:$16 sps:$4 sm:$0xff]  }
 0x25b   : > { %4217 = vmatprep.mubr.bf16.mxu1 %v7383_v58  ;;  %4253 = vmatpush2.bf16.msra.mxu0 %v6528_v49  ;;  %v8214_v62 = vld [vmem:[#allocation24_spill] sm:$0xff]  ;;  %v8215_v58 = vld [vmem:[#allocation26_spill] sm:$0xff]  ;;  %v6559_v49 = vld [vmem:[#allocation10 + $0x20] sm:$0xff]  }
 0x25c   : > { %4366 = vmatpush2.bf16.msra.mxu1 %v6531_v24  ;;  %4254 = vmatprep.subr.bf16.mxu0 %v6536_v23  ;;  %8216 = vst [vmem:[#allocation24_spill] sm:$0xff] %v7588_v11  ;;  %v6560_v23 = vld [vmem:[#allocation10 + $0x58] sm:$0xff]  }
 0x25d   : > { %4367 = vmatprep.subr.bf16.mxu1 %v6539_v28 }
 0x25f   : > { %4255 = vmatpush2.bf16.msra.mxu0 %v6534_v57 }
 0x260   : > { %4368 = vmatpush2.bf16.msra.mxu1 %v6537_v30  ;;  %4256 = vmatprep.subr.bf16.mxu0 %v6542_v8 }
 0x261   : > { %4105 = vmatmul.mubr.bf16.gmra.mxu0 %v7381_v54  ;;  %4369 = vmatprep.subr.bf16.mxu1 %v6545_v13  ;;  %v8217_v54 = vld [vmem:[#allocation23_spill] sm:$0xff]  ;;  %v6561_v13 = vld [vmem:[#allocation10 + $0x18] sm:$0xff]  }
 0x262   : > { %4218 = vmatmul.mubr.bf16.gmra.mxu1 %v7385_v63  ;;  %4260 = vmatprep.mubr.bf16.mxu0 %v8214_v62  ;;  %v8218_v33 = vsub.s32 0, %v8217_v54  ;;  %v8219_v60 = vsub.s32 1, %v8217_v54  ;;  %v8228_v62 = vld [vmem:[#allocation33_spill] sm:$0xff]  ;;  %v6580_v54 = vld [vmem:[#allocation10 + $0xc8] sm:$0xff]  }
 0x263   : > { %4257 = vmatpush2.bf16.msra.mxu0 %v6540_v1  ;;  %4373 = vmatprep.mubr.bf16.mxu1 %v8215_v58  ;;  %v8229_v58 = vld [vmem:[#allocation35_spill] sm:$0xff] }
 0x264   : > { %4370 = vmatpush2.bf16.msra.mxu1 %v6543_v31  ;;  %4258 = vmatprep.subr.bf16.mxu0 %v6548_v3  ;;  %v7593_v63 = vrot.slane %v7588_v11, %v8218_v33  ;;  %v7598_v40 = vrot.slane %v7588_v11, %v8219_v60  ;;  %v6562_v31 = vld [vmem:[#allocation10 + $0x50] sm:$0xff]   ;;  %v8231_v33 = vld [vmem:[#allocation38_spill] sm:$0xff] }
 0x265   : > { %4371 = vmatprep.subr.bf16.mxu1 %v6551_v47 }
 0x267   : > { %4259 = vmatpush2.bf16.msra.mxu0 %v6546_v39  ;;  %v8230_v39 = vld [vmem:[#allocation36_spill] sm:$0xff] }
 0x268   : > { %4372 = vmatpush2.bf16.msra.mxu1 %v6549_v35  ;;  %5852 = vmatprep.subr.bf16.mxu0 %v6552_v16 }
 0x269   : > { %v3584_v4 = vpop.f32.mrf.mxu0  ;;  %v3697_v41 = vpop.f32.mrf.mxu1 }
 0x26a   : > { %v3585_v27 = vadd.f32 %v3584_v4, %v7593_v63  ;;  %4261 = vmatmul.mubr.bf16.vlgmr.msra.gmra.mxu0 %v8220_v0  ;;  %v6563_v4 = vld [vmem:[#allocation10 + $0x10] sm:$0xff]   ;;  %v6564_v0 = vld [vmem:[#allocation10 + $0x48] sm:$0xff]  }
 0x26b   : > { %4374 = vmatmul.mubr.bf16.vlgmr.msra.gmra.mxu1 %v8221_v42  ;;  %4270 = vmatprep.mubr.bf16.mxu0 %v8222_v43  ;;  %v3586_v59 = vpop.f32.mrf.mxu0  ;;  %v3699_v48 = vpop.f32.mrf.mxu1 }
 0x26c   : > { %v7604_v37 = vadd.f32 %v3697_v41, %v3585_v27  ;;  %4383 = vmatprep.mubr.bf16.mxu1 %v8223_v32  ;;  %v3587_v2 = vadd.f32 %v3586_v59, %v7598_v40  ;;  %5853 = vmatpush3.bf16.msra.mxu0 %v6553_v46  ;;  %v6569_v27 = vld [vmem:[#allocation10 + $0xb8] sm:$0xff]  }
 0x26d   : > { %v7608_v26 = vpop.f32.mrf.mxu0  ;;  %5854 = vmatprep.subr.bf16.mxu0 %v6554_v56  ;;  %v7612_v36 = vpop.f32.mrf.mxu1  ;;  %v6568_v56 = vld [vmem:[#allocation10 + $0xf8] sm:$0xff]  }
 0x26e   : > { %v7610_v45 = vadd.f32 %v3699_v48, %v3587_v2  ;;  %5916 = vmatprep.subr.bf16.mxu1 %v6568_v56  ;;  %v6565_v2 = vld [vmem:[#allocation10 + $0x8] sm:$0xff]  }
 0x26f   : > { %v7614_v44 = vpop.f32.mrf.mxu0  ;;  %v7616_v51 = vpop.f32.mrf.mxu1  ;;  %5917 = vmatpush3.bf16.msra.mxu1 %v6569_v27  ;;  %v6572_v27 = vld [vmem:[#allocation10 + $0xe8] sm:$0xff]  }
 0x270   : > { %5855 = vmatpush3.bf16.msra.mxu0 %v6555_v22  ;;  %v6566_v22 = vld [vmem:[#allocation10 + $0x40] sm:$0xff]  }
 0x271   : > { %v3594_v17 = vpop.f32.mrf.mxu0  ;;  %5856 = vmatprep.subr.bf16.mxu0 %v6556_v14  ;;  %v3707_v9 = vpop.f32.mrf.mxu1 }
 0x272   : > { %v3595_v52 = vadd.f32 %v3594_v17, %v7593_v63  ;;  %4271 = vmatmul.mubr.bf16.gmra.mxu0 %v8224_v38  ;;  %v8232_v17 = vld [vmem:[#allocation37_spill] sm:$0xff] }
 0x273   : > { %4384 = vmatmul.mubr.bf16.gmra.mxu1 %v8225_v18  ;;  %4280 = vmatprep.mubr.bf16.mxu0 %v8226_v55  ;;  %v3596_v25 = vpop.f32.mrf.mxu0  ;;  %v3709_v15 = vpop.f32.mrf.mxu1  ;;  %v8235_v18 = vld [vmem:[#allocation42_spill] sm:$0xff] }
 0x274   : > { %v7622_v10 = vadd.f32 %v3707_v9, %v3595_v52  ;;  %4393 = vmatprep.mubr.bf16.mxu1 %v8227_v21  ;;  %v3597_v53 = vadd.f32 %v3596_v25, %v7598_v40  ;;  %5857 = vmatpush3.bf16.msra.mxu0 %v6557_v29  ;;  %v8234_v52 = vld [vmem:[#allocation40_spill] sm:$0xff]  ;;  %v6567_v21 = vld [vmem:[#allocation10] sm:$0xff]  }
 0x275   : > { %v7626_v24 = vpop.f32.mrf.mxu0  ;;  %5858 = vmatprep.subr.bf16.mxu0 %v6558_v20  ;;  %v7630_v57 = vpop.f32.mrf.mxu1  ;;  %v8233_v20 = vld [vmem:[#allocation39_spill] sm:$0xff] }
 0x276   : > { %v7628_v28 = vadd.f32 %v3709_v15, %v3597_v53  ;;  %v6570_v53 = vld [vmem:[#allocation10 + $0xf0] sm:$0xff]  }
 0x277   : > { %v7632_v30 = vpop.f32.mrf.mxu0  ;;  %v7634_v8 = vpop.f32.mrf.mxu1  ;;  %v6571_v15 = vld [vmem:[#allocation10 + $0xb0] sm:$0xff]   ;;  %5918 = vmatprep.subr.bf16.mxu1 %v6570_v53 }
 0x278   : > { %5859 = vmatpush3.bf16.msra.mxu0 %v6559_v49  ;;  %5919 = vmatpush3.bf16.msra.mxu1 %v6571_v15  ;;  %v6574_v15 = vld [vmem:[#allocation10 + $0xe0] sm:$0xff]  }
 0x279   : > { %v3604_v1 = vpop.f32.mrf.mxu0  ;;  %5860 = vmatprep.subr.bf16.mxu0 %v6560_v23  ;;  %v3717_v47 = vpop.f32.mrf.mxu1  ;;  %5920 = vmatprep.subr.bf16.mxu1 %v6572_v27 }
 0x27a   : > { %v3605_v3 = vadd.f32 %v3604_v1, %v7593_v63  ;;  %4281 = vmatmul.mubr.bf16.gmra.mxu0 %v8228_v62 }
 0x27b   : > { %4394 = vmatmul.mubr.bf16.gmra.mxu1 %v8229_v58  ;;  %4290 = vmatprep.mubr.bf16.mxu0 %v8230_v39  ;;  %v3606_v35 = vpop.f32.mrf.mxu0  ;;  %v3719_v46 = vpop.f32.mrf.mxu1  ;;  %v8236_v58 = vld [vmem:[#allocation41_spill] sm:$0xff]  ;;  %v8237_v39 = vld [vmem:[#allocation43_spill] sm:$0xff] }
 0x27c   : > { %v7640_v16 = vadd.f32 %v3717_v47, %v3605_v3  ;;  %4403 = vmatprep.mubr.bf16.mxu1 %v8231_v33  ;;  %v3607_v60 = vadd.f32 %v3606_v35, %v7598_v40  ;;  %5861 = vmatpush3.bf16.msra.mxu0 %v6561_v13  ;;  %v8238_v35 = vld [vmem:[#allocation44_spill] sm:$0xff] }
 0x27d   : > { %v7644_v41 = vpop.f32.mrf.mxu0  ;;  %5862 = vmatprep.subr.bf16.mxu0 %v6562_v31  ;;  %v7648_v43 = vpop.f32.mrf.mxu1 }
 0x27e   : > { %v7646_v42 = vadd.f32 %v3719_v46, %v3607_v60  ;;  %v8239_v46 = vld [vmem:[#allocation46_spill] sm:$0xff] }
 0x27f   : > { %v7650_v59 = vpop.f32.mrf.mxu0  ;;  %v7652_v32 = vpop.f32.mrf.mxu1 }
 0x280   : > { %5863 = vmatpush3.bf16.msra.mxu0 %v6563_v4 }
 0x281   : > { %v3614_v48 = vpop.f32.mrf.mxu0  ;;  %5864 = vmatprep.subr.bf16.mxu0 %v6564_v0  ;;  %v3727_v29 = vpop.f32.mrf.mxu1  ;;  %v6573_v0 = vld [vmem:[#allocation10 + $0xa8] sm:$0xff]  }
 0x282   : > { %v3615_v14 = vadd.f32 %v3614_v48, %v7593_v63  ;;  %4291 = vmatmul.mubr.bf16.gmra.mxu0 %v8232_v17  ;;  %5921 = vmatpush3.bf16.msra.mxu1 %v6573_v0  ;;  %v6576_v0 = vld [vmem:[#allocation10 + $0xd8] sm:$0xff]  }
 0x283   : > { %4404 = vmatmul.mubr.bf16.gmra.mxu1 %v8233_v20  ;;  %4300 = vmatprep.mubr.bf16.mxu0 %v8234_v52  ;;  %v3616_v9 = vpop.f32.mrf.mxu0  ;;  %v3729_v25 = vpop.f32.mrf.mxu1 }
 0x284   : > { %v7658_v38 = vadd.f32 %v3727_v29, %v3615_v14  ;;  %4413 = vmatprep.mubr.bf16.mxu1 %v8235_v18  ;;  %v3617_v55 = vadd.f32 %v3616_v9, %v7598_v40  ;;  %5865 = vmatpush3.bf16.msra.mxu0 %v6565_v2  ;;  %v8240_v9 = vld [vmem:[#allocation45_spill] sm:$0xff]  ;;  %v8241_v18 = vld [vmem:[#allocation47_spill] sm:$0xff] }
 0x285   : > { %v7662_v49 = vpop.f32.mrf.mxu0  ;;  %5866 = vmatprep.subr.bf16.mxu0 %v6566_v22  ;;  %v7666_v13 = vpop.f32.mrf.mxu1  ;;  %5922 = vmatprep.subr.bf16.mxu1 %v6574_v15 }
 0x286   : > { %v7664_v23 = vadd.f32 %v3729_v25, %v3617_v55 }
 0x287   : > { %v7668_v1 = vpop.f32.mrf.mxu0  ;;  %v7670_v31 = vpop.f32.mrf.mxu1 }
 0x288   : > { %5867 = vmatpush3.bf16.msra.mxu0 %v6567_v21 }
 0x289   : > { %v3624_v3 = vpop.f32.mrf.mxu0  ;;  %v3737_v62 = vpop.f32.mrf.mxu1 }
 0x28a   : > { %v3625_v47 = vadd.f32 %v3624_v3, %v7593_v63  ;;  %4301 = vmatmul.mubr.bf16.gmra.mxu0 %v8236_v58  ;;  %v6575_v3 = vld [vmem:[#allocation10 + $0xa0] sm:$0xff]  }
 0x28b   : > { %4414 = vmatmul.mubr.bf16.gmra.mxu1 %v8237_v39  ;;  %4310 = vmatprep.mubr.bf16.mxu0 %v8238_v35  ;;  %v3626_v33 = vpop.f32.mrf.mxu0  ;;  %v3739_v56 = vpop.f32.mrf.mxu1 }
 0x28c   : > { %v7676_v60 = vadd.f32 %v3737_v62, %v3625_v47  ;;  %4423 = vmatprep.mubr.bf16.mxu1 %v8239_v46  ;;  %v3627_v4 = vadd.f32 %v3626_v33, %v7598_v40  ;;  %5923 = vmatpush3.bf16.msra.mxu1 %v6575_v3  ;;  %v6578_v3 = vld [vmem:[#allocation10 + $0xd0] sm:$0xff]  }
 0x28d   : > { %v7680_v2 = vpop.f32.mrf.mxu0  ;;  %v7684_v22 = vpop.f32.mrf.mxu1  ;;  %5924 = vmatprep.subr.bf16.mxu1 %v6576_v0  ;;  %v3591_v0 = vadd.f32 %v7614_v44, %v7598_v40  ;;  %v3599_v44 = vadd.f32 %v7626_v24, %v7593_v63 }
 0x28e   : > { %v7682_v48 = vadd.f32 %v3739_v56, %v3627_v4 }
 0x28f   : > { %v7686_v14 = vpop.f32.mrf.mxu0  ;;  %v7688_v29 = vpop.f32.mrf.mxu1 }
 0x291   : > { %v3634_v17 = vpop.f32.mrf.mxu0  ;;  %v3747_v52 = vpop.f32.mrf.mxu1 }
 0x292   : > { %v3635_v20 = vadd.f32 %v3634_v17, %v7593_v63  ;;  %4311 = vmatmul.mubr.bf16.gmra.mxu0 %v8240_v9  ;;  %v6577_v17 = vld [vmem:[#allocation10 + $0x98] sm:$0xff]  }
 0x293   : > { %4424 = vmatmul.mubr.bf16.gmra.mxu1 %v8241_v18  ;;  %4320 = vmatprep.mubr.bf16.mxu0 %v7519_v12  ;;  %v3636_v55 = vpop.f32.mrf.mxu0  ;;  %v3749_v53 = vpop.f32.mrf.mxu1 }
 0x294   : > { %v7694_v25 = vadd.f32 %v3747_v52, %v3635_v20  ;;  %4433 = vmatprep.mubr.bf16.mxu1 %v7523_v5  ;;  %v3637_v21 = vadd.f32 %v3636_v55, %v7598_v40  ;;  %5925 = vmatpush3.bf16.msra.mxu1 %v6577_v17 }
 0x295   : > { %v7698_v47 = vpop.f32.mrf.mxu0  ;;  %v7702_v58 = vpop.f32.mrf.mxu1  ;;  %5926 = vmatprep.subr.bf16.mxu1 %v6578_v3  ;;  %v3704_v3 = vadd.f32 %v7616_v51, %v3591_v0 }
 0x296   : > { %v7700_v62 = vadd.f32 %v3749_v53, %v3637_v21 }
 0x297   : > { %v7704_v39 = vpop.f32.mrf.mxu0  ;;  %v7706_v12 = vpop.f32.mrf.mxu1 }
 0x299   : > { %v3644_v35 = vpop.f32.mrf.mxu0  ;;  %v3757_v33 = vpop.f32.mrf.mxu1 }
 0x29a   : > { %v3645_v5 = vadd.f32 %v3644_v35, %v7593_v63  ;;  %4321 = vmatmul.mubr.bf16.gmra.mxu0 %v7521_v19  ;;  %v6579_v35 = vld [vmem:[#allocation10 + $0x90] sm:$0xff]  }
 0x29b   : > { %4434 = vmatmul.mubr.bf16.gmra.mxu1 %v7525_v50  ;;  %4330 = vmatprep.mubr.bf16.mxu0 %v7539_v61  ;;  %v3646_v46 = vpop.f32.mrf.mxu0  ;;  %v3759_v27 = vpop.f32.mrf.mxu1 }
 0x29c   : > { %v7712_v4 = vadd.f32 %v3757_v33, %v3645_v5  ;;  %4443 = vmatprep.mubr.bf16.mxu1 %v7543_v34  ;;  %v3647_v56 = vadd.f32 %v3646_v46, %v7598_v40  ;;  %5927 = vmatpush3.bf16.msra.mxu1 %v6579_v35 }
 0x29d   : > { %v7716_v20 = vpop.f32.mrf.mxu0  ;;  %v7720_v9 = vpop.f32.mrf.mxu1  ;;  %5928 = vmatprep.subr.bf16.mxu1 %v6580_v54  ;;  %v6582_v54 = vld [vmem:[#allocation10 + $0xc0] sm:$0xff]  }
 0x29e   : > { %v7718_v52 = vadd.f32 %v3759_v27, %v3647_v56 }
 0x29f   : > { %v7722_v19 = vpop.f32.mrf.mxu0  ;;  %v7724_v50 = vpop.f32.mrf.mxu1 }
 0x2a1   : > { %v3654_v61 = vpop.f32.mrf.mxu0  ;;  %v3767_v18 = vpop.f32.mrf.mxu1 }
 0x2a2   : > { %v3655_v34 = vadd.f32 %v3654_v61, %v7593_v63  ;;  %4331 = vmatmul.mubr.bf16.gmra.mxu0 %v7541_v7  ;;  %v3589_v7 = vadd.f32 %v7608_v26, %v7593_v63 }
 0x2a3   : > { %4444 = vmatmul.mubr.bf16.gmra.mxu1 %v7545_v6  ;;  %v3656_v55 = vpop.f32.mrf.mxu0  ;;  %v3769_v15 = vpop.f32.mrf.mxu1 }
 0x2a4   : > { %v7729_v21 = vadd.f32 %v3767_v18, %v3655_v34  ;;  %v3657_v53 = vadd.f32 %v3656_v55, %v7598_v40  ;;  %v3702_v34 = vadd.f32 %v7612_v36, %v3589_v7 }
 0x2a5   : > { %v7732_v5 = vpop.f32.mrf.mxu0  ;;  %v7736_v46 = vpop.f32.mrf.mxu1 }
 0x2a6   : > { %8242 = vst [vmem:[#allocation26_spill] sm:$0xff] %v7729_v21  ;;  %v7734_v33 = vadd.f32 %v3769_v15, %v3657_v53  ;;  %8244 = vst [vmem:[#allocation27_spill] sm:$0xff] %v7736_v46 }
 0x2a7   : > { %v7738_v56 = vpop.f32.mrf.mxu0  ;;  %v7742_v6 = vpop.f32.mrf.mxu1 }
 0x2a8   : > { %8243 = vst [vmem:[#allocation25_spill] sm:$0xff] %v7734_v33  ;;  %8245 = vst [vmem:[#allocation28_spill] sm:$0xff] %v7738_v56 }
 0x2a9   : > { %8246 = vst [vmem:[#allocation30_spill] sm:$0xff] %v7742_v6  ;;  %v3810_v27 = vpop.f32.mrf.mxu0  ;;  %v3923_v17 = vpop.f32.mrf.mxu1  ;;  %v6581_v6 = vld [vmem:[#allocation10 + $0x88] sm:$0xff]  }
 0x2aa   : > { %v3811_v53 = vadd.f32 %v3810_v27, %v7604_v37  ;;  %v3601_v37 = vadd.f32 %v7632_v30, %v7598_v40  ;;  %5929 = vmatpush3.bf16.msra.mxu1 %v6581_v6  ;;  %v6583_v6 = vld [vmem:[#allocation10 + $0x80] sm:$0xff]  }
 0x2ab   : > { %v3812_v61 = vpop.f32.mrf.mxu0  ;;  %v3925_v55 = vpop.f32.mrf.mxu1  ;;  %5930 = vmatprep.subr.bf16.mxu1 %v6582_v54 }
 0x2ac   : > { %v3813_v18 = vadd.f32 %v3812_v61, %v7610_v45  ;;  %v3924_v7 = vadd.f32 %v3923_v17, %v3811_v53  ;;  %v3714_v53 = vadd.f32 %v7634_v8, %v3601_v37  ;;  %v3611_v8 = vadd.f32 %v7650_v59, %v7598_v40 }
 0x2ad   : > { %v3814_v15 = vpop.f32.mrf.mxu0  ;;  %v3927_v26 = vpop.f32.mrf.mxu1 }
 0x2ae   : > { %v3815_v35 = vadd.f32 %v3814_v15, %v3702_v34  ;;  %v3926_v21 = vadd.f32 %v3925_v55, %v3813_v18  ;;  %v3712_v34 = vadd.f32 %v7630_v57, %v3599_v44  ;;  %5931 = vmatpush3.bf16.msra.mxu1 %v6583_v6 }
 0x2af   : > { %v3816_v11 = vpop.f32.mrf.mxu0  ;;  %v3929_v36 = vpop.f32.mrf.mxu1 }
 0x2b0   : > { %v3928_v33 = vadd.f32 %v3927_v26, %v3815_v35  ;;  %v3817_v46 = vadd.f32 %v3816_v11, %v3704_v3  ;;  %v4455_v15 = vmax.f32 %v3926_v21, 0.0  ;;  %v4454_v11 = vmax.f32 %v3924_v7, 0.0 }
 0x2b1   : > { %v3820_v45 = vpop.f32.mrf.mxu0  ;;  %v3933_v51 = vpop.f32.mrf.mxu1 }
 0x2b2   : > { %v3930_v27 = vadd.f32 %v3929_v36, %v3817_v46  ;;  %v4458_v0 = vmax.f32 %v3928_v33, 0.0  ;;  %v3821_v17 = vadd.f32 %v3820_v45, %v7622_v10  ;;  %v3609_v33 = vadd.f32 %v7644_v41, %v7593_v63 }
 0x2b3   : > { %v3822_v61 = vpop.f32.mrf.mxu0  ;;  %v3935_v18 = vpop.f32.mrf.mxu1 }
 0x2b4   : > { %v4459_v56 = vmax.f32 %v3930_v27, 0.0  ;;  %v3823_v24 = vadd.f32 %v3822_v61, %v7628_v28  ;;  %v4518_v57 = vpack.c.bf16 %v4458_v0, %v4454_v11  ;;  %v3934_v10 = vadd.f32 %v3933_v51, %v3821_v17 }
 0x2b5   : > { %v3824_v55 = vpop.f32.mrf.mxu0  ;;  %v3937_v46 = vpop.f32.mrf.mxu1  ;;  %v3722_v41 = vadd.f32 %v7648_v43, %v3609_v33 }
 0x2b6   : > { %v3825_v30 = vadd.f32 %v3824_v55, %v3712_v34  ;;  %v4519_v3 = vpack.c.bf16 %v4459_v56, %v4455_v15  ;;  %v3936_v35 = vadd.f32 %v3935_v18, %v3823_v24  ;;  %v4462_v15 = vmax.f32 %v3934_v10, 0.0 }
 0x2b7   : > { %v3826_v21 = vpop.f32.mrf.mxu0  ;;  %v3939_v44 = vpop.f32.mrf.mxu1  ;;  %v3724_v18 = vadd.f32 %v7652_v32, %v3611_v8 }
 0x2b8   : > { %v3938_v28 = vadd.f32 %v3937_v46, %v3825_v30  ;;  %v3827_v26 = vadd.f32 %v3826_v21, %v3714_v53  ;;  %4845 = vmatprep.mubr.bf16.mxu0 %v4519_v3  ;;  %v4463_v27 = vmax.f32 %v3936_v35, 0.0  ;;  %v3619_v53 = vadd.f32 %v7662_v49, %v7593_v63 }
 0x2b9   : > { %v3830_v36 = vpop.f32.mrf.mxu0  ;;  %4846 = vmatmul.mubr.bf16.vlgmr.msra.gmra.mxu0 %v4518_v57  ;;  %v3943_v7 = vpop.f32.mrf.mxu1 }
 0x2ba   : > { %v3940_v56 = vadd.f32 %v3939_v44, %v3827_v26  ;;  %v4466_v45 = vmax.f32 %v3938_v28, 0.0  ;;  %v3831_v24 = vadd.f32 %v3830_v36, %v7640_v16  ;;  %v3621_v16 = vadd.f32 %v7668_v1, %v7598_v40 }
 0x2bb   : > { %v3832_v37 = vpop.f32.mrf.mxu0  ;;  %v3945_v34 = vpop.f32.mrf.mxu1  ;;  %v3732_v35 = vadd.f32 %v7666_v13, %v3619_v53 }
 0x2bc   : > { %v4467_v0 = vmax.f32 %v3940_v56, 0.0  ;;  %v3833_v61 = vadd.f32 %v3832_v37, %v7646_v42  ;;  %v4522_v55 = vpack.c.bf16 %v4466_v45, %v4462_v15  ;;  %v3944_v42 = vadd.f32 %v3943_v7, %v3831_v24 }
 0x2bd   : > { %v3834_v51 = vpop.f32.mrf.mxu0  ;;  %v3947_v17 = vpop.f32.mrf.mxu1  ;;  %v3734_v56 = vadd.f32 %v7670_v31, %v3621_v16  ;;  %v3639_v16 = vadd.f32 %v7698_v47, %v7593_v63 }
 0x2be   : > { %v3835_v11 = vadd.f32 %v3834_v51, %v3722_v41  ;;  %v4523_v59 = vpack.c.bf16 %v4467_v0, %v4463_v27  ;;  %v3946_v43 = vadd.f32 %v3945_v34, %v3833_v61  ;;  %v4470_v10 = vmax.f32 %v3944_v42, 0.0 }
 0x2bf   : > { %v3836_v54 = vpop.f32.mrf.mxu0  ;;  %v3949_v3 = vpop.f32.mrf.mxu1  ;;  %v3629_v27 = vadd.f32 %v7680_v2, %v7593_v63 }
 0x2c0   : > { %v3948_v30 = vadd.f32 %v3947_v17, %v3835_v11  ;;  %v3837_v46 = vadd.f32 %v3836_v54, %v3724_v18  ;;  %4853 = vmatprep.mubr.bf16.mxu0 %v4523_v59  ;;  %v4471_v28 = vmax.f32 %v3946_v43, 0.0 }
 0x2c1   : > { %v3840_v6 = vpop.f32.mrf.mxu0  ;;  %4854 = vmatmul.mubr.bf16.gmra.mxu0 %v4522_v55  ;;  %v3953_v33 = vpop.f32.mrf.mxu1  ;;  %v3742_v11 = vadd.f32 %v7684_v22, %v3629_v27 }
 0x2c2   : > { %v3950_v32 = vadd.f32 %v3949_v3, %v3837_v46  ;;  %v4474_v57 = vmax.f32 %v3948_v30, 0.0  ;;  %v3841_v36 = vadd.f32 %v3840_v6, %v7658_v38  ;;  %v3631_v38 = vadd.f32 %v7686_v14, %v7598_v40 }
 0x2c3   : > { %v3842_v21 = vpop.f32.mrf.mxu0  ;;  %v3955_v44 = vpop.f32.mrf.mxu1 }
 0x2c4   : > { %v4475_v26 = vmax.f32 %v3950_v32, 0.0  ;;  %v3843_v49 = vadd.f32 %v3842_v21, %v7664_v23  ;;  %v4526_v37 = vpack.c.bf16 %v4474_v57, %v4470_v10  ;;  %v3954_v23 = vadd.f32 %v3953_v33, %v3841_v36 }
 0x2c5   : > { %v3844_v8 = vpop.f32.mrf.mxu0  ;;  %v3957_v45 = vpop.f32.mrf.mxu1  ;;  %v3744_v30 = vadd.f32 %v7688_v29, %v3631_v38 }
 0x2c6   : > { %v3845_v7 = vadd.f32 %v3844_v8, %v3732_v35  ;;  %v4527_v1 = vpack.c.bf16 %v4475_v26, %v4471_v28  ;;  %v3956_v13 = vadd.f32 %v3955_v44, %v3843_v49  ;;  %v4478_v54 = vmax.f32 %v3954_v23, 0.0 }
 0x2c7   : > { %v3846_v41 = vpop.f32.mrf.mxu0  ;;  %v3959_v34 = vpop.f32.mrf.mxu1  ;;  %v3752_v49 = vadd.f32 %v7702_v58, %v3639_v16 }
 0x2c8   : > { %v3958_v0 = vadd.f32 %v3957_v45, %v3845_v7  ;;  %v3847_v61 = vadd.f32 %v3846_v41, %v3734_v56  ;;  %4861 = vmatprep.mubr.bf16.mxu0 %v4527_v1  ;;  %v4479_v17 = vmax.f32 %v3956_v13, 0.0  ;;  %v3649_v13 = vadd.f32 %v7716_v20, %v7593_v63 }
 0x2c9   : > { %v3850_v15 = vpop.f32.mrf.mxu0  ;;  %4862 = vmatmul.mubr.bf16.gmra.mxu0 %v4526_v37  ;;  %v3963_v24 = vpop.f32.mrf.mxu1 }
 0x2ca   : > { %v3960_v31 = vadd.f32 %v3959_v34, %v3847_v61  ;;  %v4482_v51 = vmax.f32 %v3958_v0, 0.0  ;;  %v3851_v53 = vadd.f32 %v3850_v15, %v7676_v60  ;;  %v3641_v60 = vadd.f32 %v7704_v39, %v7598_v40 }
 0x2cb   : > { %v3852_v18 = vpop.f32.mrf.mxu0  ;;  %v3965_v55 = vpop.f32.mrf.mxu1 }
 0x2cc   : > { %v4483_v59 = vmax.f32 %v3960_v31, 0.0  ;;  %v3853_v2 = vadd.f32 %v3852_v18, %v7682_v48  ;;  %v4530_v42 = vpack.c.bf16 %v4482_v51, %v4478_v54  ;;  %v3964_v48 = vadd.f32 %v3963_v24, %v3851_v53 }
 0x2cd   : > { %v3854_v43 = vpop.f32.mrf.mxu0  ;;  %v3967_v3 = vpop.f32.mrf.mxu1  ;;  %v3754_v45 = vadd.f32 %v7706_v12, %v3641_v60  ;;  %v3762_v24 = vadd.f32 %v7720_v9, %v3649_v13 }
 0x2ce   : > { %v3855_v46 = vadd.f32 %v3854_v43, %v3742_v11  ;;  %v4531_v14 = vpack.c.bf16 %v4483_v59, %v4479_v17  ;;  %v3966_v22 = vadd.f32 %v3965_v55, %v3853_v2  ;;  %v4486_v8 = vmax.f32 %v3964_v48, 0.0 }
 0x2cf   : > { %v3856_v6 = vpop.f32.mrf.mxu0  ;;  %v3969_v57 = vpop.f32.mrf.mxu1 }
 0x2d0   : > { %v3968_v32 = vadd.f32 %v3967_v3, %v3855_v46  ;;  %v3857_v33 = vadd.f32 %v3856_v6, %v3744_v30  ;;  %4869 = vmatprep.mubr.bf16.mxu0 %v4531_v14  ;;  %v4487_v44 = vmax.f32 %v3966_v22, 0.0  ;;  %v3659_v46 = vadd.f32 %v7732_v5, %v7593_v63  ;;  %v8249_v63 = vld [vmem:[#allocation25_spill] sm:$0xff] }
 0x2d1   : > { %v3860_v21 = vpop.f32.mrf.mxu0  ;;  %4870 = vmatmul.mubr.bf16.gmra.mxu0 %v4530_v42  ;;  %v3973_v35 = vpop.f32.mrf.mxu1 }
 0x2d2   : > { %v3970_v29 = vadd.f32 %v3969_v57, %v3857_v33  ;;  %v4490_v28 = vmax.f32 %v3968_v32, 0.0  ;;  %v3861_v56 = vadd.f32 %v3860_v21, %v7694_v25  ;;  %v3651_v25 = vadd.f32 %v7722_v19, %v7598_v40  ;;  %v8248_v57 = vld [vmem:[#allocation27_spill] sm:$0xff] }
 0x2d3   : > { %v3862_v26 = vpop.f32.mrf.mxu0  ;;  %v3975_v36 = vpop.f32.mrf.mxu1  ;;  %v3772_v48 = vadd.f32 %v8248_v57, %v3659_v46 }
 0x2d4   : > { %v4491_v10 = vmax.f32 %v3970_v29, 0.0  ;;  %v3863_v47 = vadd.f32 %v3862_v26, %v7700_v62  ;;  %v4534_v41 = vpack.c.bf16 %v4490_v28, %v4486_v8  ;;  %v3974_v62 = vadd.f32 %v3973_v35, %v3861_v56  ;;  %v8250_v28 = vld [vmem:[#allocation26_spill] sm:$0xff]  ;;  %v8252_v8 = vld [vmem:[#allocation23_spill] sm:$0xff] }
 0x2d5   : > { %v3864_v7 = vpop.f32.mrf.mxu0  ;;  %v3977_v37 = vpop.f32.mrf.mxu1  ;;  %v3764_v55 = vadd.f32 %v7724_v50, %v3651_v25  ;;  %v8253_v56 = vsub.s32 2, %v8252_v8 }
 0x2d6   : > { %v3865_v1 = vadd.f32 %v3864_v7, %v3752_v49  ;;  %v4535_v39 = vpack.c.bf16 %v4491_v10, %v4487_v44  ;;  %v3976_v58 = vadd.f32 %v3975_v36, %v3863_v47  ;;  %v4494_v17 = vmax.f32 %v3974_v62, 0.0  ;;  %v8251_v44 = vld [vmem:[#allocation30_spill] sm:$0xff]  ;;  %v8254_v7 = vld [vmem:[#allocation24_spill] sm:$0xff] }
 0x2d7   : > { %v3866_v27 = vpop.f32.mrf.mxu0  ;;  %v3979_v34 = vpop.f32.mrf.mxu1 }
 0x2d8   : > { %v3978_v0 = vadd.f32 %v3977_v37, %v3865_v1  ;;  %v3867_v61 = vadd.f32 %v3866_v27, %v3754_v45  ;;  %4877 = vmatprep.mubr.bf16.mxu0 %v4535_v39  ;;  %v4495_v51 = vmax.f32 %v3976_v58, 0.0  ;;  %v7809_v45 = vrot.slane %v8254_v7, %v8253_v56 }
 0x2d9   : > { %v3870_v23 = vpop.f32.mrf.mxu0  ;;  %4878 = vmatmul.mubr.bf16.gmra.mxu0 %v4534_v41  ;;  %v3983_v15 = vpop.f32.mrf.mxu1  ;;  %v8255_v58 = vsub.s32 3, %v8252_v8 }
 0x2da   : > { %v3980_v12 = vadd.f32 %v3979_v34, %v3867_v61  ;;  %v4498_v38 = vmax.f32 %v3978_v0, 0.0  ;;  %v3871_v59 = vadd.f32 %v3870_v23, %v7712_v4  ;;  %v8247_v4 = vld [vmem:[#allocation28_spill] sm:$0xff] }
 0x2db   : > { %v3872_v31 = vpop.f32.mrf.mxu0  ;;  %v3985_v11 = vpop.f32.mrf.mxu1  ;;  %v3661_v16 = vadd.f32 %v8247_v4, %v7598_v40  ;;  %v7814_v0 = vrot.slane %v8254_v7, %v8255_v58 }
 0x2dc   : > { %v4499_v18 = vmax.f32 %v3980_v12, 0.0  ;;  %v3873_v20 = vadd.f32 %v3872_v31, %v7718_v52  ;;  %v4538_v43 = vpack.c.bf16 %v4498_v38, %v4494_v17  ;;  %v3984_v52 = vadd.f32 %v3983_v15, %v3871_v59 }
 0x2dd   : > { %v3874_v2 = vpop.f32.mrf.mxu0  ;;  %v3987_v53 = vpop.f32.mrf.mxu1  ;;  %v3774_v10 = vadd.f32 %v8251_v44, %v3661_v16 }
 0x2de   : > { %v3875_v54 = vadd.f32 %v3874_v2, %v3762_v24  ;;  %v4539_v19 = vpack.c.bf16 %v4499_v18, %v4495_v51  ;;  %v3986_v9 = vadd.f32 %v3985_v11, %v3873_v20  ;;  %v4502_v35 = vmax.f32 %v3984_v52, 0.0 }
 0x2df   : > { %v3876_v30 = vpop.f32.mrf.mxu0  ;;  %v3989_v42 = vpop.f32.mrf.mxu1 }
 0x2e0   : > { %v3988_v3 = vadd.f32 %v3987_v53, %v3875_v54  ;;  %v3877_v14 = vadd.f32 %v3876_v30, %v3764_v55  ;;  %4885 = vmatprep.mubr.bf16.mxu0 %v4539_v19  ;;  %v4503_v21 = vmax.f32 %v3986_v9, 0.0 }
 0x2e1   : > { %v3880_v6 = vpop.f32.mrf.mxu0  ;;  %4886 = vmatmul.mubr.bf16.gmra.mxu0 %v4538_v43  ;;  %v3993_v22 = vpop.f32.mrf.mxu1 }
 0x2e2   : > { %v3990_v50 = vadd.f32 %v3989_v42, %v3877_v14  ;;  %v4506_v32 = vmax.f32 %v3988_v3, 0.0  ;;  %v3881_v26 = vadd.f32 %v3880_v6, %v8250_v28 }
 0x2e3   : > { %v3882_v33 = vpop.f32.mrf.mxu0  ;;  %v3995_v29 = vpop.f32.mrf.mxu1 }
 0x2e4   : > { %v4507_v60 = vmax.f32 %v3990_v50, 0.0  ;;  %v3883_v5 = vadd.f32 %v3882_v33, %v8249_v63  ;;  %v4542_v1 = vpack.c.bf16 %v4506_v32, %v4502_v35  ;;  %v3994_v61 = vadd.f32 %v3993_v22, %v3881_v26 }
 0x2e5   : > { %v3884_v49 = vpop.f32.mrf.mxu0  ;;  %v3997_v40 = vpop.f32.mrf.mxu1 }
 0x2e6   : > { %v4543_v47 = vpack.c.bf16 %v4507_v60, %v4503_v21  ;;  %v3885_v36 = vadd.f32 %v3884_v49, %v3772_v48  ;;  %v3996_v39 = vadd.f32 %v3995_v29, %v3883_v5  ;;  %v4510_v20 = vmax.f32 %v3994_v61, 0.0 }
 0x2e7   : > { %v3886_v37 = vpop.f32.mrf.mxu0  ;;  %v3999_v13 = vpop.f32.mrf.mxu1 }
 0x2e8   : > { %v3998_v41 = vadd.f32 %v3997_v40, %v3885_v36  ;;  %v3887_v27 = vadd.f32 %v3886_v37, %v3774_v10  ;;  %4893 = vmatprep.mubr.bf16.mxu0 %v4543_v47  ;;  %v4511_v38 = vmax.f32 %v3996_v39, 0.0 }
 0x2e9   : > { %v4036_v34 = vpop.f32.mrf.mxu0  ;;  %4894 = vmatmul.mubr.bf16.gmra.mxu0 %v4542_v1 }
 0x2ea   : > { %v4000_v62 = vadd.f32 %v3999_v13, %v3887_v27  ;;  %v4037_v23 = vadd.f32 %v4036_v34, %v7809_v45  ;;  %v4149_v25 = vpop.f32.mrf.mxu1  ;;  %v4514_v12 = vmax.f32 %v3998_v41, 0.0 }
 0x2eb   : > { %v4038_v15 = vpop.f32.mrf.mxu0 }
 0x2ec   : > { %v4515_v31 = vmax.f32 %v4000_v62, 0.0  ;;  %v7817_v24 = vadd.f32 %v4149_v25, %v4037_v23  ;;  %v4039_v51 = vadd.f32 %v4038_v15, %v7814_v0  ;;  %v4151_v18 = vpop.f32.mrf.mxu1  ;;  %v4546_v55 = vpack.c.bf16 %v4514_v12, %v4510_v20 }
 0x2ed   : > { %v7820_v11 = vpop.f32.mrf.mxu0 }
 0x2ee   : > { %v4547_v17 = vpack.c.bf16 %v4515_v31, %v4511_v38  ;;  %v7822_v59 = vadd.f32 %v4151_v18, %v4039_v51  ;;  %v7824_v2 = vpop.f32.mrf.mxu1 }
 0x2ef   : > { %v7826_v54 = vpop.f32.mrf.mxu0 }
 0x2f0   : > { %v7828_v53 = vpop.f32.mrf.mxu1  ;;  %4901 = vmatprep.mubr.bf16.mxu0 %v4547_v17 }
 0x2f1   : > { %v4046_v19 = vpop.f32.mrf.mxu0  ;;  %4902 = vmatmul.mubr.bf16.gmra.mxu0 %v4546_v55 }
 0x2f2   : > { %v4047_v43 = vadd.f32 %v4046_v19, %v7809_v45  ;;  %v4159_v30 = vpop.f32.mrf.mxu1 }
 0x2f3   : > { %v4048_v46 = vpop.f32.mrf.mxu0 }
 0x2f4   : > { %v7831_v9 = vadd.f32 %v4159_v30, %v4047_v43  ;;  %v4049_v3 = vadd.f32 %v4048_v46, %v7814_v0  ;;  %v4161_v14 = vpop.f32.mrf.mxu1 }
 0x2f5   : > { %v7834_v42 = vpop.f32.mrf.mxu0 }
 0x2f6   : > { %v7836_v52 = vadd.f32 %v4161_v14, %v4049_v3  ;;  %v7838_v6 = vpop.f32.mrf.mxu1 }
 0x2f7   : > { %v7840_v4 = vpop.f32.mrf.mxu0 }
 0x2f8   : > { %v7842_v16 = vpop.f32.mrf.mxu1 }
 0x2f9   : > { %v4056_v50 = vpop.f32.mrf.mxu0 }
 0x2fa   : > { %v4057_v22 = vadd.f32 %v4056_v50, %v7809_v45  ;;  %v4169_v32 = vpop.f32.mrf.mxu1 }
 0x2fb   : > { %v4058_v33 = vpop.f32.mrf.mxu0 }
 0x2fc   : > { %v7845_v57 = vadd.f32 %v4169_v32, %v4057_v22  ;;  %v4059_v48 = vadd.f32 %v4058_v33, %v7814_v0  ;;  %v4171_v21 = vpop.f32.mrf.mxu1 }
 0x2fd   : > { %v7848_v60 = vpop.f32.mrf.mxu0 }
 0x2fe   : > { %v7850_v63 = vadd.f32 %v4171_v21, %v4059_v48  ;;  %v7852_v5 = vpop.f32.mrf.mxu1 }
 0x2ff   : > { %v7854_v29 = vpop.f32.mrf.mxu0 }
 0x300   : > { %v7856_v35 = vpop.f32.mrf.mxu1 }
 0x301   : > { %v4066_v28 = vpop.f32.mrf.mxu0 }
 0x302   : > { %v4067_v26 = vadd.f32 %v4066_v28, %v7809_v45  ;;  %v4179_v49 = vpop.f32.mrf.mxu1 }
 0x303   : > { %v4068_v44 = vpop.f32.mrf.mxu0 }
 0x304   : > { %v7859_v10 = vadd.f32 %v4179_v49, %v4067_v26  ;;  %v4069_v47 = vadd.f32 %v4068_v44, %v7814_v0  ;;  %v4181_v36 = vpop.f32.mrf.mxu1 }
 0x305   : > { %v7862_v40 = vpop.f32.mrf.mxu0 }
 0x306   : > { %v7864_v8 = vadd.f32 %v4181_v36, %v4069_v47  ;;  %v7866_v56 = vpop.f32.mrf.mxu1 }
 0x307   : > { %v7868_v7 = vpop.f32.mrf.mxu0 }
 0x308   : > { %v7870_v1 = vpop.f32.mrf.mxu1 }
 0x309   : > { %v4076_v37 = vpop.f32.mrf.mxu0 }
 0x30a   : > { %v4077_v39 = vadd.f32 %v4076_v37, %v7809_v45  ;;  %v4189_v41 = vpop.f32.mrf.mxu1 }
 0x30b   : > { %v4078_v27 = vpop.f32.mrf.mxu0 }
 0x30c   : > { %v7873_v13 = vadd.f32 %v4189_v41, %v4077_v39  ;;  %v4079_v58 = vadd.f32 %v4078_v27, %v7814_v0  ;;  %v4191_v61 = vpop.f32.mrf.mxu1 }
 0x30d   : > { %v7876_v34 = vpop.f32.mrf.mxu0 }
 0x30e   : > { %v7878_v62 = vadd.f32 %v4191_v61, %v4079_v58  ;;  %v7880_v23 = vpop.f32.mrf.mxu1 }
 0x30f   : > { %v7882_v25 = vpop.f32.mrf.mxu0 }
 0x310   : > { %v7884_v12 = vpop.f32.mrf.mxu1 }
 0x311   : > { %v4086_v15 = vpop.f32.mrf.mxu0 }
 0x312   : > { %v4087_v38 = vadd.f32 %v4086_v15, %v7809_v45  ;;  %v4199_v31 = vpop.f32.mrf.mxu1 }
 0x313   : > { %v4088_v51 = vpop.f32.mrf.mxu0 }
 0x314   : > { %v7887_v18 = vadd.f32 %v4199_v31, %v4087_v38  ;;  %v4089_v20 = vadd.f32 %v4088_v51, %v7814_v0  ;;  %v4201_v17 = vpop.f32.mrf.mxu1 }
 0x315   : > { %v7890_v55 = vpop.f32.mrf.mxu0 }
 0x316   : > { %v7892_v19 = vadd.f32 %v4201_v17, %v4089_v20  ;;  %v7894_v43 = vpop.f32.mrf.mxu1  ;;  %v4041_v20 = vadd.f32 %v7820_v11, %v7809_v45  ;;  %v4051_v11 = vadd.f32 %v7834_v42, %v7809_v45 }
 0x317   : > { %v7896_v30 = vpop.f32.mrf.mxu0 }
 0x318   : > { %v7898_v46 = vpop.f32.mrf.mxu1 }
 0x319   : > { %v4096_v3 = vpop.f32.mrf.mxu0 }
 0x31a   : > { %v4097_v14 = vadd.f32 %v4096_v3, %v7809_v45  ;;  %v4209_v50 = vpop.f32.mrf.mxu1  ;;  %v4043_v3 = vadd.f32 %v7826_v54, %v7814_v0 }
 0x31b   : > { %v4098_v22 = vpop.f32.mrf.mxu0 }
 0x31c   : > { %v7901_v32 = vadd.f32 %v4209_v50, %v4097_v14  ;;  %v4099_v33 = vadd.f32 %v4098_v22, %v7814_v0  ;;  %v4211_v48 = vpop.f32.mrf.mxu1  ;;  %v4154_v22 = vadd.f32 %v7824_v2, %v4041_v20 }
 0x31d   : > { %v7904_v21 = vpop.f32.mrf.mxu0 }
 0x31e   : > { %v7906_v28 = vadd.f32 %v4211_v48, %v4099_v33  ;;  %v7908_v26 = vpop.f32.mrf.mxu1 }
 0x31f   : > { %v7910_v49 = vpop.f32.mrf.mxu0 }
 0x320   : > { %v7912_v44 = vpop.f32.mrf.mxu1 }
 0x321   : > { %v4106_v47 = vpop.f32.mrf.mxu0 }
 0x322   : > { %v4107_v36 = vadd.f32 %v4106_v47, %v7809_v45  ;;  %v4219_v37 = vpop.f32.mrf.mxu1 }
 0x323   : > { %v4108_v39 = vpop.f32.mrf.mxu0 }
 0x324   : > { %v7915_v41 = vadd.f32 %v4219_v37, %v4107_v36  ;;  %v4109_v27 = vadd.f32 %v4108_v39, %v7814_v0  ;;  %v4221_v58 = vpop.f32.mrf.mxu1  ;;  %v4156_v37 = vadd.f32 %v7828_v53, %v4043_v3  ;;  %v4164_v53 = vadd.f32 %v7838_v6, %v4051_v11 }
 0x325   : > { %v7918_v61 = vpop.f32.mrf.mxu0 }
 0x326   : > { %8256 = vst [vmem:[#allocation29_spill] sm:$0xff] %v7915_v41  ;;  %v7920_v15 = vadd.f32 %v4221_v58, %v4109_v27  ;;  %v7922_v38 = vpop.f32.mrf.mxu1 }
 0x327   : > { %8258 = vst [vmem:[#allocation32_spill] sm:$0xff] %v7922_v38  ;;  %v7924_v31 = vpop.f32.mrf.mxu0 }
 0x328   : > { %8257 = vst [vmem:[#allocation31_spill] sm:$0xff] %v7920_v15  ;;  %v7926_v51 = vpop.f32.mrf.mxu1 }
 0x329   : > { %8259 = vst [vmem:[#allocation34_spill] sm:$0xff] %v7926_v51 }
 0x32a   : > { %v4262_v17 = vpop.f32.mrf.mxu0 }
 0x32b   : > { %v4375_v14 = vpop.f32.mrf.mxu1  ;;  %v4263_v47 = vadd.f32 %v4262_v17, %v7817_v24 }
 0x32c   : > { %v4264_v50 = vpop.f32.mrf.mxu0 }
 0x32d   : > { %v4265_v33 = vadd.f32 %v4264_v50, %v7822_v59  ;;  %v4377_v48 = vpop.f32.mrf.mxu1  ;;  %v4376_v38 = vadd.f32 %v4375_v14, %v4263_v47  ;;  %v4053_v59 = vadd.f32 %v7840_v4, %v7814_v0 }
 0x32e   : > { %v4266_v36 = vpop.f32.mrf.mxu0 }
 0x32f   : > { %v4267_v39 = vadd.f32 %v4266_v36, %v4154_v22  ;;  %v4379_v27 = vpop.f32.mrf.mxu1  ;;  %v4378_v51 = vadd.f32 %v4377_v48, %v4265_v33  ;;  %v4456_v33 = vmax.f32 %v4376_v38, 0.0  ;;  %v4166_v14 = vadd.f32 %v7842_v16, %v4053_v59 }
 0x330   : > { %v4268_v58 = vpop.f32.mrf.mxu0  ;;  %v4063_v16 = vadd.f32 %v7854_v29, %v7814_v0 }
 0x331   : > { %v4380_v54 = vadd.f32 %v4379_v27, %v4267_v39  ;;  %v4269_v41 = vadd.f32 %v4268_v58, %v4156_v37  ;;  %v4381_v15 = vpop.f32.mrf.mxu1  ;;  %v4457_v3 = vmax.f32 %v4378_v51, 0.0  ;;  %v4061_v27 = vadd.f32 %v7848_v60, %v7809_v45 }
 0x332   : > { %v4272_v2 = vpop.f32.mrf.mxu0  ;;  %v4176_v29 = vadd.f32 %v7856_v35, %v4063_v16  ;;  %v4073_v35 = vadd.f32 %v7868_v7, %v7814_v0 }
 0x333   : > { %v4382_v20 = vadd.f32 %v4381_v15, %v4269_v41  ;;  %v4385_v24 = vpop.f32.mrf.mxu1  ;;  %v4460_v17 = vmax.f32 %v4380_v54, 0.0  ;;  %v4273_v48 = vadd.f32 %v4272_v2, %v7831_v9  ;;  %v6584_v9 = vld [vmem:[#allocation11 + $0x38] sm:$0xff]   ;;  %v6585_v54 = vld [vmem:[#allocation11 + $0x30] sm:$0xff]   ;;  %v4174_v60 = vadd.f32 %v7852_v5, %v4061_v27 }
 0x334   : > { %v4274_v50 = vpop.f32.mrf.mxu0  ;;  %5996 = vmatprep.subr.bf16.mxu0 %v6584_v9  ;;  %6028 = vmatprep.subr.bf16.mxu1 %v6584_v9  ;;  %v4071_v5 = vadd.f32 %v7862_v40, %v7809_v45 }
 0x335   : > { %v4461_v22 = vmax.f32 %v4382_v20, 0.0  ;;  %v4275_v36 = vadd.f32 %v4274_v50, %v7836_v52  ;;  %v4387_v42 = vpop.f32.mrf.mxu1  ;;  %v4520_v41 = vpack.c.bf16 %v4460_v17, %v4456_v33  ;;  %v4386_v52 = vadd.f32 %v4385_v24, %v4273_v48  ;;  %5997 = vmatpush3.bf16.msra.mxu0 %v6584_v9 }
 0x336   : > { %v4276_v37 = vpop.f32.mrf.mxu0  ;;  %5998 = vmatprep.subr.bf16.mxu0 %v6585_v54  ;;  %v4184_v40 = vadd.f32 %v7866_v56, %v4071_v5 }
 0x337   : > { %v4521_v47 = vpack.c.bf16 %v4461_v22, %v4457_v3  ;;  %v4277_v39 = vadd.f32 %v4276_v37, %v4164_v53  ;;  %v4389_v4 = vpop.f32.mrf.mxu1  ;;  %v4388_v6 = vadd.f32 %v4387_v42, %v4275_v36  ;;  %v4464_v22 = vmax.f32 %v4386_v52, 0.0 }
 0x338   : > { %v4278_v15 = vpop.f32.mrf.mxu0 }
 0x339   : > { %v4390_v51 = vadd.f32 %v4389_v4, %v4277_v39  ;;  %v4279_v58 = vadd.f32 %v4278_v15, %v4166_v14  ;;  %v4391_v11 = vpop.f32.mrf.mxu1  ;;  %4942 = vmatprep.mubr.bf16.mxu1 %v4521_v47  ;;  %v4465_v50 = vmax.f32 %v4388_v6, 0.0  ;;  %5999 = vmatpush3.bf16.msra.mxu0 %v6585_v54 }
 0x33a   : > { %v4282_v38 = vpop.f32.mrf.mxu0  ;;  %4943 = vmatmul.mubr.bf16.vlgmr.msra.gmra.mxu1 %v4520_v41 }
 0x33b   : > { %v4392_v2 = vadd.f32 %v4391_v11, %v4279_v58  ;;  %v4395_v59 = vpop.f32.mrf.mxu1  ;;  %v4468_v20 = vmax.f32 %v4390_v51, 0.0  ;;  %6036 = vmatpush3.bf16.msra.mxu1 %v6584_v9  ;;  %v4283_v36 = vadd.f32 %v4282_v38, %v7845_v57 }
 0x33c   : > { %v4284_v17 = vpop.f32.mrf.mxu0  ;;  %6029 = vmatprep.subr.bf16.mxu1 %v6585_v54 }
 0x33d   : > { %v4469_v53 = vmax.f32 %v4392_v2, 0.0  ;;  %v4285_v3 = vadd.f32 %v4284_v17, %v7850_v63  ;;  %v4397_v24 = vpop.f32.mrf.mxu1  ;;  %v4524_v14 = vpack.c.bf16 %v4468_v20, %v4464_v22  ;;  %v4396_v57 = vadd.f32 %v4395_v59, %v4283_v36 }
 0x33e   : > { %v4286_v42 = vpop.f32.mrf.mxu0  ;;  %v4186_v20 = vadd.f32 %v7870_v1, %v4073_v35 }
 0x33f   : > { %v4525_v33 = vpack.c.bf16 %v4469_v53, %v4465_v50  ;;  %v4287_v48 = vadd.f32 %v4286_v42, %v4174_v60  ;;  %v4399_v37 = vpop.f32.mrf.mxu1  ;;  %v4398_v63 = vadd.f32 %v4397_v24, %v4285_v3  ;;  %6037 = vmatpush3.bf16.msra.mxu1 %v6585_v54  ;;  %v4472_v16 = vmax.f32 %v4396_v57, 0.0 }
 0x340   : > { %v4288_v47 = vpop.f32.mrf.mxu0  ;;  %v4081_v53 = vadd.f32 %v7876_v34, %v7809_v45 }
 0x341   : > { %v4400_v39 = vadd.f32 %v4399_v37, %v4287_v48  ;;  %v4289_v4 = vadd.f32 %v4288_v47, %v4176_v29  ;;  %v4401_v41 = vpop.f32.mrf.mxu1  ;;  %4950 = vmatprep.mubr.bf16.mxu1 %v4525_v33  ;;  %v4473_v11 = vmax.f32 %v4398_v63, 0.0 }
 0x342   : > { %v4292_v15 = vpop.f32.mrf.mxu0  ;;  %4951 = vmatmul.mubr.bf16.gmra.mxu1 %v4524_v14  ;;  %v4194_v48 = vadd.f32 %v7880_v23, %v4081_v53 }
 0x343   : > { %v4402_v27 = vadd.f32 %v4401_v41, %v4289_v4  ;;  %v4405_v6 = vpop.f32.mrf.mxu1  ;;  %v4476_v51 = vmax.f32 %v4400_v39, 0.0  ;;  %v4293_v2 = vadd.f32 %v4292_v15, %v7859_v10  ;;  %v4083_v10 = vadd.f32 %v7882_v25, %v7814_v0 }
 0x344   : > { %v4294_v58 = vpop.f32.mrf.mxu0 }
 0x345   : > { %v4477_v52 = vmax.f32 %v4402_v27, 0.0  ;;  %v4295_v38 = vadd.f32 %v4294_v58, %v7864_v8  ;;  %v4407_v9 = vpop.f32.mrf.mxu1  ;;  %v4528_v50 = vpack.c.bf16 %v4476_v51, %v4472_v16  ;;  %v4406_v8 = vadd.f32 %v4405_v6, %v4293_v2 }
 0x346   : > { %v4296_v59 = vpop.f32.mrf.mxu0  ;;  %v4196_v4 = vadd.f32 %v7884_v12, %v4083_v10  ;;  %v4091_v27 = vadd.f32 %v7890_v55, %v7809_v45 }
 0x347   : > { %v4529_v17 = vpack.c.bf16 %v4477_v52, %v4473_v11  ;;  %v4297_v7 = vadd.f32 %v4296_v59, %v4184_v40  ;;  %v4409_v60 = vpop.f32.mrf.mxu1  ;;  %v4408_v56 = vadd.f32 %v4407_v9, %v4295_v38  ;;  %v4480_v47 = vmax.f32 %v4406_v8, 0.0 }
 0x348   : > { %v4298_v54 = vpop.f32.mrf.mxu0  ;;  %v4204_v9 = vadd.f32 %v7894_v43, %v4091_v27 }
 0x349   : > { %v4410_v3 = vadd.f32 %v4409_v60, %v4297_v7  ;;  %v4299_v24 = vadd.f32 %v4298_v54, %v4186_v20  ;;  %v4411_v22 = vpop.f32.mrf.mxu1  ;;  %4958 = vmatprep.mubr.bf16.mxu1 %v4529_v17  ;;  %v4481_v37 = vmax.f32 %v4408_v56, 0.0 }
 0x34a   : > { %v4302_v36 = vpop.f32.mrf.mxu0  ;;  %4959 = vmatmul.mubr.bf16.gmra.mxu1 %v4528_v50 }
 0x34b   : > { %v4412_v1 = vadd.f32 %v4411_v22, %v4299_v24  ;;  %v4415_v42 = vpop.f32.mrf.mxu1  ;;  %v4484_v29 = vmax.f32 %v4410_v3, 0.0  ;;  %v4303_v63 = vadd.f32 %v4302_v36, %v7873_v13  ;;  %v4093_v13 = vadd.f32 %v7896_v30, %v7814_v0 }
 0x34c   : > { %v4304_v33 = vpop.f32.mrf.mxu0  ;;  %v4101_v3 = vadd.f32 %v7904_v21, %v7809_v45 }
 0x34d   : > { %v4485_v5 = vmax.f32 %v4412_v1, 0.0  ;;  %v4305_v34 = vadd.f32 %v4304_v33, %v7878_v62  ;;  %v4417_v14 = vpop.f32.mrf.mxu1  ;;  %v4532_v15 = vpack.c.bf16 %v4484_v29, %v4480_v47  ;;  %v4416_v62 = vadd.f32 %v4415_v42, %v4303_v63 }
 0x34e   : > { %v4306_v39 = vpop.f32.mrf.mxu0  ;;  %v4206_v60 = vadd.f32 %v7898_v46, %v4093_v13  ;;  %v4214_v29 = vadd.f32 %v7908_v26, %v4101_v3 }
 0x34f   : > { %v4533_v41 = vpack.c.bf16 %v4485_v5, %v4481_v37  ;;  %v4307_v57 = vadd.f32 %v4306_v39, %v4194_v48  ;;  %v4419_v25 = vpop.f32.mrf.mxu1  ;;  %v4418_v23 = vadd.f32 %v4417_v14, %v4305_v34  ;;  %v4488_v20 = vmax.f32 %v4416_v62, 0.0 }
 0x350   : > { %v4308_v35 = vpop.f32.mrf.mxu0 }
 0x351   : > { %v4420_v6 = vadd.f32 %v4419_v25, %v4307_v57  ;;  %v4309_v51 = vadd.f32 %v4308_v35, %v4196_v4  ;;  %v4421_v58 = vpop.f32.mrf.mxu1  ;;  %4966 = vmatprep.mubr.bf16.mxu1 %v4533_v41  ;;  %v4489_v16 = vmax.f32 %v4418_v23, 0.0  ;;  %v4111_v57 = vadd.f32 %v7918_v61, %v7809_v45  ;;  %v8261_v45 = vld [vmem:[#allocation31_spill] sm:$0xff] }
 0x352   : > { %v4312_v40 = vpop.f32.mrf.mxu0  ;;  %4967 = vmatmul.mubr.bf16.gmra.mxu1 %v4532_v15 }
 0x353   : > { %v4422_v12 = vadd.f32 %v4421_v58, %v4309_v51  ;;  %v4425_v11 = vpop.f32.mrf.mxu1  ;;  %v4492_v52 = vmax.f32 %v4420_v6, 0.0  ;;  %v4313_v17 = vadd.f32 %v4312_v40, %v7887_v18  ;;  %v4103_v18 = vadd.f32 %v7910_v49, %v7814_v0  ;;  %v8260_v58 = vld [vmem:[#allocation32_spill] sm:$0xff] }
 0x354   : > { %v4314_v38 = vpop.f32.mrf.mxu0  ;;  %v4224_v62 = vadd.f32 %v8260_v58, %v4111_v57 }
 0x355   : > { %v4493_v2 = vmax.f32 %v4422_v12, 0.0  ;;  %v4315_v55 = vadd.f32 %v4314_v38, %v7892_v19  ;;  %v4427_v59 = vpop.f32.mrf.mxu1  ;;  %v4536_v53 = vpack.c.bf16 %v4492_v52, %v4488_v20  ;;  %v4426_v19 = vadd.f32 %v4425_v11, %v4313_v17  ;;  %v8262_v52 = vld [vmem:[#allocation29_spill] sm:$0xff] }
 0x356   : > { %v4316_v7 = vpop.f32.mrf.mxu0  ;;  %v4216_v47 = vadd.f32 %v7912_v44, %v4103_v18  ;;  %v6589_v18 = vld [vmem:[#allocation11 + $0x10] sm:$0xff]  }
 0x357   : > { %v4537_v50 = vpack.c.bf16 %v4493_v2, %v4489_v16  ;;  %v4317_v54 = vadd.f32 %v4316_v7, %v4204_v9  ;;  %v4429_v30 = vpop.f32.mrf.mxu1  ;;  %v4428_v43 = vadd.f32 %v4427_v59, %v4315_v55  ;;  %v4496_v5 = vmax.f32 %v4426_v19, 0.0  ;;  %v8263_v16 = vld [vmem:[#allocation34_spill] sm:$0xff]  ;;  %v6587_v19 = vld [vmem:[#allocation11 + $0x20] sm:$0xff]  }
 0x358   : > { %v4318_v56 = vpop.f32.mrf.mxu0 }
 0x359   : > { %v4430_v24 = vadd.f32 %v4429_v30, %v4317_v54  ;;  %v4319_v22 = vadd.f32 %v4318_v56, %v4206_v60  ;;  %v4431_v8 = vpop.f32.mrf.mxu1  ;;  %4974 = vmatprep.mubr.bf16.mxu1 %v4537_v50  ;;  %v4497_v33 = vmax.f32 %v4428_v43, 0.0 }
 0x35a   : > { %v4322_v36 = vpop.f32.mrf.mxu0  ;;  %4975 = vmatmul.mubr.bf16.gmra.mxu1 %v4536_v53 }
 0x35b   : > { %v4432_v46 = vadd.f32 %v4431_v8, %v4319_v22  ;;  %v4435_v10 = vpop.f32.mrf.mxu1  ;;  %v4500_v1 = vmax.f32 %v4430_v24, 0.0  ;;  %v4323_v34 = vadd.f32 %v4322_v36, %v7901_v32  ;;  %v4113_v32 = vadd.f32 %v7924_v31, %v7814_v0  ;;  %v6586_v8 = vld [vmem:[#allocation11 + $0x28] sm:$0xff]   ;;  %v6588_v36 = vld [vmem:[#allocation11 + $0x18] sm:$0xff]  }
 0x35c   : > { %v4324_v42 = vpop.f32.mrf.mxu0  ;;  %6000 = vmatprep.subr.bf16.mxu0 %v6586_v8  ;;  %6030 = vmatprep.subr.bf16.mxu1 %v6586_v8 }
 0x35d   : > { %v4501_v48 = vmax.f32 %v4432_v46, 0.0  ;;  %v4325_v21 = vadd.f32 %v4324_v42, %v7906_v28  ;;  %v4437_v37 = vpop.f32.mrf.mxu1  ;;  %v4540_v4 = vpack.c.bf16 %v4500_v1, %v4496_v5  ;;  %v4436_v28 = vadd.f32 %v4435_v10, %v4323_v34  ;;  %6001 = vmatpush3.bf16.msra.mxu0 %v6586_v8  ;;  %6038 = vmatpush3.bf16.msra.mxu1 %v6586_v8  ;;  %v6590_v46 = vld [vmem:[#allocation11 + $0x8] sm:$0xff]   ;;  %v6591_v10 = vld [vmem:[#allocation11] sm:$0xff]  }
 0x35e   : > { %v4326_v14 = vpop.f32.mrf.mxu0  ;;  %v4226_v2 = vadd.f32 %v8263_v16, %v4113_v32  ;;  %6002 = vmatprep.subr.bf16.mxu0 %v6587_v19  ;;  %6031 = vmatprep.subr.bf16.mxu1 %v6587_v19 }
 0x35f   : > { %v4541_v63 = vpack.c.bf16 %v4501_v48, %v4497_v33  ;;  %v4327_v39 = vadd.f32 %v4326_v14, %v4214_v29  ;;  %v4439_v49 = vpop.f32.mrf.mxu1  ;;  %v4438_v26 = vadd.f32 %v4437_v37, %v4325_v21  ;;  %v4504_v11 = vmax.f32 %v4436_v28, 0.0 }
 0x360   : > { %v4328_v41 = vpop.f32.mrf.mxu0 }
 0x361   : > { %v4440_v25 = vadd.f32 %v4439_v49, %v4327_v39  ;;  %v4329_v15 = vadd.f32 %v4328_v41, %v4216_v47  ;;  %v4441_v35 = vpop.f32.mrf.mxu1  ;;  %4982 = vmatprep.mubr.bf16.mxu1 %v4541_v63  ;;  %v4505_v40 = vmax.f32 %v4438_v26, 0.0  ;;  %6003 = vmatpush3.bf16.msra.mxu0 %v6587_v19 }
 0x362   : > { %v4332_v27 = vpop.f32.mrf.mxu0  ;;  %4983 = vmatmul.mubr.bf16.gmra.mxu1 %v4540_v4  ;;  %6004 = vmatprep.subr.bf16.mxu0 %v6588_v36 }
 0x363   : > { %v4442_v44 = vadd.f32 %v4441_v35, %v4329_v15  ;;  %v4445_v23 = vpop.f32.mrf.mxu1  ;;  %v4508_v6 = vmax.f32 %v4440_v25, 0.0  ;;  %v4333_v38 = vadd.f32 %v4332_v27, %v8262_v52  ;;  %6039 = vmatpush3.bf16.msra.mxu1 %v6587_v19  ;;  %v8001_v25 = vld [vmem:[%s8125_s6] ss:$0 sm:$0xff] }
 0x364   : > { %v4334_v51 = vpop.f32.mrf.mxu0  ;;  %6032 = vmatprep.subr.bf16.mxu1 %v6588_v36 }
 0x365   : > { %v4509_v13 = vmax.f32 %v4442_v44, 0.0  ;;  %v4335_v61 = vadd.f32 %v4334_v51, %v8261_v45  ;;  %v4447_v12 = vpop.f32.mrf.mxu1  ;;  %v4544_v31 = vpack.c.bf16 %v4508_v6, %v4504_v11  ;;  %v4446_v50 = vadd.f32 %v4445_v23, %v4333_v38  ;;  %6005 = vmatpush3.bf16.msra.mxu0 %v6588_v36 }
 0x366   : > { %v4336_v9 = vpop.f32.mrf.mxu0  ;;  %6006 = vmatprep.subr.bf16.mxu0 %v6589_v18 }
 0x367   : > { %v4545_v55 = vpack.c.bf16 %v4509_v13, %v4505_v40  ;;  %v4337_v59 = vadd.f32 %v4336_v9, %v4224_v62  ;;  %v4449_v0 = vpop.f32.mrf.mxu1  ;;  %v4448_v17 = vadd.f32 %v4447_v12, %v4335_v61  ;;  %v4512_v43 = vmax.f32 %v4446_v50, 0.0  ;;  %6040 = vmatpush3.bf16.msra.mxu1 %v6588_v36 }
 0x368   : > { %v4338_v20 = vpop.f32.mrf.mxu0  ;;  %6033 = vmatprep.subr.bf16.mxu1 %v6589_v18 }
 0x369   : > { %v4450_v7 = vadd.f32 %v4449_v0, %v4337_v59  ;;  %v4339_v60 = vadd.f32 %v4338_v20, %v4226_v2  ;;  %4990 = vmatprep.mubr.bf16.mxu1 %v4545_v55  ;;  %v4451_v54 = vpop.f32.mrf.mxu1  ;;  %v4513_v56 = vmax.f32 %v4448_v17, 0.0  ;;  %6007 = vmatpush3.bf16.msra.mxu0 %v6589_v18 }
 0x36a   : > { %4991 = vmatmul.mubr.bf16.gmra.mxu1 %v4544_v31  ;;  %6008 = vmatprep.subr.bf16.mxu0 %v6590_v46 }
 0x36b   : > { %v4452_v30 = vadd.f32 %v4451_v54, %v4339_v60  ;;  %v4516_v53 = vmax.f32 %v4450_v7, 0.0  ;;  %6041 = vmatpush3.bf16.msra.mxu1 %v6589_v18 }
 0x36c   : > { %6034 = vmatprep.subr.bf16.mxu1 %v6590_v46 }
 0x36d   : > { %v4517_v3 = vmax.f32 %v4452_v30, 0.0  ;;  %v4548_v22 = vpack.c.bf16 %v4516_v53, %v4512_v43  ;;  %6009 = vmatpush3.bf16.msra.mxu0 %v6590_v46 }
 0x36e   : > { %6010 = vmatprep.subr.bf16.mxu0 %v6591_v10 }
 0x36f   : > { %v4549_v24 = vpack.c.bf16 %v4517_v3, %v4513_v56  ;;  %6042 = vmatpush3.bf16.msra.mxu1 %v6590_v46 }
 0x370   : > { %6035 = vmatprep.subr.bf16.mxu1 %v6591_v10 }
 0x371   : > { %4998 = vmatprep.mubr.bf16.mxu1 %v4549_v24  ;;  %6011 = vmatpush3.bf16.msra.mxu0 %v6591_v10 }
 0x372   : > { %4999 = vmatmul.mubr.bf16.gmra.mxu1 %v4548_v22 }
 0x373   : > { %6043 = vmatpush3.bf16.msra.mxu1 %v6591_v10 }
 0x379   : > { %v5868_v1 = vpop.f32.mrf.mxu0 }
 0x37b   : > { %v5869_v42 = vpop.f32.mrf.mxu0 }
 0x37c   : > { %v5870_v26 = vadd.f32 %v5869_v42, %v5868_v1 }
 0x37d   : > { %v5871_v29 = vpop.f32.mrf.mxu0 }
 0x37e   : > { %v4848_v27 = vadd.f32 %v5870_v26, %v8001_v25 }
 0x37f   : > { %v5872_v33 = vpop.f32.mrf.mxu0 }
 0x380   : > { %v5873_v32 = vadd.f32 %v5872_v33, %v5871_v29 }
 0x381   : > { %v5874_v48 = vpop.f32.mrf.mxu0 }
 0x382   : > { %v4851_v62 = vadd.f32 %v5873_v32, %v8001_v25 }
 0x383   : > { %v5875_v21 = vpop.f32.mrf.mxu0 }
 0x384   : > { %v5876_v40 = vadd.f32 %v5875_v21, %v5874_v48 }
 0x385   : > { %v5877_v37 = vpop.f32.mrf.mxu0 }
 0x386   : > { %v4856_v38 = vadd.f32 %v5876_v40, %v8001_v25 }
 0x387   : > { %v5878_v5 = vpop.f32.mrf.mxu0 }
 0x388   : > { %v5879_v9 = vadd.f32 %v5878_v5, %v5877_v37 }
 0x389   : > { %v5880_v34 = vpop.f32.mrf.mxu0 }
 0x38a   : > { %v4859_v7 = vadd.f32 %v5879_v9, %v8001_v25 }
 0x38b   : > { %v5881_v14 = vpop.f32.mrf.mxu0 }
 0x38c   : > { %v5882_v60 = vadd.f32 %v5881_v14, %v5880_v34 }
 0x38d   : > { %v5883_v47 = vpop.f32.mrf.mxu0 }
 0x38e   : > { %v4864_v24 = vadd.f32 %v5882_v60, %v8001_v25 }
 0x38f   : > { %v5884_v63 = vpop.f32.mrf.mxu0 }
 0x390   : > { %v5885_v22 = vadd.f32 %v5884_v63, %v5883_v47 }
 0x391   : > { %v5886_v39 = vpop.f32.mrf.mxu0 }
 0x392   : > { %v4867_v29 = vadd.f32 %v5885_v22, %v8001_v25 }
 0x393   : > { %v5887_v49 = vpop.f32.mrf.mxu0 }
 0x394   : > { %v5888_v33 = vadd.f32 %v5887_v49, %v5886_v39 }
 0x395   : > { %v7992_v4 = vpop.f32.mrf.mxu0 }
 0x396   : > { %v4872_v47 = vadd.f32 %v5888_v33, %v8001_v25 }
 0x397   : > { %v7994_v41 = vpop.f32.mrf.mxu0 }
 0x398   : > { %v5891_v63 = vadd.f32 %v7994_v41, %v7992_v4 }
 0x399   : > { %v7996_v57 = vpop.f32.mrf.mxu0 }
 0x39b   : > { %v8003_v15 = vpop.f32.mrf.mxu0 }
 0x39d   : > { %v8006_v23 = vpop.f32.mrf.mxu0 }
 0x39f   : > { %v8009_v45 = vpop.f32.mrf.mxu0 }
 0x3a1   : > { %v8012_v55 = vpop.f32.mrf.mxu0 }
 0x3a3   : > { %v5899_v30 = vpop.f32.mrf.mxu0 }
 0x3a5   : > { %v5901_v36 = vpop.f32.mrf.mxu0 }
 0x3a7   : > { %v5902_v37 = vpop.f32.mrf.mxu0 }
 0x3fa   : > { %v5932_v35 = vpop.f32.mrf.mxu1 }
 0x3fc   : > { %v5933_v28 = vpop.f32.mrf.mxu1 }
 0x3fd   : > { %v5934_v44 = vadd.f32 %v5933_v28, %v5932_v35 }
 0x3fe   : > { %v5935_v6 = vpop.f32.mrf.mxu1 }
 0x3ff   : > { %v4945_v51 = vadd.f32 %v5934_v44, %v4848_v27  ;;  %v5904_v27 = vpop.f32.mrf.mxu0 }
 0x400   : > { %v5936_v58 = vpop.f32.mrf.mxu1 }
 0x401   : > { %v5937_v13 = vadd.f32 %v5936_v58, %v5935_v6  ;;  %v5007_v12 = vmul.f32 0.1, %v4945_v51  ;;  %v5894_v58 = vadd.f32 %v8003_v15, %v7996_v57 }
 0x402   : > { %v5938_v61 = vpop.f32.mrf.mxu1 }
 0x403   : > { %v4948_v11 = vadd.f32 %v5937_v13, %v4851_v62  ;;  %v5023_v0 = vmax.f32 %v4945_v51, %v5007_v12  ;;  %v4875_v51 = vadd.f32 %v5891_v63, %v8001_v25  ;;  %v5905_v13 = vpop.f32.mrf.mxu0  ;;  %v4880_v41 = vadd.f32 %v5894_v58, %v8001_v25 }
 0x404   : > { %v5939_v52 = vpop.f32.mrf.mxu1 }
 0x405   : > { %v5008_v16 = vmul.f32 0.1, %v4948_v11  ;;  %v5940_v2 = vadd.f32 %v5939_v52, %v5938_v61  ;;  %v5897_v52 = vadd.f32 %v8009_v45, %v8006_v23 }
 0x406   : > { %v5941_v59 = vpop.f32.mrf.mxu1 }
 0x407   : > { %v5024_v31 = vmax.f32 %v4948_v11, %v5008_v16  ;;  %v4953_v20 = vadd.f32 %v5940_v2, %v4856_v38  ;;  %v5907_v16 = vpop.f32.mrf.mxu0 }
 0x408   : > { %v5942_v17 = vpop.f32.mrf.mxu1 }
 0x409   : > { %v5943_v50 = vadd.f32 %v5942_v17, %v5941_v59  ;;  %v5039_v54 = vpack.c.bf16 %v5024_v31, %v5023_v0  ;;  %v5009_v56 = vmul.f32 0.1, %v4953_v20  ;;  %v4883_v31 = vadd.f32 %v5897_v52, %v8001_v25  ;;  %v5908_v60 = vpop.f32.mrf.mxu0 }
 0x40a   : > { %v5944_v53 = vpop.f32.mrf.mxu1 }
 0x40b   : > { %v4956_v3 = vadd.f32 %v5943_v50, %v4859_v7  ;;  %6012 = vmatprep.mubr.bf16.mxu0 %v5039_v54  ;;  %v5025_v46 = vmax.f32 %v4953_v20, %v5009_v56  ;;  %v5900_v20 = vadd.f32 %v5899_v30, %v8012_v55  ;;  %v5903_v56 = vadd.f32 %v5902_v37, %v5901_v36 }
 0x40c   : > { %v5945_v43 = vpop.f32.mrf.mxu1  ;;  %v5906_v30 = vadd.f32 %v5905_v13, %v5904_v27  ;;  %v5909_v37 = vadd.f32 %v5908_v60, %v5907_v16 }
 0x40d   : > { %v5010_v8 = vmul.f32 0.1, %v4956_v3  ;;  %v5946_v19 = vadd.f32 %v5945_v43, %v5944_v53  ;;  %v4888_v45 = vadd.f32 %v5900_v20, %v8001_v25  ;;  %v4891_v55 = vadd.f32 %v5903_v56, %v8001_v25 }
 0x40e   : > { %v5947_v18 = vpop.f32.mrf.mxu1  ;;  %v4896_v36 = vadd.f32 %v5906_v30, %v8001_v25  ;;  %v4899_v27 = vadd.f32 %v5909_v37, %v8001_v25 }
 0x40f   : > { %v5026_v10 = vmax.f32 %v4956_v3, %v5010_v8  ;;  %v4961_v1 = vadd.f32 %v5946_v19, %v4864_v24  ;;  %v5910_v24 = vpop.f32.mrf.mxu0 }
 0x410   : > { %v5948_v42 = vpop.f32.mrf.mxu1 }
 0x411   : > { %v5040_v48 = vpack.c.bf16 %v5026_v10, %v5025_v46  ;;  %v5949_v21 = vadd.f32 %v5948_v42, %v5947_v18  ;;  %v5011_v34 = vmul.f32 0.1, %v4961_v1  ;;  %v5911_v42 = vpop.f32.mrf.mxu0 }
 0x412   : > { %v5950_v5 = vpop.f32.mrf.mxu1 }
 0x413   : > { %v4964_v14 = vadd.f32 %v5949_v21, %v4867_v29  ;;  %6013 = vmatmul.mubr.bf16.vlgmr.msra.gmra.mxu0 %v5040_v48  ;;  %v5027_v44 = vmax.f32 %v4961_v1, %v5011_v34 }
 0x414   : > { %v5951_v26 = vpop.f32.mrf.mxu1 }
 0x415   : > { %v5012_v35 = vmul.f32 0.1, %v4964_v14  ;;  %v5952_v28 = vadd.f32 %v5951_v26, %v5950_v5 }
 0x416   : > { %v5953_v32 = vpop.f32.mrf.mxu1 }
 0x417   : > { %v5028_v6 = vmax.f32 %v4964_v14, %v5012_v35  ;;  %v4969_v39 = vadd.f32 %v5952_v28, %v4872_v47  ;;  %v5913_v14 = vpop.f32.mrf.mxu0 }
 0x418   : > { %v5954_v49 = vpop.f32.mrf.mxu1 }
 0x419   : > { %v5955_v62 = vadd.f32 %v5954_v49, %v5953_v32  ;;  %v5041_v40 = vpack.c.bf16 %v5028_v6, %v5027_v44  ;;  %v5013_v12 = vmul.f32 0.1, %v4969_v39  ;;  %v5912_v32 = vadd.f32 %v5911_v42, %v5910_v24 }
 0x41a   : > { %v5956_v61 = vpop.f32.mrf.mxu1 }
 0x41b   : > { %v4972_v11 = vadd.f32 %v5955_v62, %v4875_v51  ;;  %6016 = vmatprep.mubr.bf16.mxu0 %v5041_v40  ;;  %v5029_v59 = vmax.f32 %v4969_v39, %v5013_v12  ;;  %v5914_v39 = vpop.f32.mrf.mxu0  ;;  %v4904_v40 = vadd.f32 %v5912_v32, %v8001_v25 }
 0x41c   : > { %v5957_v4 = vpop.f32.mrf.mxu1  ;;  %v5915_v13 = vadd.f32 %v5914_v39, %v5913_v14 }
 0x41d   : > { %v5014_v38 = vmul.f32 0.1, %v4972_v11  ;;  %v5958_v9 = vadd.f32 %v5957_v4, %v5956_v61 }
 0x41e   : > { %v5959_v2 = vpop.f32.mrf.mxu1 }
 0x41f   : > { %v5030_v0 = vmax.f32 %v4972_v11, %v5014_v38  ;;  %v4977_v57 = vadd.f32 %v5958_v9, %v4880_v41  ;;  %v4907_v9 = vadd.f32 %v5915_v13, %v8001_v25 }
 0x420   : > { %v5960_v15 = vpop.f32.mrf.mxu1 }
 0x421   : > { %v5042_v17 = vpack.c.bf16 %v5030_v0, %v5029_v59  ;;  %v5961_v7 = vadd.f32 %v5960_v15, %v5959_v2  ;;  %v5015_v54 = vmul.f32 0.1, %v4977_v57 }
 0x422   : > { %v5962_v50 = vpop.f32.mrf.mxu1 }
 0x423   : > { %v4980_v53 = vadd.f32 %v5961_v7, %v4883_v31  ;;  %6017 = vmatmul.mubr.bf16.gmra.mxu0 %v5042_v17  ;;  %v5031_v8 = vmax.f32 %v4977_v57, %v5015_v54  ;;  %v5830_v17 = vld [vmem:[%s8127_s8] ss:$0 sm:$0xff] }
 0x424   : > { %v5963_v23 = vpop.f32.mrf.mxu1 }
 0x425   : > { %v5016_v3 = vmul.f32 0.1, %v4980_v53  ;;  %v5964_v43 = vadd.f32 %v5963_v23, %v5962_v50 }
 0x426   : > { %v5965_v22 = vpop.f32.mrf.mxu1 }
 0x427   : > { %v5032_v19 = vmax.f32 %v4980_v53, %v5016_v3  ;;  %v4985_v18 = vadd.f32 %v5964_v43, %v4888_v45 }
 0x428   : > { %v5966_v46 = vpop.f32.mrf.mxu1 }
 0x429   : > { %v5967_v10 = vadd.f32 %v5966_v46, %v5965_v22  ;;  %v5043_v1 = vpack.c.bf16 %v5032_v19, %v5031_v8  ;;  %v5017_v33 = vmul.f32 0.1, %v4985_v18 }
 0x42a   : > { %v5968_v29 = vpop.f32.mrf.mxu1 }
 0x42b   : > { %v4988_v48 = vadd.f32 %v5967_v10, %v4891_v55  ;;  %6020 = vmatprep.mubr.bf16.mxu1 %v5043_v1  ;;  %v5033_v47 = vmax.f32 %v4985_v18, %v5017_v33 }
 0x42c   : > { %v5969_v21 = vpop.f32.mrf.mxu1 }
 0x42d   : > { %v5018_v5 = vmul.f32 0.1, %v4988_v48  ;;  %v5970_v34 = vadd.f32 %v5969_v21, %v5968_v29 }
 0x42e   : > { %v5971_v26 = vpop.f32.mrf.mxu1 }
 0x42f   : > { %v5034_v63 = vmax.f32 %v4988_v48, %v5018_v5  ;;  %v4993_v35 = vadd.f32 %v5970_v34, %v4896_v36 }
 0x430   : > { %v5972_v28 = vpop.f32.mrf.mxu1 }
 0x431   : > { %v5044_v44 = vpack.c.bf16 %v5034_v63, %v5033_v47  ;;  %v5973_v6 = vadd.f32 %v5972_v28, %v5971_v26  ;;  %v5019_v51 = vmul.f32 0.1, %v4993_v35 }
 0x432   : > { %v5974_v49 = vpop.f32.mrf.mxu1 }
 0x433   : > { %v4996_v58 = vadd.f32 %v5973_v6, %v4899_v27  ;;  %6021 = vmatmul.mubr.bf16.vlgmr.msra.gmra.mxu1 %v5044_v44  ;;  %v5035_v4 = vmax.f32 %v4993_v35, %v5019_v51 }
 0x434   : > { %v5975_v62 = vpop.f32.mrf.mxu1 }
 0x435   : > { %v5020_v61 = vmul.f32 0.1, %v4996_v58  ;;  %v5976_v12 = vadd.f32 %v5975_v62, %v5974_v49 }
 0x436   : > { %v5977_v11 = vpop.f32.mrf.mxu1 }
 0x437   : > { %v5036_v41 = vmax.f32 %v4996_v58, %v5020_v61  ;;  %v5001_v52 = vadd.f32 %v5976_v12, %v4904_v40 }
 0x438   : > { %v5978_v38 = vpop.f32.mrf.mxu1 }
 0x439   : > { %v5979_v16 = vadd.f32 %v5978_v38, %v5977_v11  ;;  %v5045_v2 = vpack.c.bf16 %v5036_v41, %v5035_v4  ;;  %v5021_v59 = vmul.f32 0.1, %v5001_v52 }
 0x43b   : > { %v5004_v0 = vadd.f32 %v5979_v16, %v4907_v9  ;;  %6024 = vmatprep.mubr.bf16.mxu1 %v5045_v2  ;;  %v5037_v15 = vmax.f32 %v5001_v52, %v5021_v59 }
 0x43d   : > { %v5022_v57 = vmul.f32 0.1, %v5004_v0 }
 0x43f   : > { %v5038_v31 = vmax.f32 %v5004_v0, %v5022_v57 }
 0x441   : > { %v5046_v20 = vpack.c.bf16 %v5038_v31, %v5037_v15 }
 0x443   : > { %6025 = vmatmul.mubr.bf16.gmra.mxu1 %v5046_v20 }
 0x4d3   : > { %v6014_v7 = vpop.f32.mrf.mxu0 }
 0x4d4   : > { %v5161_v60 = vadd.f32 %v6014_v7, %v5830_v17 }
 0x4d5   : > { %v5152_v50 = vpop.f32.mrf.mxu0 }
 0x4d6   : > { %5217 = vst [vmem:[%s8039_s25 + $0x10] sm:$0xff] %v5161_v60  ;;  %v5153_v25 = vadd.f32 %v5830_v17, %v5152_v50 }
 0x4d7   : > { %v6015_v54 = vpop.f32.mrf.mxu0 }
 0x4d8   : > { %5215 = vst [vmem:[%s8039_s25] sm:$0xff] %v5153_v25  ;;  %v5164_v53 = vadd.f32 %v6015_v54, %v5830_v17 }
 0x4d9   : > { %v5155_v23 = vpop.f32.mrf.mxu0 }
 0x4da   : > { %5218 = vst [vmem:[%s8039_s25 + $0x18] sm:$0xff] %v5164_v53  ;;  %v5156_v45 = vadd.f32 %v5830_v17, %v5155_v23 }
 0x4dc   : > { %5216 = vst [vmem:[%s8039_s25 + $0x8] sm:$0xff] %v5156_v45 }
 0x4e3   : > { %v6018_v56 = vpop.f32.mrf.mxu0 }
 0x4e4   : > { %v5177_v3 = vadd.f32 %v6018_v56, %v5830_v17 }
 0x4e5   : > { %v5168_v43 = vpop.f32.mrf.mxu0 }
 0x4e6   : > { %5221 = vst [vmem:[%s8039_s25 + $0x30] sm:$0xff] %v5177_v3  ;;  %v5169_v24 = vadd.f32 %v5830_v17, %v5168_v43 }
 0x4e7   : > { %v6019_v22 = vpop.f32.mrf.mxu0 }
 0x4e8   : > { %5219 = vst [vmem:[%s8039_s25 + $0x20] sm:$0xff] %v5169_v24  ;;  %v5180_v8 = vadd.f32 %v6019_v22, %v5830_v17 }
 0x4e9   : > { %v5171_v19 = vpop.f32.mrf.mxu0 }
 0x4ea   : > { %5222 = vst [vmem:[%s8039_s25 + $0x38] sm:$0xff] %v5180_v8  ;;  %v5172_v18 = vadd.f32 %v5830_v17, %v5171_v19 }
 0x4ec   : > { %5220 = vst [vmem:[%s8039_s25 + $0x28] sm:$0xff] %v5172_v18 }
 0x4f3   : > { %v6022_v46 = vpop.f32.mrf.mxu1 }
 0x4f4   : > { %v5193_v55 = vadd.f32 %v6022_v46, %v5830_v17 }
 0x4f5   : > { %v5184_v30 = vpop.f32.mrf.mxu1 }
 0x4f6   : > { %5225 = vst [vmem:[%s8039_s25 + $0x50] sm:$0xff] %v5193_v55  ;;  %v5185_v10 = vadd.f32 %v5830_v17, %v5184_v30 }
 0x4f7   : > { %v6023_v1 = vpop.f32.mrf.mxu1 }
 0x4f8   : > { %5223 = vst [vmem:[%s8039_s25 + $0x40] sm:$0xff] %v5185_v10  ;;  %v5196_v42 = vadd.f32 %v6023_v1, %v5830_v17 }
 0x4f9   : > { %v5187_v29 = vpop.f32.mrf.mxu1 }
 0x4fa   : > { %5226 = vst [vmem:[%s8039_s25 + $0x58] sm:$0xff] %v5196_v42  ;;  %v5188_v33 = vadd.f32 %v5830_v17, %v5187_v29 }
 0x4fc   : > { %5224 = vst [vmem:[%s8039_s25 + $0x48] sm:$0xff] %v5188_v33 }
 0x503   : > { %v6026_v48 = vpop.f32.mrf.mxu1 }
 0x504   : > { %v5209_v21 = vadd.f32 %v6026_v48, %v5830_v17 }
 0x505   : > { %v5200_v36 = vpop.f32.mrf.mxu1 }
 0x506   : > { %5229 = vst [vmem:[%s8039_s25 + $0x70] sm:$0xff] %v5209_v21  ;;  %v5201_v37 = vadd.f32 %v5830_v17, %v5200_v36 }
 0x507   : > { %v6027_v5 = vpop.f32.mrf.mxu1 }
 0x508   : > { %5227 = vst [vmem:[%s8039_s25 + $0x60] sm:$0xff] %v5201_v37  ;;  %v5212_v34 = vadd.f32 %v6027_v5, %v5830_v17  ;;  %5238 = sbr.rel (!%p8264_p1) target bundleno = 1320 (0x528), region = 84 }
 0x509   : > { %v5203_v14 = vpop.f32.mrf.mxu1 }
 0x50a   : > { %5230 = vst [vmem:[%s8039_s25 + $0x78] sm:$0xff] %v5212_v34  ;;  %v5204_v26 = vadd.f32 %v5830_v17, %v5203_v14 }
 0x50c   : > { %5228 = vst [vmem:[%s8039_s25 + $0x68] sm:$0xff] %v5204_v26 }
 0x50d   : > { %s8276_s17 = smov (!%p5241_p7, %s5240_s17), 16 }
 0x50e   : > { %s8061_s30 = sshll.u32 %s8276_s17, 7 }
 0x50f   : > { %s5245_s29 = ssub.s32 2048, %s8061_s30 }
 0x510   : > { %5246 = vsyncadd %s5232_s19, %s5245_s29  ;;  %p5842_p0 = scmp.ne.s32.totalorder %s8061_s30, 0  ;;  %s5851_s21 = sshll.u32 %s6915_s13, 11 }
 0x511   : > { %s8071_s22 = scalar_lea.hbm %s8128_s9, %s5851_s21  ;;  %s5251_s20 = sshll.u32 %s8039_s25, 4  ;;  %s8074_s20 = int_to_ptr.vmem [resolvable:$true] %s5251_s20 }
 0x512   : > { %s6749_s23 = scalar_lea.vmem %s8074_s20, %s8061_s30  ;;  %s6841_s26 = smov [#allocation13]  }
 0x513   : > { %p6750_p9 = scmp.ne.s32.totalorder %s8074_s20, %s6749_s23  ;;  %s6753_s28 = sshll.u32 %s6841_s26, 4  ;;  %s6754_s28 = int_to_ptr.vmem [resolvable:$false] %s6753_s28 }
 0x514   : > { %s6755_s13 = scalar_lea.vmem %s6754_s28, 4096  ;;  %p6756_p11 = scmp.lt.s32.totalorder %s8074_s20, %s6754_s28 }
 0x515   : > { %p6751_p4 = pnand %p6750_p9, %p5842_p0  ;;  %p6757_p2 = scmp.lt.s32.totalorder %s6755_s13, %s6749_s23 }
 0x517   : > { %p6752_p6 = pneg %p6751_p4  ;;  %p6758_p12 = por %p6757_p2, %p6756_p11 }
 0x519   : > { %p6759_p13 = pnand %p6758_p12, %p6752_p6 }
 0x51b   : > { %6762 = shalt.err (!%p6759_p13)
}
 0x51c   : > { %s6763_s27 = scalar_lea.hbm %s8071_s22, %s8061_s30  ;;  %s6767_s16 = scalar_lea.hbm %s8128_s9, 3200 }
 0x51d   : > { %p6764_p8 = scmp.ne.s32.totalorder %s8071_s22, %s6763_s27  ;;  %p6768_p1 = scmp.lt.s32.totalorder %s8071_s22, %s8128_s9 }
 0x51e   : > { %p6769_p7 = scmp.lt.s32.totalorder %s6767_s16, %s6763_s27 }
 0x51f   : > { %p6765_p10 = pnand %p6764_p8, %p5842_p0 }
 0x520   : > { %p6770_p9 = por %p6769_p7, %p6768_p1 }
 0x521   : > { %p6766_p5 = pneg %p6765_p10 }
 0x523   : > { %p6771_p4 = pnand %p6770_p9, %p6766_p5 }
 0x525   : > { %6774 = shalt.err (!%p6771_p4)
}
 0x526   : > { %s6842_s21 = smov 128   ;;  %s6843_s15 = smov 8  }
 0x527   : > { %5257 = dma.vmem_to_hbm [thread:$0]  (%p5842_p0), %s8074_s20, %s8061_s30, %s8071_s22, %s5232_s19, %s6842_s21, %s6842_s21, %s6843_s15  }
 0x528 PF: > { %s8265_s14 = sld [smem:[#allocation19_spill]] }
 0x529   : > { %s8266_s23 = sld [smem:[#allocation22_spill]] }
 0x52e   : > { %s5266_s26 = sand.u32 1, %s8265_s14  }
 0x52f   : > { %p8267_p6 = scmp.ne.s32.totalorder %s8266_s23, 0  ;;  %s5267_s28 = scalar_lea.sflag [#allocation4], %s5266_s26 }
 0x531   : > { %p6083_p11 = pnand %p5379_p3, %p8267_p6 }
 0x533   : > { %p6084_p2 = pneg %p6083_p11 }
 0x535   : > { %6808 = dma.done.wait (%p6084_p2), %s5267_s28, 2048  }
 0x536   : > { %6810 = vsyncadd (%p6084_p2), %s5267_s28, 4294965248  ;;  %s8268_s12 = sld [smem:[#allocation20_spill]]  ;;  %s8270_s30 = smov %s6817_s10 }
 0x537   : > { %s8269_s13 = sld [smem:[#allocation21_spill]]  ;;  %s8271_s10 = smov %s6821_s11 }
 0x53c   : > { %p25_p12 = scmp.ge.s32.totalorder %s8268_s12, 4  }
 0x53d   : > { %s8272_s11 = smov %s8269_s13 }
 0x53e   :  { %27 = sbr.rel (!%p25_p12) target bundleno = 8 (0x8), region = 121 }
 0x543   :  { %5272 = vsyncpa [#allocation3], 1 }
 0x544   :  { %5274 = vsyncpa [#allocation3 + $0x1], 1 }
 0x545   :  { %5275 = vsyncpa [#allocation6], 1 }
 0x546   :  { %5276 = vsyncpa [#allocation9], 1 }
 0x547   :  { %5277 = vsyncpa [#allocation12], 1 }
 0x548   :  { %5278 = vsyncpa [#allocation4], 1 }
 0x549   :  { %5280 = vsyncpa [#allocation4 + $0x1], 1 }

</bundles_post_ra>
